<compile_context>
chip_gen: v6e
topology: v6e:2x2x1
jax: 0.10.0
libtpu: 0.0.40
codegen_flags: <defaults>
</compile_context>

<pallas_src>
import jax
import jax.numpy as jnp
from jax.experimental import pallas as pl
from jax.experimental.pallas import tpu as pltpu


# ---------------------------------------------------------------------------
# In-kernel math helpers (exact-erf GELU + swish)
# ---------------------------------------------------------------------------
def _erf_approx(x):
    # Abramowitz & Stegun 7.1.26 rational approximation, |error| < 1.5e-7.
    p = 0.3275911
    a1, a2, a3, a4, a5 = (0.254829592, -0.284496736, 1.421413741,
                          -1.453152027, 1.061405429)
    ax = jnp.abs(x)
    t = 1.0 / (1.0 + p * ax)
    poly = ((((a5 * t + a4) * t + a3) * t + a2) * t + a1) * t
    y = 1.0 - poly * jnp.exp(-ax * ax)
    return jnp.where(x < 0.0, -y, y)


def _gelu_erf(x):
    # Matches PyTorch nn.GELU() (erf form) to ~1e-7.
    return 0.5 * x * (1.0 + _erf_approx(x * 0.7071067811865476))


# ---------------------------------------------------------------------------
# Fused kernel: depthwise convs + pool + reweight MLP + recombination
# ---------------------------------------------------------------------------
def _lmm_fused_kernel(x_ref, wh_ref, ww_ref, g_ref, gt_ref, w1_ref, b1_ref,
                      w2_ref, b2_ref, out_ref, xp_sc):
    # x_ref : (bn, H, W*C)        channels-last, W folded into the lane axis
    # wh_ref: (21, 1, W*C)        fc_h (3,7) taps, row = a*7 + b, tiled over W
    # ww_ref: (21, 1, W*C)        fc_w (7,3) taps, row = a*3 + b, tiled over W
    # g_ref : (W*C, C)            folds the W copies back to per-channel sums
    # gt_ref: (C, W*C)            expands per-channel values to the lane layout
    # w1_ref: (C, hidden)  b1_ref: (1, hidden)      reweight fc1 (transposed)
    # w2_ref: (3, hidden, C)  b2_ref: (3, 1, C)     reweight fc2 (per branch)
    # out_ref: (bn, H, W*C)       x_att
    # xp_sc : (bn, H+6, (W+6)*C)  persistent VMEM scratch (zero-padded copy)
    bn, H, WC = x_ref.shape
    C = g_ref.shape[1]
    W = WC // C

    # ---- zero only the 3-wide halo ring, then write the interior ----------
    # Re-zeroed every step (cheap: O(H + W) strips).  Not gated on pid == 0:
    # under megacore partitioning the 2nd core's private scratch never sees
    # program_id 0 and would stay uninitialised.
    xp_sc[:, 0:3, :] = jnp.zeros((bn, 3, (W + 6) * C), jnp.float32)
    xp_sc[:, H + 3:H + 6, :] = jnp.zeros((bn, 3, (W + 6) * C), jnp.float32)
    xp_sc[:, :, 0:3 * C] = jnp.zeros((bn, H + 6, 3 * C), jnp.float32)
    xp_sc[:, :, (W + 3) * C:(W + 6) * C] = jnp.zeros((bn, H + 6, 3 * C),
                                                     jnp.float32)
    xp_sc[:, 3:3 + H, 3 * C:(3 + W) * C] = x_ref[...]

    # ---- depthwise convs: one lane-shifted slab live at a time ------------
    #   x_w = fc_h(x): out[i, w, c] = sum_{a<3,b<7} wh[c,a,b] * xp[i+a+2, w+b, c]
    #   x_h = fc_w(x): out[i, w, c] = sum_{a<7,b<3} ww[c,a,b] * xp[i+a, w+b+2, c]
    xw = jnp.zeros((bn, H, WC), jnp.float32)          # = fc_h(x)
    xh = jnp.zeros((bn, H, WC), jnp.float32)          # = fc_w(x)
    for s in range(7):                                # W-shift (lane axis), hoisted
        slab = xp_sc[:, :, s * C:(s + W) * C]         # (bn, H+6, W*C)
        for a in range(3):                            # fc_h taps with b == s
            xw = xw + slab[:, a + 2:a + 2 + H, :] * wh_ref[a * 7 + s]
        if 2 <= s <= 4:                               # fc_w taps with b == s - 2
            for a in range(7):
                xh = xh + slab[:, a:a + H, :] * ww_ref[a * 3 + (s - 2)]

    x = x_ref[...]
    inv_hw = 1.0 / float(H * W)

    # ---- per-image pool + tiny reweight MLP (on the otherwise idle MXU) ---
    for b in range(bn):
        xh_b = xh[b]                                  # (H, W*C)
        xw_b = xw[b]
        x_b = x[b]
        ssum = (jnp.sum(xh_b, axis=0, keepdims=True)
                + jnp.sum(xw_b, axis=0, keepdims=True)
                + jnp.sum(x_b, axis=0, keepdims=True))                # (1, W*C)
        pooled = jnp.dot(ssum, g_ref[...],
                         preferred_element_type=jnp.float32) * inv_hw  # (1, C)

        h = jnp.dot(pooled, w1_ref[...],
                    preferred_element_type=jnp.float32) + b1_ref[...]  # (1, hidden)
        h = _gelu_erf(h)

        att = []
        for k in range(3):
            ak = jnp.dot(h, w2_ref[k],
                         preferred_element_type=jnp.float32) + b2_ref[k]  # (1, C)
            ak = ak * jax.nn.sigmoid(ak)               # swish
            # expand per-channel weights back to the (W*C) lane layout
            att.append(jnp.dot(ak, gt_ref[...],
                               preferred_element_type=jnp.float32))    # (1, W*C)

        out_ref[b] = xh_b * att[0] + xw_b * att[1] + x_b * att[2]


# ---------------------------------------------------------------------------
# VMEM accounting + generation-aware batch-block picker
# ---------------------------------------------------------------------------
def _round_up(v, m):
    return (v + m - 1) // m * m


def _device_traits():
    """Best-effort TPU generation detection; falls back to safe defaults."""
    kind = ""
    try:
        kind = (jax.devices()[0].device_kind or "").lower()
    except Exception:
        pass
    is_v7 = ("v7" in kind) or ("7x" in kind)
    vmem_phys = 64 * 1024 * 1024 if is_v7 else 128 * 1024 * 1024
    try:
        info = pltpu.get_tpu_info()
        vmem_phys = int(getattr(info, "vmem_capacity_bytes", vmem_phys))
    except Exception:
        pass
    return is_v7, vmem_phys


def _vmem_bytes(bn, H, W, C, hidden):
    """Conservative VMEM footprint of one grid step, including the
    double-buffered input/output pipeline copies and (8,128) tile padding."""
    f = 4
    wc = W * C
    hp, wcp = _round_up(H, 8), _round_up(wc, 128)
    hq, wqp = _round_up(H + 6, 8), _round_up((W + 6) * C, 128)
    io_block = bn * hp * wcp * f
    pipeline = 2 * 2 * io_block                  # input + output, double-buffered
    scratch = bn * hq * wqp * f                  # zero-padded copy of x
    slab = bn * hq * wcp * f                     # one lane-shifted slab live
    accums = 2 * bn * hp * wcp * f               # xw, xh
    temps = 2 * bn * hp * wcp * f                # headroom for fused temporaries
    w_taps = 2 * 21 * 8 * wcp * f                # (21, 1, W*C) x 2
    w_fold = (_round_up(wc, 8) * _round_up(C, 128)
              + _round_up(C, 8) * _round_up(wc, 128)) * f   # g, g^T
    w_mlp = 8 * _round_up(max(C, hidden, 1), 128) * 8 * f   # tiny MLP tensors
    return pipeline + scratch + slab + accums + temps + w_taps + w_fold + w_mlp


def _pick_batch_block(N, H, W, C, hidden, budget_bytes, want_multi_step,
                      max_bn=8):
    """Largest divisor of N (capped) whose working set fits the budget; on
    megacore parts (v7x) keep the grid extent >= 2 so both cores get work."""
    best = None
    for cand in range(1, min(N, max_bn) + 1):
        if N % cand:
            continue
        if _vmem_bytes(cand, H, W, C, hidden) > budget_bytes:
            continue
        if want_multi_step and N >= 2 and N // cand < 2:
            continue
        best = cand
    if best is None:
        # TODO(synk): single image overflows the budget (huge H*W*C) -- needs
        # the H-tiled two-pass fallback; fall through with bn=1 for now.
        best = 1
    return best


# ---------------------------------------------------------------------------
# Wrapper (PyTorch-equivalent forward, NCHW in / NCHW out)
# ---------------------------------------------------------------------------
def lmm_forward(x_nchw, params, *, interpret=False):
    N, C, H, W = x_nchw.shape
    hidden = params["w1"].shape[0]
    WC = W * C

    # Channels-last with W folded into the lane axis: (N, H, W*C).
    x_blob = (jnp.transpose(x_nchw.astype(jnp.float32), (0, 2, 3, 1))
              .reshape(N, H, WC))

    # Depthwise taps as dense lane vectors (per-channel weight tiled over W).
    wh_taps = params["fc_h_w"].astype(jnp.float32).transpose(1, 2, 0).reshape(21, C)
    ww_taps = params["fc_w_w"].astype(jnp.float32).transpose(1, 2, 0).reshape(21, C)
    wh_t = jnp.tile(wh_taps, (1, W)).reshape(21, 1, WC)      # row = a*7 + b
    ww_t = jnp.tile(ww_taps, (1, W)).reshape(21, 1, WC)      # row = a*3 + b

    # Lane-fold helpers: gt expands per-channel rows to the W*C lane layout,
    # g = gt^T sums the W copies back down to per-channel values.
    gt = jnp.tile(jnp.eye(C, dtype=jnp.float32), (1, W))     # (C, W*C)
    g = gt.T                                                  # (W*C, C)

    # Reweight MLP, pre-transposed for row-major MXU dots; fc2 pre-permuted to
    # per-branch (hidden, C) blocks matching reshape(N, C, 3).permute(2, 0, 1).
    w1t = params["w1"].astype(jnp.float32).T                  # (C, hidden)
    b1 = params["b1"].astype(jnp.float32).reshape(1, hidden)
    w2t = (params["w2"].astype(jnp.float32)
           .reshape(C, 3, hidden).transpose(1, 2, 0))         # (3, hidden, C)
    b2 = params["b2"].astype(jnp.float32).reshape(C, 3).T.reshape(3, 1, C)

    is_v7, vmem_phys = _device_traits()
    vmem_limit = min(int(vmem_phys * 0.75), 100 * 1024 * 1024)   # ~96M / ~48M
    bn = _pick_batch_block(N, H, W, C, hidden,
                           budget_bytes=int(vmem_limit * 0.8),
                           want_multi_step=is_v7)
    grid = (N // bn,)

    out_blob = pl.pallas_call(
        _lmm_fused_kernel,
        out_shape=jax.ShapeDtypeStruct((N, H, WC), jnp.float32),
        grid=grid,
        in_specs=[
            pl.BlockSpec((bn, H, WC), lambda n: (n, 0, 0)),       # x
            pl.BlockSpec((21, 1, WC), lambda n: (0, 0, 0)),       # fc_h taps
            pl.BlockSpec((21, 1, WC), lambda n: (0, 0, 0)),       # fc_w taps
            pl.BlockSpec((WC, C), lambda n: (0, 0)),              # g (fold W)
            pl.BlockSpec((C, WC), lambda n: (0, 0)),              # g^T (unfold)
            pl.BlockSpec((C, hidden), lambda n: (0, 0)),          # w1^T
            pl.BlockSpec((1, hidden), lambda n: (0, 0)),          # b1
            pl.BlockSpec((3, hidden, C), lambda n: (0, 0, 0)),    # w2 per branch
            pl.BlockSpec((3, 1, C), lambda n: (0, 0, 0)),         # b2 per branch
        ],
        out_specs=pl.BlockSpec((bn, H, WC), lambda n: (n, 0, 0)),
        scratch_shapes=[pltpu.VMEM((bn, H + 6, (W + 6) * C), jnp.float32)],
        compiler_params=pltpu.CompilerParams(
            dimension_semantics=("parallel",),
            vmem_limit_bytes=vmem_limit,
        ),
        interpret=interpret,
    )(x_blob, wh_t, ww_t, g, gt, w1t, b1, w2t, b2)

    return jnp.transpose(out_blob.reshape(N, H, W, C), (0, 3, 1, 2))


# ---------------------------------------------------------------------------
# Pure-JAX reference (for correctness checking only)
# ---------------------------------------------------------------------------
def lmm_reference(x_nchw, params):
    N, C, H, W = x_nchw.shape
    dn = jax.lax.conv_dimension_numbers(
        x_nchw.shape, (C, 1, 3, 7), ("NCHW", "OIHW", "NCHW"))
    x_w = jax.lax.conv_general_dilated(
        x_nchw, params["fc_h_w"][:, None], (1, 1), ((1, 1), (3, 3)),
        dimension_numbers=dn, feature_group_count=C,
        precision=jax.lax.Precision.HIGHEST)
    x_h = jax.lax.conv_general_dilated(
        x_nchw, params["fc_w_w"][:, None], (1, 1), ((3, 3), (1, 1)),
        dimension_numbers=dn, feature_group_count=C,
        precision=jax.lax.Precision.HIGHEST)
    x_add = x_h + x_w + x_nchw
    att = jnp.mean(x_add, axis=(2, 3))                                # (N, C)
    h = jax.nn.gelu(att @ params["w1"].T + params["b1"], approximate=False)
    att = h @ params["w2"].T + params["b2"]                           # (N, 3C)
    att = att.reshape(N, C, 3).transpose(2, 0, 1)                     # (3, N, C)
    att = att * jax.nn.sigmoid(att)
    att = att[:, :, :, None, None]
    return x_h * att[0] + x_w * att[1] + x_nchw * att[2]


if __name__ == "__main__":
    N, C, H, W = 2, 4, 16, 16
    key = jax.random.PRNGKey(0)
    kx, k1, k2, k3, k4, k5, k6 = jax.random.split(key, 7)
    hidden = C // 2

    x = jax.random.normal(kx, (N, C, H, W), jnp.float32)
    params = {
        "fc_h_w": 0.2 * jax.random.normal(k1, (C, 3, 7), jnp.float32),   # Conv2d(C,C,(3,7),groups=C)
        "fc_w_w": 0.2 * jax.random.normal(k2, (C, 7, 3), jnp.float32),   # Conv2d(C,C,(7,3),groups=C)
        "w1": 0.3 * jax.random.normal(k3, (hidden, C), jnp.float32),     # Mlp.fc1 (1x1 conv)
        "b1": 0.1 * jax.random.normal(k4, (hidden,), jnp.float32),
        "w2": 0.3 * jax.random.normal(k5, (3 * C, hidden), jnp.float32), # Mlp.fc2 (1x1 conv)
        "b2": 0.1 * jax.random.normal(k6, (3 * C,), jnp.float32),
    }

    out = jax.block_until_ready(lmm_forward(x, params))
    ref = jax.block_until_ready(lmm_reference(x, params))

    assert out.shape == (N, C, H, W), out.shape
    assert jnp.allclose(out, ref, rtol=1e-3, atol=1e-3), \
        f"max abs diff {jnp.max(jnp.abs(out - ref))}"
    print("KERNEL_OK")
</pallas_src>

<mosaic_0001>
module attributes {stable_mosaic.version = 11 : i64} {
  func.func @_lmm_fused_kernel(%arg0: i32, %arg1: memref<2x16x64xf32, #tpu.memory_space<vmem>>, %arg2: memref<21x1x64xf32, #tpu.memory_space<vmem>>, %arg3: memref<21x1x64xf32, #tpu.memory_space<vmem>>, %arg4: memref<64x4xf32, #tpu.memory_space<vmem>>, %arg5: memref<4x64xf32, #tpu.memory_space<vmem>>, %arg6: memref<4x2xf32, #tpu.memory_space<vmem>>, %arg7: memref<1x2xf32, #tpu.memory_space<vmem>>, %arg8: memref<3x2x4xf32, #tpu.memory_space<vmem>>, %arg9: memref<3x1x4xf32, #tpu.memory_space<vmem>>, %arg10: memref<2x16x64xf32, #tpu.memory_space<vmem>>, %arg11: memref<2x22x88xf32, #tpu.memory_space<vmem>>) attributes {dimension_semantics = [#tpu.dimension_semantics<parallel>], iteration_bounds = array<i64: 1>, scalar_prefetch = 0 : i64, scratch_operands = 1 : i64, tpu.core_type = #tpu.core_type<tc>, window_params = [{transform_indices = @transform_0, window_bounds = array<i64: 2, 16, 64>}, {pipeline_mode = #tpu.pipeline_mode<synchronous>, transform_indices = @transform_1, window_bounds = array<i64: 21, 1, 64>}, {pipeline_mode = #tpu.pipeline_mode<synchronous>, transform_indices = @transform_2, window_bounds = array<i64: 21, 1, 64>}, {pipeline_mode = #tpu.pipeline_mode<synchronous>, transform_indices = @transform_3, window_bounds = array<i64: 64, 4>}, {pipeline_mode = #tpu.pipeline_mode<synchronous>, transform_indices = @transform_4, window_bounds = array<i64: 4, 64>}, {pipeline_mode = #tpu.pipeline_mode<synchronous>, transform_indices = @transform_5, window_bounds = array<i64: 4, 2>}, {pipeline_mode = #tpu.pipeline_mode<synchronous>, transform_indices = @transform_6, window_bounds = array<i64: 1, 2>}, {pipeline_mode = #tpu.pipeline_mode<synchronous>, transform_indices = @transform_7, window_bounds = array<i64: 3, 2, 4>}, {pipeline_mode = #tpu.pipeline_mode<synchronous>, transform_indices = @transform_8, window_bounds = array<i64: 3, 1, 4>}, {transform_indices = @transform_9, window_bounds = array<i64: 2, 16, 64>}]} {
    %cst = arith.constant 0.000000e+00 : f32
    %0 = vector.broadcast %cst : f32 to vector<2x3x88xf32>
    %c0 = arith.constant 0 : index
    %c0_0 = arith.constant 0 : index
    %c0_1 = arith.constant 0 : index
    %1 = vector.load %arg11[%c0, %c0_0, %c0_1] : memref<2x22x88xf32, #tpu.memory_space<vmem>>, vector<2x3x88xf32>
    tpu.vector_store %arg11[%c0, %c0_0, %c0_1], %0 {strides = array<i32>} : memref<2x22x88xf32, #tpu.memory_space<vmem>>, vector<2x3x88xf32>,
    %cst_2 = arith.constant 0.000000e+00 : f32
    %2 = vector.broadcast %cst_2 : f32 to vector<2x3x88xf32>
    %c0_3 = arith.constant 0 : index
    %c19 = arith.constant 19 : index
    %c0_4 = arith.constant 0 : index
    %3 = vector.load %arg11[%c0_3, %c19, %c0_4] : memref<2x22x88xf32, #tpu.memory_space<vmem>>, vector<2x3x88xf32>
    tpu.vector_store %arg11[%c0_3, %c19, %c0_4], %2 {strides = array<i32>} : memref<2x22x88xf32, #tpu.memory_space<vmem>>, vector<2x3x88xf32>,
    %cst_5 = arith.constant 0.000000e+00 : f32
    %4 = vector.broadcast %cst_5 : f32 to vector<2x22x12xf32>
    %c0_6 = arith.constant 0 : index
    %c0_7 = arith.constant 0 : index
    %c0_8 = arith.constant 0 : index
    %5 = vector.load %arg11[%c0_6, %c0_7, %c0_8] : memref<2x22x88xf32, #tpu.memory_space<vmem>>, vector<2x22x12xf32>
    tpu.vector_store %arg11[%c0_6, %c0_7, %c0_8], %4 {strides = array<i32>} : memref<2x22x88xf32, #tpu.memory_space<vmem>>, vector<2x22x12xf32>,
    %cst_9 = arith.constant 0.000000e+00 : f32
    %6 = vector.broadcast %cst_9 : f32 to vector<2x22x12xf32>
    %c0_10 = arith.constant 0 : index
    %c0_11 = arith.constant 0 : index
    %c76 = arith.constant 76 : index
    %7 = vector.load %arg11[%c0_10, %c0_11, %c76] : memref<2x22x88xf32, #tpu.memory_space<vmem>>, vector<2x22x12xf32>
    tpu.vector_store %arg11[%c0_10, %c0_11, %c76], %6 {strides = array<i32>} : memref<2x22x88xf32, #tpu.memory_space<vmem>>, vector<2x22x12xf32>,
    %c0_12 = arith.constant 0 : index
    %c0_13 = arith.constant 0 : index
    %c0_14 = arith.constant 0 : index
    %8 = vector.load %arg1[%c0_12, %c0_13, %c0_14] : memref<2x16x64xf32, #tpu.memory_space<vmem>>, vector<2x16x64xf32>
    %c0_15 = arith.constant 0 : index
    %c3 = arith.constant 3 : index
    %c12 = arith.constant 12 : index
    %9 = vector.load %arg11[%c0_15, %c3, %c12] : memref<2x22x88xf32, #tpu.memory_space<vmem>>, vector<2x16x64xf32>
    tpu.vector_store %arg11[%c0_15, %c3, %c12], %8 {strides = array<i32>} : memref<2x22x88xf32, #tpu.memory_space<vmem>>, vector<2x16x64xf32>,
    %cst_16 = arith.constant 0.000000e+00 : f32
    %10 = vector.broadcast %cst_16 : f32 to vector<2x16x64xf32>
    %cst_17 = arith.constant 0.000000e+00 : f32
    %11 = vector.broadcast %cst_17 : f32 to vector<2x16x64xf32>
    %c0_18 = arith.constant 0 : index
    %c0_19 = arith.constant 0 : index
    %c0_20 = arith.constant 0 : index
    %12 = vector.load %arg11[%c0_18, %c0_19, %c0_20] : memref<2x22x88xf32, #tpu.memory_space<vmem>>, vector<2x22x64xf32>
    %13 = vector.extract_strided_slice %12 {offsets = [0, 2, 0], sizes = [2, 16, 64], strides = [1, 1, 1]} : vector<2x22x64xf32> to vector<2x16x64xf32>
    %c0_21 = arith.constant 0 : index
    %c0_22 = arith.constant 0 : index
    %c0_23 = arith.constant 0 : index
    %14 = vector.load %arg2[%c0_21, %c0_22, %c0_23] : memref<21x1x64xf32, #tpu.memory_space<vmem>>, vector<1x1x64xf32>
    %15 = vector.shape_cast %14 : vector<1x1x64xf32> to vector<1x64xf32>
    %16 = vector.shape_cast %15 : vector<1x64xf32> to vector<1x1x64xf32>
    %17 = vector.broadcast %16 : vector<1x1x64xf32> to vector<2x16x64xf32>
    %18 = arith.mulf %13, %17 : vector<2x16x64xf32>
    %19 = arith.addf %10, %18 : vector<2x16x64xf32>
    %20 = vector.extract_strided_slice %12 {offsets = [0, 3, 0], sizes = [2, 16, 64], strides = [1, 1, 1]} : vector<2x22x64xf32> to vector<2x16x64xf32>
    %c7 = arith.constant 7 : index
    %c0_24 = arith.constant 0 : index
    %c0_25 = arith.constant 0 : index
    %21 = vector.load %arg2[%c7, %c0_24, %c0_25] : memref<21x1x64xf32, #tpu.memory_space<vmem>>, vector<1x1x64xf32>
    %22 = vector.shape_cast %21 : vector<1x1x64xf32> to vector<1x64xf32>
    %23 = vector.shape_cast %22 : vector<1x64xf32> to vector<1x1x64xf32>
    %24 = vector.broadcast %23 : vector<1x1x64xf32> to vector<2x16x64xf32>
    %25 = arith.mulf %20, %24 : vector<2x16x64xf32>
    %26 = arith.addf %19, %25 : vector<2x16x64xf32>
    %27 = vector.extract_strided_slice %12 {offsets = [0, 4, 0], sizes = [2, 16, 64], strides = [1, 1, 1]} : vector<2x22x64xf32> to vector<2x16x64xf32>
    %c14 = arith.constant 14 : index
    %c0_26 = arith.constant 0 : index
    %c0_27 = arith.constant 0 : index
    %28 = vector.load %arg2[%c14, %c0_26, %c0_27] : memref<21x1x64xf32, #tpu.memory_space<vmem>>, vector<1x1x64xf32>
    %29 = vector.shape_cast %28 : vector<1x1x64xf32> to vector<1x64xf32>
    %30 = vector.shape_cast %29 : vector<1x64xf32> to vector<1x1x64xf32>
    %31 = vector.broadcast %30 : vector<1x1x64xf32> to vector<2x16x64xf32>
    %32 = arith.mulf %27, %31 : vector<2x16x64xf32>
    %33 = arith.addf %26, %32 : vector<2x16x64xf32>
    %c0_28 = arith.constant 0 : index
    %c0_29 = arith.constant 0 : index
    %c4 = arith.constant 4 : index
    %34 = vector.load %arg11[%c0_28, %c0_29, %c4] : memref<2x22x88xf32, #tpu.memory_space<vmem>>, vector<2x22x64xf32>
    %35 = vector.extract_strided_slice %34 {offsets = [0, 2, 0], sizes = [2, 16, 64], strides = [1, 1, 1]} : vector<2x22x64xf32> to vector<2x16x64xf32>
    %c1 = arith.constant 1 : index
    %c0_30 = arith.constant 0 : index
    %c0_31 = arith.constant 0 : index
    %36 = vector.load %arg2[%c1, %c0_30, %c0_31] : memref<21x1x64xf32, #tpu.memory_space<vmem>>, vector<1x1x64xf32>
    %37 = vector.shape_cast %36 : vector<1x1x64xf32> to vector<1x64xf32>
    %38 = vector.shape_cast %37 : vector<1x64xf32> to vector<1x1x64xf32>
    %39 = vector.broadcast %38 : vector<1x1x64xf32> to vector<2x16x64xf32>
    %40 = arith.mulf %35, %39 : vector<2x16x64xf32>
    %41 = arith.addf %33, %40 : vector<2x16x64xf32>
    %42 = vector.extract_strided_slice %34 {offsets = [0, 3, 0], sizes = [2, 16, 64], strides = [1, 1, 1]} : vector<2x22x64xf32> to vector<2x16x64xf32>
    %c8 = arith.constant 8 : index
    %c0_32 = arith.constant 0 : index
    %c0_33 = arith.constant 0 : index
    %43 = vector.load %arg2[%c8, %c0_32, %c0_33] : memref<21x1x64xf32, #tpu.memory_space<vmem>>, vector<1x1x64xf32>
    %44 = vector.shape_cast %43 : vector<1x1x64xf32> to vector<1x64xf32>
    %45 = vector.shape_cast %44 : vector<1x64xf32> to vector<1x1x64xf32>
    %46 = vector.broadcast %45 : vector<1x1x64xf32> to vector<2x16x64xf32>
    %47 = arith.mulf %42, %46 : vector<2x16x64xf32>
    %48 = arith.addf %41, %47 : vector<2x16x64xf32>
    %49 = vector.extract_strided_slice %34 {offsets = [0, 4, 0], sizes = [2, 16, 64], strides = [1, 1, 1]} : vector<2x22x64xf32> to vector<2x16x64xf32>
    %c15 = arith.constant 15 : index
    %c0_34 = arith.constant 0 : index
    %c0_35 = arith.constant 0 : index
    %50 = vector.load %arg2[%c15, %c0_34, %c0_35] : memref<21x1x64xf32, #tpu.memory_space<vmem>>, vector<1x1x64xf32>
    %51 = vector.shape_cast %50 : vector<1x1x64xf32> to vector<1x64xf32>
    %52 = vector.shape_cast %51 : vector<1x64xf32> to vector<1x1x64xf32>
    %53 = vector.broadcast %52 : vector<1x1x64xf32> to vector<2x16x64xf32>
    %54 = arith.mulf %49, %53 : vector<2x16x64xf32>
    %55 = arith.addf %48, %54 : vector<2x16x64xf32>
    %c0_36 = arith.constant 0 : index
    %c0_37 = arith.constant 0 : index
    %c8_38 = arith.constant 8 : index
    %56 = vector.load %arg11[%c0_36, %c0_37, %c8_38] : memref<2x22x88xf32, #tpu.memory_space<vmem>>, vector<2x22x64xf32>
    %57 = vector.extract_strided_slice %56 {offsets = [0, 2, 0], sizes = [2, 16, 64], strides = [1, 1, 1]} : vector<2x22x64xf32> to vector<2x16x64xf32>
    %c2 = arith.constant 2 : index
    %c0_39 = arith.constant 0 : index
    %c0_40 = arith.constant 0 : index
    %58 = vector.load %arg2[%c2, %c0_39, %c0_40] : memref<21x1x64xf32, #tpu.memory_space<vmem>>, vector<1x1x64xf32>
    %59 = vector.shape_cast %58 : vector<1x1x64xf32> to vector<1x64xf32>
    %60 = vector.shape_cast %59 : vector<1x64xf32> to vector<1x1x64xf32>
    %61 = vector.broadcast %60 : vector<1x1x64xf32> to vector<2x16x64xf32>
    %62 = arith.mulf %57, %61 : vector<2x16x64xf32>
    %63 = arith.addf %55, %62 : vector<2x16x64xf32>
    %64 = vector.extract_strided_slice %56 {offsets = [0, 3, 0], sizes = [2, 16, 64], strides = [1, 1, 1]} : vector<2x22x64xf32> to vector<2x16x64xf32>
    %c9 = arith.constant 9 : index
    %c0_41 = arith.constant 0 : index
    %c0_42 = arith.constant 0 : index
    %65 = vector.load %arg2[%c9, %c0_41, %c0_42] : memref<21x1x64xf32, #tpu.memory_space<vmem>>, vector<1x1x64xf32>
    %66 = vector.shape_cast %65 : vector<1x1x64xf32> to vector<1x64xf32>
    %67 = vector.shape_cast %66 : vector<1x64xf32> to vector<1x1x64xf32>
    %68 = vector.broadcast %67 : vector<1x1x64xf32> to vector<2x16x64xf32>
    %69 = arith.mulf %64, %68 : vector<2x16x64xf32>
    %70 = arith.addf %63, %69 : vector<2x16x64xf32>
    %71 = vector.extract_strided_slice %56 {offsets = [0, 4, 0], sizes = [2, 16, 64], strides = [1, 1, 1]} : vector<2x22x64xf32> to vector<2x16x64xf32>
    %c16 = arith.constant 16 : index
    %c0_43 = arith.constant 0 : index
    %c0_44 = arith.constant 0 : index
    %72 = vector.load %arg2[%c16, %c0_43, %c0_44] : memref<21x1x64xf32, #tpu.memory_space<vmem>>, vector<1x1x64xf32>
    %73 = vector.shape_cast %72 : vector<1x1x64xf32> to vector<1x64xf32>
    %74 = vector.shape_cast %73 : vector<1x64xf32> to vector<1x1x64xf32>
    %75 = vector.broadcast %74 : vector<1x1x64xf32> to vector<2x16x64xf32>
    %76 = arith.mulf %71, %75 : vector<2x16x64xf32>
    %77 = arith.addf %70, %76 : vector<2x16x64xf32>
    %78 = vector.extract_strided_slice %56 {offsets = [0, 0, 0], sizes = [2, 16, 64], strides = [1, 1, 1]} : vector<2x22x64xf32> to vector<2x16x64xf32>
    %c0_45 = arith.constant 0 : index
    %c0_46 = arith.constant 0 : index
    %c0_47 = arith.constant 0 : index
    %79 = vector.load %arg3[%c0_45, %c0_46, %c0_47] : memref<21x1x64xf32, #tpu.memory_space<vmem>>, vector<1x1x64xf32>
    %80 = vector.shape_cast %79 : vector<1x1x64xf32> to vector<1x64xf32>
    %81 = vector.shape_cast %80 : vector<1x64xf32> to vector<1x1x64xf32>
    %82 = vector.broadcast %81 : vector<1x1x64xf32> to vector<2x16x64xf32>
    %83 = arith.mulf %78, %82 : vector<2x16x64xf32>
    %84 = arith.addf %11, %83 : vector<2x16x64xf32>
    %85 = vector.extract_strided_slice %56 {offsets = [0, 1, 0], sizes = [2, 16, 64], strides = [1, 1, 1]} : vector<2x22x64xf32> to vector<2x16x64xf32>
    %c3_48 = arith.constant 3 : index
    %c0_49 = arith.constant 0 : index
    %c0_50 = arith.constant 0 : index
    %86 = vector.load %arg3[%c3_48, %c0_49, %c0_50] : memref<21x1x64xf32, #tpu.memory_space<vmem>>, vector<1x1x64xf32>
    %87 = vector.shape_cast %86 : vector<1x1x64xf32> to vector<1x64xf32>
    %88 = vector.shape_cast %87 : vector<1x64xf32> to vector<1x1x64xf32>
    %89 = vector.broadcast %88 : vector<1x1x64xf32> to vector<2x16x64xf32>
    %90 = arith.mulf %85, %89 : vector<2x16x64xf32>
    %91 = arith.addf %84, %90 : vector<2x16x64xf32>
    %92 = vector.extract_strided_slice %56 {offsets = [0, 2, 0], sizes = [2, 16, 64], strides = [1, 1, 1]} : vector<2x22x64xf32> to vector<2x16x64xf32>
    %c6 = arith.constant 6 : index
    %c0_51 = arith.constant 0 : index
    %c0_52 = arith.constant 0 : index
    %93 = vector.load %arg3[%c6, %c0_51, %c0_52] : memref<21x1x64xf32, #tpu.memory_space<vmem>>, vector<1x1x64xf32>
    %94 = vector.shape_cast %93 : vector<1x1x64xf32> to vector<1x64xf32>
    %95 = vector.shape_cast %94 : vector<1x64xf32> to vector<1x1x64xf32>
    %96 = vector.broadcast %95 : vector<1x1x64xf32> to vector<2x16x64xf32>
    %97 = arith.mulf %92, %96 : vector<2x16x64xf32>
    %98 = arith.addf %91, %97 : vector<2x16x64xf32>
    %99 = vector.extract_strided_slice %56 {offsets = [0, 3, 0], sizes = [2, 16, 64], strides = [1, 1, 1]} : vector<2x22x64xf32> to vector<2x16x64xf32>
    %c9_53 = arith.constant 9 : index
    %c0_54 = arith.constant 0 : index
    %c0_55 = arith.constant 0 : index
    %100 = vector.load %arg3[%c9_53, %c0_54, %c0_55] : memref<21x1x64xf32, #tpu.memory_space<vmem>>, vector<1x1x64xf32>
    %101 = vector.shape_cast %100 : vector<1x1x64xf32> to vector<1x64xf32>
    %102 = vector.shape_cast %101 : vector<1x64xf32> to vector<1x1x64xf32>
    %103 = vector.broadcast %102 : vector<1x1x64xf32> to vector<2x16x64xf32>
    %104 = arith.mulf %99, %103 : vector<2x16x64xf32>
    %105 = arith.addf %98, %104 : vector<2x16x64xf32>
    %106 = vector.extract_strided_slice %56 {offsets = [0, 4, 0], sizes = [2, 16, 64], strides = [1, 1, 1]} : vector<2x22x64xf32> to vector<2x16x64xf32>
    %c12_56 = arith.constant 12 : index
    %c0_57 = arith.constant 0 : index
    %c0_58 = arith.constant 0 : index
    %107 = vector.load %arg3[%c12_56, %c0_57, %c0_58] : memref<21x1x64xf32, #tpu.memory_space<vmem>>, vector<1x1x64xf32>
    %108 = vector.shape_cast %107 : vector<1x1x64xf32> to vector<1x64xf32>
    %109 = vector.shape_cast %108 : vector<1x64xf32> to vector<1x1x64xf32>
    %110 = vector.broadcast %109 : vector<1x1x64xf32> to vector<2x16x64xf32>
    %111 = arith.mulf %106, %110 : vector<2x16x64xf32>
    %112 = arith.addf %105, %111 : vector<2x16x64xf32>
    %113 = vector.extract_strided_slice %56 {offsets = [0, 5, 0], sizes = [2, 16, 64], strides = [1, 1, 1]} : vector<2x22x64xf32> to vector<2x16x64xf32>
    %c15_59 = arith.constant 15 : index
    %c0_60 = arith.constant 0 : index
    %c0_61 = arith.constant 0 : index
    %114 = vector.load %arg3[%c15_59, %c0_60, %c0_61] : memref<21x1x64xf32, #tpu.memory_space<vmem>>, vector<1x1x64xf32>
    %115 = vector.shape_cast %114 : vector<1x1x64xf32> to vector<1x64xf32>
    %116 = vector.shape_cast %115 : vector<1x64xf32> to vector<1x1x64xf32>
    %117 = vector.broadcast %116 : vector<1x1x64xf32> to vector<2x16x64xf32>
    %118 = arith.mulf %113, %117 : vector<2x16x64xf32>
    %119 = arith.addf %112, %118 : vector<2x16x64xf32>
    %120 = vector.extract_strided_slice %56 {offsets = [0, 6, 0], sizes = [2, 16, 64], strides = [1, 1, 1]} : vector<2x22x64xf32> to vector<2x16x64xf32>
    %c18 = arith.constant 18 : index
    %c0_62 = arith.constant 0 : index
    %c0_63 = arith.constant 0 : index
    %121 = vector.load %arg3[%c18, %c0_62, %c0_63] : memref<21x1x64xf32, #tpu.memory_space<vmem>>, vector<1x1x64xf32>
    %122 = vector.shape_cast %121 : vector<1x1x64xf32> to vector<1x64xf32>
    %123 = vector.shape_cast %122 : vector<1x64xf32> to vector<1x1x64xf32>
    %124 = vector.broadcast %123 : vector<1x1x64xf32> to vector<2x16x64xf32>
    %125 = arith.mulf %120, %124 : vector<2x16x64xf32>
    %126 = arith.addf %119, %125 : vector<2x16x64xf32>
    %c0_64 = arith.constant 0 : index
    %c0_65 = arith.constant 0 : index
    %c12_66 = arith.constant 12 : index
    %127 = vector.load %arg11[%c0_64, %c0_65, %c12_66] : memref<2x22x88xf32, #tpu.memory_space<vmem>>, vector<2x22x64xf32>
    %128 = vector.extract_strided_slice %127 {offsets = [0, 2, 0], sizes = [2, 16, 64], strides = [1, 1, 1]} : vector<2x22x64xf32> to vector<2x16x64xf32>
    %c3_67 = arith.constant 3 : index
    %c0_68 = arith.constant 0 : index
    %c0_69 = arith.constant 0 : index
    %129 = vector.load %arg2[%c3_67, %c0_68, %c0_69] : memref<21x1x64xf32, #tpu.memory_space<vmem>>, vector<1x1x64xf32>
    %130 = vector.shape_cast %129 : vector<1x1x64xf32> to vector<1x64xf32>
    %131 = vector.shape_cast %130 : vector<1x64xf32> to vector<1x1x64xf32>
    %132 = vector.broadcast %131 : vector<1x1x64xf32> to vector<2x16x64xf32>
    %133 = arith.mulf %128, %132 : vector<2x16x64xf32>
    %134 = arith.addf %77, %133 : vector<2x16x64xf32>
    %135 = vector.extract_strided_slice %127 {offsets = [0, 3, 0], sizes = [2, 16, 64], strides = [1, 1, 1]} : vector<2x22x64xf32> to vector<2x16x64xf32>
    %c10 = arith.constant 10 : index
    %c0_70 = arith.constant 0 : index
    %c0_71 = arith.constant 0 : index
    %136 = vector.load %arg2[%c10, %c0_70, %c0_71] : memref<21x1x64xf32, #tpu.memory_space<vmem>>, vector<1x1x64xf32>
    %137 = vector.shape_cast %136 : vector<1x1x64xf32> to vector<1x64xf32>
    %138 = vector.shape_cast %137 : vector<1x64xf32> to vector<1x1x64xf32>
    %139 = vector.broadcast %138 : vector<1x1x64xf32> to vector<2x16x64xf32>
    %140 = arith.mulf %135, %139 : vector<2x16x64xf32>
    %141 = arith.addf %134, %140 : vector<2x16x64xf32>
    %142 = vector.extract_strided_slice %127 {offsets = [0, 4, 0], sizes = [2, 16, 64], strides = [1, 1, 1]} : vector<2x22x64xf32> to vector<2x16x64xf32>
    %c17 = arith.constant 17 : index
    %c0_72 = arith.constant 0 : index
    %c0_73 = arith.constant 0 : index
    %143 = vector.load %arg2[%c17, %c0_72, %c0_73] : memref<21x1x64xf32, #tpu.memory_space<vmem>>, vector<1x1x64xf32>
    %144 = vector.shape_cast %143 : vector<1x1x64xf32> to vector<1x64xf32>
    %145 = vector.shape_cast %144 : vector<1x64xf32> to vector<1x1x64xf32>
    %146 = vector.broadcast %145 : vector<1x1x64xf32> to vector<2x16x64xf32>
    %147 = arith.mulf %142, %146 : vector<2x16x64xf32>
    %148 = arith.addf %141, %147 : vector<2x16x64xf32>
    %149 = vector.extract_strided_slice %127 {offsets = [0, 0, 0], sizes = [2, 16, 64], strides = [1, 1, 1]} : vector<2x22x64xf32> to vector<2x16x64xf32>
    %c1_74 = arith.constant 1 : index
    %c0_75 = arith.constant 0 : index
    %c0_76 = arith.constant 0 : index
    %150 = vector.load %arg3[%c1_74, %c0_75, %c0_76] : memref<21x1x64xf32, #tpu.memory_space<vmem>>, vector<1x1x64xf32>
    %151 = vector.shape_cast %150 : vector<1x1x64xf32> to vector<1x64xf32>
    %152 = vector.shape_cast %151 : vector<1x64xf32> to vector<1x1x64xf32>
    %153 = vector.broadcast %152 : vector<1x1x64xf32> to vector<2x16x64xf32>
    %154 = arith.mulf %149, %153 : vector<2x16x64xf32>
    %155 = arith.addf %126, %154 : vector<2x16x64xf32>
    %156 = vector.extract_strided_slice %127 {offsets = [0, 1, 0], sizes = [2, 16, 64], strides = [1, 1, 1]} : vector<2x22x64xf32> to vector<2x16x64xf32>
    %c4_77 = arith.constant 4 : index
    %c0_78 = arith.constant 0 : index
    %c0_79 = arith.constant 0 : index
    %157 = vector.load %arg3[%c4_77, %c0_78, %c0_79] : memref<21x1x64xf32, #tpu.memory_space<vmem>>, vector<1x1x64xf32>
    %158 = vector.shape_cast %157 : vector<1x1x64xf32> to vector<1x64xf32>
    %159 = vector.shape_cast %158 : vector<1x64xf32> to vector<1x1x64xf32>
    %160 = vector.broadcast %159 : vector<1x1x64xf32> to vector<2x16x64xf32>
    %161 = arith.mulf %156, %160 : vector<2x16x64xf32>
    %162 = arith.addf %155, %161 : vector<2x16x64xf32>
    %163 = vector.extract_strided_slice %127 {offsets = [0, 2, 0], sizes = [2, 16, 64], strides = [1, 1, 1]} : vector<2x22x64xf32> to vector<2x16x64xf32>
    %c7_80 = arith.constant 7 : index
    %c0_81 = arith.constant 0 : index
    %c0_82 = arith.constant 0 : index
    %164 = vector.load %arg3[%c7_80, %c0_81, %c0_82] : memref<21x1x64xf32, #tpu.memory_space<vmem>>, vector<1x1x64xf32>
    %165 = vector.shape_cast %164 : vector<1x1x64xf32> to vector<1x64xf32>
    %166 = vector.shape_cast %165 : vector<1x64xf32> to vector<1x1x64xf32>
    %167 = vector.broadcast %166 : vector<1x1x64xf32> to vector<2x16x64xf32>
    %168 = arith.mulf %163, %167 : vector<2x16x64xf32>
    %169 = arith.addf %162, %168 : vector<2x16x64xf32>
    %170 = vector.extract_strided_slice %127 {offsets = [0, 3, 0], sizes = [2, 16, 64], strides = [1, 1, 1]} : vector<2x22x64xf32> to vector<2x16x64xf32>
    %c10_83 = arith.constant 10 : index
    %c0_84 = arith.constant 0 : index
    %c0_85 = arith.constant 0 : index
    %171 = vector.load %arg3[%c10_83, %c0_84, %c0_85] : memref<21x1x64xf32, #tpu.memory_space<vmem>>, vector<1x1x64xf32>
    %172 = vector.shape_cast %171 : vector<1x1x64xf32> to vector<1x64xf32>
    %173 = vector.shape_cast %172 : vector<1x64xf32> to vector<1x1x64xf32>
    %174 = vector.broadcast %173 : vector<1x1x64xf32> to vector<2x16x64xf32>
    %175 = arith.mulf %170, %174 : vector<2x16x64xf32>
    %176 = arith.addf %169, %175 : vector<2x16x64xf32>
    %177 = vector.extract_strided_slice %127 {offsets = [0, 4, 0], sizes = [2, 16, 64], strides = [1, 1, 1]} : vector<2x22x64xf32> to vector<2x16x64xf32>
    %c13 = arith.constant 13 : index
    %c0_86 = arith.constant 0 : index
    %c0_87 = arith.constant 0 : index
    %178 = vector.load %arg3[%c13, %c0_86, %c0_87] : memref<21x1x64xf32, #tpu.memory_space<vmem>>, vector<1x1x64xf32>
    %179 = vector.shape_cast %178 : vector<1x1x64xf32> to vector<1x64xf32>
    %180 = vector.shape_cast %179 : vector<1x64xf32> to vector<1x1x64xf32>
    %181 = vector.broadcast %180 : vector<1x1x64xf32> to vector<2x16x64xf32>
    %182 = arith.mulf %177, %181 : vector<2x16x64xf32>
    %183 = arith.addf %176, %182 : vector<2x16x64xf32>
    %184 = vector.extract_strided_slice %127 {offsets = [0, 5, 0], sizes = [2, 16, 64], strides = [1, 1, 1]} : vector<2x22x64xf32> to vector<2x16x64xf32>
    %c16_88 = arith.constant 16 : index
    %c0_89 = arith.constant 0 : index
    %c0_90 = arith.constant 0 : index
    %185 = vector.load %arg3[%c16_88, %c0_89, %c0_90] : memref<21x1x64xf32, #tpu.memory_space<vmem>>, vector<1x1x64xf32>
    %186 = vector.shape_cast %185 : vector<1x1x64xf32> to vector<1x64xf32>
    %187 = vector.shape_cast %186 : vector<1x64xf32> to vector<1x1x64xf32>
    %188 = vector.broadcast %187 : vector<1x1x64xf32> to vector<2x16x64xf32>
    %189 = arith.mulf %184, %188 : vector<2x16x64xf32>
    %190 = arith.addf %183, %189 : vector<2x16x64xf32>
    %191 = vector.extract_strided_slice %127 {offsets = [0, 6, 0], sizes = [2, 16, 64], strides = [1, 1, 1]} : vector<2x22x64xf32> to vector<2x16x64xf32>
    %c19_91 = arith.constant 19 : index
    %c0_92 = arith.constant 0 : index
    %c0_93 = arith.constant 0 : index
    %192 = vector.load %arg3[%c19_91, %c0_92, %c0_93] : memref<21x1x64xf32, #tpu.memory_space<vmem>>, vector<1x1x64xf32>
    %193 = vector.shape_cast %192 : vector<1x1x64xf32> to vector<1x64xf32>
    %194 = vector.shape_cast %193 : vector<1x64xf32> to vector<1x1x64xf32>
    %195 = vector.broadcast %194 : vector<1x1x64xf32> to vector<2x16x64xf32>
    %196 = arith.mulf %191, %195 : vector<2x16x64xf32>
    %197 = arith.addf %190, %196 : vector<2x16x64xf32>
    %c0_94 = arith.constant 0 : index
    %c0_95 = arith.constant 0 : index
    %c16_96 = arith.constant 16 : index
    %198 = vector.load %arg11[%c0_94, %c0_95, %c16_96] : memref<2x22x88xf32, #tpu.memory_space<vmem>>, vector<2x22x64xf32>
    %199 = vector.extract_strided_slice %198 {offsets = [0, 2, 0], sizes = [2, 16, 64], strides = [1, 1, 1]} : vector<2x22x64xf32> to vector<2x16x64xf32>
    %c4_97 = arith.constant 4 : index
    %c0_98 = arith.constant 0 : index
    %c0_99 = arith.constant 0 : index
    %200 = vector.load %arg2[%c4_97, %c0_98, %c0_99] : memref<21x1x64xf32, #tpu.memory_space<vmem>>, vector<1x1x64xf32>
    %201 = vector.shape_cast %200 : vector<1x1x64xf32> to vector<1x64xf32>
    %202 = vector.shape_cast %201 : vector<1x64xf32> to vector<1x1x64xf32>
    %203 = vector.broadcast %202 : vector<1x1x64xf32> to vector<2x16x64xf32>
    %204 = arith.mulf %199, %203 : vector<2x16x64xf32>
    %205 = arith.addf %148, %204 : vector<2x16x64xf32>
    %206 = vector.extract_strided_slice %198 {offsets = [0, 3, 0], sizes = [2, 16, 64], strides = [1, 1, 1]} : vector<2x22x64xf32> to vector<2x16x64xf32>
    %c11 = arith.constant 11 : index
    %c0_100 = arith.constant 0 : index
    %c0_101 = arith.constant 0 : index
    %207 = vector.load %arg2[%c11, %c0_100, %c0_101] : memref<21x1x64xf32, #tpu.memory_space<vmem>>, vector<1x1x64xf32>
    %208 = vector.shape_cast %207 : vector<1x1x64xf32> to vector<1x64xf32>
    %209 = vector.shape_cast %208 : vector<1x64xf32> to vector<1x1x64xf32>
    %210 = vector.broadcast %209 : vector<1x1x64xf32> to vector<2x16x64xf32>
    %211 = arith.mulf %206, %210 : vector<2x16x64xf32>
    %212 = arith.addf %205, %211 : vector<2x16x64xf32>
    %213 = vector.extract_strided_slice %198 {offsets = [0, 4, 0], sizes = [2, 16, 64], strides = [1, 1, 1]} : vector<2x22x64xf32> to vector<2x16x64xf32>
    %c18_102 = arith.constant 18 : index
    %c0_103 = arith.constant 0 : index
    %c0_104 = arith.constant 0 : index
    %214 = vector.load %arg2[%c18_102, %c0_103, %c0_104] : memref<21x1x64xf32, #tpu.memory_space<vmem>>, vector<1x1x64xf32>
    %215 = vector.shape_cast %214 : vector<1x1x64xf32> to vector<1x64xf32>
    %216 = vector.shape_cast %215 : vector<1x64xf32> to vector<1x1x64xf32>
    %217 = vector.broadcast %216 : vector<1x1x64xf32> to vector<2x16x64xf32>
    %218 = arith.mulf %213, %217 : vector<2x16x64xf32>
    %219 = arith.addf %212, %218 : vector<2x16x64xf32>
    %220 = vector.extract_strided_slice %198 {offsets = [0, 0, 0], sizes = [2, 16, 64], strides = [1, 1, 1]} : vector<2x22x64xf32> to vector<2x16x64xf32>
    %c2_105 = arith.constant 2 : index
    %c0_106 = arith.constant 0 : index
    %c0_107 = arith.constant 0 : index
    %221 = vector.load %arg3[%c2_105, %c0_106, %c0_107] : memref<21x1x64xf32, #tpu.memory_space<vmem>>, vector<1x1x64xf32>
    %222 = vector.shape_cast %221 : vector<1x1x64xf32> to vector<1x64xf32>
    %223 = vector.shape_cast %222 : vector<1x64xf32> to vector<1x1x64xf32>
    %224 = vector.broadcast %223 : vector<1x1x64xf32> to vector<2x16x64xf32>
    %225 = arith.mulf %220, %224 : vector<2x16x64xf32>
    %226 = arith.addf %197, %225 : vector<2x16x64xf32>
    %227 = vector.extract_strided_slice %198 {offsets = [0, 1, 0], sizes = [2, 16, 64], strides = [1, 1, 1]} : vector<2x22x64xf32> to vector<2x16x64xf32>
    %c5 = arith.constant 5 : index
    %c0_108 = arith.constant 0 : index
    %c0_109 = arith.constant 0 : index
    %228 = vector.load %arg3[%c5, %c0_108, %c0_109] : memref<21x1x64xf32, #tpu.memory_space<vmem>>, vector<1x1x64xf32>
    %229 = vector.shape_cast %228 : vector<1x1x64xf32> to vector<1x64xf32>
    %230 = vector.shape_cast %229 : vector<1x64xf32> to vector<1x1x64xf32>
    %231 = vector.broadcast %230 : vector<1x1x64xf32> to vector<2x16x64xf32>
    %232 = arith.mulf %227, %231 : vector<2x16x64xf32>
    %233 = arith.addf %226, %232 : vector<2x16x64xf32>
    %234 = vector.extract_strided_slice %198 {offsets = [0, 2, 0], sizes = [2, 16, 64], strides = [1, 1, 1]} : vector<2x22x64xf32> to vector<2x16x64xf32>
    %c8_110 = arith.constant 8 : index
    %c0_111 = arith.constant 0 : index
    %c0_112 = arith.constant 0 : index
    %235 = vector.load %arg3[%c8_110, %c0_111, %c0_112] : memref<21x1x64xf32, #tpu.memory_space<vmem>>, vector<1x1x64xf32>
    %236 = vector.shape_cast %235 : vector<1x1x64xf32> to vector<1x64xf32>
    %237 = vector.shape_cast %236 : vector<1x64xf32> to vector<1x1x64xf32>
    %238 = vector.broadcast %237 : vector<1x1x64xf32> to vector<2x16x64xf32>
    %239 = arith.mulf %234, %238 : vector<2x16x64xf32>
    %240 = arith.addf %233, %239 : vector<2x16x64xf32>
    %241 = vector.extract_strided_slice %198 {offsets = [0, 3, 0], sizes = [2, 16, 64], strides = [1, 1, 1]} : vector<2x22x64xf32> to vector<2x16x64xf32>
    %c11_113 = arith.constant 11 : index
    %c0_114 = arith.constant 0 : index
    %c0_115 = arith.constant 0 : index
    %242 = vector.load %arg3[%c11_113, %c0_114, %c0_115] : memref<21x1x64xf32, #tpu.memory_space<vmem>>, vector<1x1x64xf32>
    %243 = vector.shape_cast %242 : vector<1x1x64xf32> to vector<1x64xf32>
    %244 = vector.shape_cast %243 : vector<1x64xf32> to vector<1x1x64xf32>
    %245 = vector.broadcast %244 : vector<1x1x64xf32> to vector<2x16x64xf32>
    %246 = arith.mulf %241, %245 : vector<2x16x64xf32>
    %247 = arith.addf %240, %246 : vector<2x16x64xf32>
    %248 = vector.extract_strided_slice %198 {offsets = [0, 4, 0], sizes = [2, 16, 64], strides = [1, 1, 1]} : vector<2x22x64xf32> to vector<2x16x64xf32>
    %c14_116 = arith.constant 14 : index
    %c0_117 = arith.constant 0 : index
    %c0_118 = arith.constant 0 : index
    %249 = vector.load %arg3[%c14_116, %c0_117, %c0_118] : memref<21x1x64xf32, #tpu.memory_space<vmem>>, vector<1x1x64xf32>
    %250 = vector.shape_cast %249 : vector<1x1x64xf32> to vector<1x64xf32>
    %251 = vector.shape_cast %250 : vector<1x64xf32> to vector<1x1x64xf32>
    %252 = vector.broadcast %251 : vector<1x1x64xf32> to vector<2x16x64xf32>
    %253 = arith.mulf %248, %252 : vector<2x16x64xf32>
    %254 = arith.addf %247, %253 : vector<2x16x64xf32>
    %255 = vector.extract_strided_slice %198 {offsets = [0, 5, 0], sizes = [2, 16, 64], strides = [1, 1, 1]} : vector<2x22x64xf32> to vector<2x16x64xf32>
    %c17_119 = arith.constant 17 : index
    %c0_120 = arith.constant 0 : index
    %c0_121 = arith.constant 0 : index
    %256 = vector.load %arg3[%c17_119, %c0_120, %c0_121] : memref<21x1x64xf32, #tpu.memory_space<vmem>>, vector<1x1x64xf32>
    %257 = vector.shape_cast %256 : vector<1x1x64xf32> to vector<1x64xf32>
    %258 = vector.shape_cast %257 : vector<1x64xf32> to vector<1x1x64xf32>
    %259 = vector.broadcast %258 : vector<1x1x64xf32> to vector<2x16x64xf32>
    %260 = arith.mulf %255, %259 : vector<2x16x64xf32>
    %261 = arith.addf %254, %260 : vector<2x16x64xf32>
    %262 = vector.extract_strided_slice %198 {offsets = [0, 6, 0], sizes = [2, 16, 64], strides = [1, 1, 1]} : vector<2x22x64xf32> to vector<2x16x64xf32>
    %c20 = arith.constant 20 : index
    %c0_122 = arith.constant 0 : index
    %c0_123 = arith.constant 0 : index
    %263 = vector.load %arg3[%c20, %c0_122, %c0_123] : memref<21x1x64xf32, #tpu.memory_space<vmem>>, vector<1x1x64xf32>
    %264 = vector.shape_cast %263 : vector<1x1x64xf32> to vector<1x64xf32>
    %265 = vector.shape_cast %264 : vector<1x64xf32> to vector<1x1x64xf32>
    %266 = vector.broadcast %265 : vector<1x1x64xf32> to vector<2x16x64xf32>
    %267 = arith.mulf %262, %266 : vector<2x16x64xf32>
    %268 = arith.addf %261, %267 : vector<2x16x64xf32>
    %c0_124 = arith.constant 0 : index
    %c0_125 = arith.constant 0 : index
    %c20_126 = arith.constant 20 : index
    %269 = vector.load %arg11[%c0_124, %c0_125, %c20_126] : memref<2x22x88xf32, #tpu.memory_space<vmem>>, vector<2x22x64xf32>
    %270 = vector.extract_strided_slice %269 {offsets = [0, 2, 0], sizes = [2, 16, 64], strides = [1, 1, 1]} : vector<2x22x64xf32> to vector<2x16x64xf32>
    %c5_127 = arith.constant 5 : index
    %c0_128 = arith.constant 0 : index
    %c0_129 = arith.constant 0 : index
    %271 = vector.load %arg2[%c5_127, %c0_128, %c0_129] : memref<21x1x64xf32, #tpu.memory_space<vmem>>, vector<1x1x64xf32>
    %272 = vector.shape_cast %271 : vector<1x1x64xf32> to vector<1x64xf32>
    %273 = vector.shape_cast %272 : vector<1x64xf32> to vector<1x1x64xf32>
    %274 = vector.broadcast %273 : vector<1x1x64xf32> to vector<2x16x64xf32>
    %275 = arith.mulf %270, %274 : vector<2x16x64xf32>
    %276 = arith.addf %219, %275 : vector<2x16x64xf32>
    %277 = vector.extract_strided_slice %269 {offsets = [0, 3, 0], sizes = [2, 16, 64], strides = [1, 1, 1]} : vector<2x22x64xf32> to vector<2x16x64xf32>
    %c12_130 = arith.constant 12 : index
    %c0_131 = arith.constant 0 : index
    %c0_132 = arith.constant 0 : index
    %278 = vector.load %arg2[%c12_130, %c0_131, %c0_132] : memref<21x1x64xf32, #tpu.memory_space<vmem>>, vector<1x1x64xf32>
    %279 = vector.shape_cast %278 : vector<1x1x64xf32> to vector<1x64xf32>
    %280 = vector.shape_cast %279 : vector<1x64xf32> to vector<1x1x64xf32>
    %281 = vector.broadcast %280 : vector<1x1x64xf32> to vector<2x16x64xf32>
    %282 = arith.mulf %277, %281 : vector<2x16x64xf32>
    %283 = arith.addf %276, %282 : vector<2x16x64xf32>
    %284 = vector.extract_strided_slice %269 {offsets = [0, 4, 0], sizes = [2, 16, 64], strides = [1, 1, 1]} : vector<2x22x64xf32> to vector<2x16x64xf32>
    %c19_133 = arith.constant 19 : index
    %c0_134 = arith.constant 0 : index
    %c0_135 = arith.constant 0 : index
    %285 = vector.load %arg2[%c19_133, %c0_134, %c0_135] : memref<21x1x64xf32, #tpu.memory_space<vmem>>, vector<1x1x64xf32>
    %286 = vector.shape_cast %285 : vector<1x1x64xf32> to vector<1x64xf32>
    %287 = vector.shape_cast %286 : vector<1x64xf32> to vector<1x1x64xf32>
    %288 = vector.broadcast %287 : vector<1x1x64xf32> to vector<2x16x64xf32>
    %289 = arith.mulf %284, %288 : vector<2x16x64xf32>
    %290 = arith.addf %283, %289 : vector<2x16x64xf32>
    %c0_136 = arith.constant 0 : index
    %c0_137 = arith.constant 0 : index
    %c24 = arith.constant 24 : index
    %291 = vector.load %arg11[%c0_136, %c0_137, %c24] : memref<2x22x88xf32, #tpu.memory_space<vmem>>, vector<2x22x64xf32>
    %292 = vector.extract_strided_slice %291 {offsets = [0, 2, 0], sizes = [2, 16, 64], strides = [1, 1, 1]} : vector<2x22x64xf32> to vector<2x16x64xf32>
    %c6_138 = arith.constant 6 : index
    %c0_139 = arith.constant 0 : index
    %c0_140 = arith.constant 0 : index
    %293 = vector.load %arg2[%c6_138, %c0_139, %c0_140] : memref<21x1x64xf32, #tpu.memory_space<vmem>>, vector<1x1x64xf32>
    %294 = vector.shape_cast %293 : vector<1x1x64xf32> to vector<1x64xf32>
    %295 = vector.shape_cast %294 : vector<1x64xf32> to vector<1x1x64xf32>
    %296 = vector.broadcast %295 : vector<1x1x64xf32> to vector<2x16x64xf32>
    %297 = arith.mulf %292, %296 : vector<2x16x64xf32>
    %298 = arith.addf %290, %297 : vector<2x16x64xf32>
    %299 = vector.extract_strided_slice %291 {offsets = [0, 3, 0], sizes = [2, 16, 64], strides = [1, 1, 1]} : vector<2x22x64xf32> to vector<2x16x64xf32>
    %c13_141 = arith.constant 13 : index
    %c0_142 = arith.constant 0 : index
    %c0_143 = arith.constant 0 : index
    %300 = vector.load %arg2[%c13_141, %c0_142, %c0_143] : memref<21x1x64xf32, #tpu.memory_space<vmem>>, vector<1x1x64xf32>
    %301 = vector.shape_cast %300 : vector<1x1x64xf32> to vector<1x64xf32>
    %302 = vector.shape_cast %301 : vector<1x64xf32> to vector<1x1x64xf32>
    %303 = vector.broadcast %302 : vector<1x1x64xf32> to vector<2x16x64xf32>
    %304 = arith.mulf %299, %303 : vector<2x16x64xf32>
    %305 = arith.addf %298, %304 : vector<2x16x64xf32>
    %306 = vector.extract_strided_slice %291 {offsets = [0, 4, 0], sizes = [2, 16, 64], strides = [1, 1, 1]} : vector<2x22x64xf32> to vector<2x16x64xf32>
    %c20_144 = arith.constant 20 : index
    %c0_145 = arith.constant 0 : index
    %c0_146 = arith.constant 0 : index
    %307 = vector.load %arg2[%c20_144, %c0_145, %c0_146] : memref<21x1x64xf32, #tpu.memory_space<vmem>>, vector<1x1x64xf32>
    %308 = vector.shape_cast %307 : vector<1x1x64xf32> to vector<1x64xf32>
    %309 = vector.shape_cast %308 : vector<1x64xf32> to vector<1x1x64xf32>
    %310 = vector.broadcast %309 : vector<1x1x64xf32> to vector<2x16x64xf32>
    %311 = arith.mulf %306, %310 : vector<2x16x64xf32>
    %312 = arith.addf %305, %311 : vector<2x16x64xf32>
    %c0_147 = arith.constant 0 : index
    %c0_148 = arith.constant 0 : index
    %c0_149 = arith.constant 0 : index
    %313 = vector.load %arg1[%c0_147, %c0_148, %c0_149] : memref<2x16x64xf32, #tpu.memory_space<vmem>>, vector<2x16x64xf32>
    %314 = vector.extract_strided_slice %268 {offsets = [0, 0, 0], sizes = [1, 16, 64], strides = [1, 1, 1]} : vector<2x16x64xf32> to vector<1x16x64xf32>
    %315 = vector.shape_cast %314 : vector<1x16x64xf32> to vector<16x64xf32>
    %316 = vector.extract_strided_slice %312 {offsets = [0, 0, 0], sizes = [1, 16, 64], strides = [1, 1, 1]} : vector<2x16x64xf32> to vector<1x16x64xf32>
    %317 = vector.shape_cast %316 : vector<1x16x64xf32> to vector<16x64xf32>
    %318 = vector.extract_strided_slice %313 {offsets = [0, 0, 0], sizes = [1, 16, 64], strides = [1, 1, 1]} : vector<2x16x64xf32> to vector<1x16x64xf32>
    %319 = vector.shape_cast %318 : vector<1x16x64xf32> to vector<16x64xf32>
    %cst_150 = arith.constant dense<0.000000e+00> : vector<64xf32>
    %320 = vector.multi_reduction <add>, %315, %cst_150 [0] : vector<16x64xf32> to vector<64xf32>
    %321 = vector.shape_cast %320 : vector<64xf32> to vector<1x64xf32>
    %cst_151 = arith.constant dense<0.000000e+00> : vector<64xf32>
    %322 = vector.multi_reduction <add>, %317, %cst_151 [0] : vector<16x64xf32> to vector<64xf32>
    %323 = vector.shape_cast %322 : vector<64xf32> to vector<1x64xf32>
    %324 = arith.addf %321, %323 : vector<1x64xf32>
    %cst_152 = arith.constant dense<0.000000e+00> : vector<64xf32>
    %325 = vector.multi_reduction <add>, %319, %cst_152 [0] : vector<16x64xf32> to vector<64xf32>
    %326 = vector.shape_cast %325 : vector<64xf32> to vector<1x64xf32>
    %327 = arith.addf %324, %326 : vector<1x64xf32>
    %c0_153 = arith.constant 0 : index
    %c0_154 = arith.constant 0 : index
    %328 = vector.load %arg4[%c0_153, %c0_154] : memref<64x4xf32, #tpu.memory_space<vmem>>, vector<64x4xf32>
    %cst_155 = arith.constant dense<0.000000e+00> : vector<1x4xf32>
    %329 = tpu.matmul %327, %328, %cst_155 {dimension_numbers = #tpu.dot_dimension_numbers<[1], [0], [0], [1], [0, 0, 1, 1], [], []>} : vector<1x64xf32>, vector<64x4xf32>, vector<1x4xf32> -> vector<1x4xf32>
    %cst_156 = arith.constant 3.906250e-03 : f32
    %330 = vector.broadcast %cst_156 : f32 to vector<1x4xf32>
    %331 = arith.mulf %329, %330 : vector<1x4xf32>
    %c0_157 = arith.constant 0 : index
    %c0_158 = arith.constant 0 : index
    %332 = vector.load %arg6[%c0_157, %c0_158] : memref<4x2xf32, #tpu.memory_space<vmem>>, vector<4x2xf32>
    %cst_159 = arith.constant dense<0.000000e+00> : vector<1x2xf32>
    %333 = tpu.matmul %331, %332, %cst_159 {dimension_numbers = #tpu.dot_dimension_numbers<[1], [0], [0], [1], [0, 0, 1, 1], [], []>} : vector<1x4xf32>, vector<4x2xf32>, vector<1x2xf32> -> vector<1x2xf32>
    %c0_160 = arith.constant 0 : index
    %c0_161 = arith.constant 0 : index
    %334 = vector.load %arg7[%c0_160, %c0_161] : memref<1x2xf32, #tpu.memory_space<vmem>>, vector<1x2xf32>
    %335 = arith.addf %333, %334 : vector<1x2xf32>
    %cst_162 = arith.constant 5.000000e-01 : f32
    %336 = vector.broadcast %cst_162 : f32 to vector<1x2xf32>
    %337 = arith.mulf %336, %335 : vector<1x2xf32>
    %cst_163 = arith.constant 0.707106769 : f32
    %338 = vector.broadcast %cst_163 : f32 to vector<1x2xf32>
    %339 = arith.mulf %335, %338 : vector<1x2xf32>
    %340 = math.absf %339 : vector<1x2xf32>
    %cst_164 = arith.constant 0.327591091 : f32
    %341 = vector.broadcast %cst_164 : f32 to vector<1x2xf32>
    %342 = arith.mulf %341, %340 : vector<1x2xf32>
    %cst_165 = arith.constant 1.000000e+00 : f32
    %343 = vector.broadcast %cst_165 : f32 to vector<1x2xf32>
    %344 = arith.addf %343, %342 : vector<1x2xf32>
    %cst_166 = arith.constant 1.000000e+00 : f32
    %345 = vector.broadcast %cst_166 : f32 to vector<1x2xf32>
    %346 = arith.divf %345, %344 : vector<1x2xf32>
    %cst_167 = arith.constant 1.06140542 : f32
    %347 = vector.broadcast %cst_167 : f32 to vector<1x2xf32>
    %348 = arith.mulf %347, %346 : vector<1x2xf32>
    %cst_168 = arith.constant -1.45315206 : f32
    %349 = vector.broadcast %cst_168 : f32 to vector<1x2xf32>
    %350 = arith.addf %348, %349 : vector<1x2xf32>
    %351 = arith.mulf %350, %346 : vector<1x2xf32>
    %cst_169 = arith.constant 1.42141378 : f32
    %352 = vector.broadcast %cst_169 : f32 to vector<1x2xf32>
    %353 = arith.addf %351, %352 : vector<1x2xf32>
    %354 = arith.mulf %353, %346 : vector<1x2xf32>
    %cst_170 = arith.constant -0.284496725 : f32
    %355 = vector.broadcast %cst_170 : f32 to vector<1x2xf32>
    %356 = arith.addf %354, %355 : vector<1x2xf32>
    %357 = arith.mulf %356, %346 : vector<1x2xf32>
    %cst_171 = arith.constant 0.254829586 : f32
    %358 = vector.broadcast %cst_171 : f32 to vector<1x2xf32>
    %359 = arith.addf %357, %358 : vector<1x2xf32>
    %360 = arith.mulf %359, %346 : vector<1x2xf32>
    %cst_172 = arith.constant 0.000000e+00 : f32
    %361 = vector.broadcast %cst_172 : f32 to vector<1x2xf32>
    %362 = arith.subf %361, %340 : vector<1x2xf32>
    %363 = arith.mulf %362, %340 : vector<1x2xf32>
    %364 = math.exp %363 : vector<1x2xf32>
    %365 = arith.mulf %360, %364 : vector<1x2xf32>
    %cst_173 = arith.constant 1.000000e+00 : f32
    %366 = vector.broadcast %cst_173 : f32 to vector<1x2xf32>
    %367 = arith.subf %366, %365 : vector<1x2xf32>
    %cst_174 = arith.constant 0.000000e+00 : f32
    %368 = vector.broadcast %cst_174 : f32 to vector<1x2xf32>
    %369 = arith.cmpf olt, %339, %368 : vector<1x2xf32>
    %cst_175 = arith.constant 0.000000e+00 : f32
    %370 = vector.broadcast %cst_175 : f32 to vector<1x2xf32>
    %371 = arith.subf %370, %367 : vector<1x2xf32>
    %372 = arith.select %369, %371, %367 : vector<1x2xi1>, vector<1x2xf32>
    %cst_176 = arith.constant 1.000000e+00 : f32
    %373 = vector.broadcast %cst_176 : f32 to vector<1x2xf32>
    %374 = arith.addf %373, %372 : vector<1x2xf32>
    %375 = arith.mulf %337, %374 : vector<1x2xf32>
    %c0_177 = arith.constant 0 : index
    %c0_178 = arith.constant 0 : index
    %c0_179 = arith.constant 0 : index
    %376 = vector.load %arg8[%c0_177, %c0_178, %c0_179] : memref<3x2x4xf32, #tpu.memory_space<vmem>>, vector<1x2x4xf32>
    %377 = vector.shape_cast %376 : vector<1x2x4xf32> to vector<2x4xf32>
    %cst_180 = arith.constant dense<0.000000e+00> : vector<1x4xf32>
    %378 = tpu.matmul %375, %377, %cst_180 {dimension_numbers = #tpu.dot_dimension_numbers<[1], [0], [0], [1], [0, 0, 1, 1], [], []>} : vector<1x2xf32>, vector<2x4xf32>, vector<1x4xf32> -> vector<1x4xf32>
    %c0_181 = arith.constant 0 : index
    %c0_182 = arith.constant 0 : index
    %c0_183 = arith.constant 0 : index
    %379 = vector.load %arg9[%c0_181, %c0_182, %c0_183] : memref<3x1x4xf32, #tpu.memory_space<vmem>>, vector<1x1x4xf32>
    %380 = vector.shape_cast %379 : vector<1x1x4xf32> to vector<1x4xf32>
    %381 = arith.addf %378, %380 : vector<1x4xf32>
    %382 = arith.negf %381 : vector<1x4xf32>
    %383 = math.exp %382 : vector<1x4xf32>
    %cst_184 = arith.constant 1.000000e+00 : f32
    %384 = vector.broadcast %cst_184 : f32 to vector<1x4xf32>
    %385 = arith.addf %384, %383 : vector<1x4xf32>
    %386 = arith.divf %384, %385 : vector<1x4xf32>
    %387 = arith.mulf %381, %386 : vector<1x4xf32>
    %c0_185 = arith.constant 0 : index
    %c0_186 = arith.constant 0 : index
    %388 = vector.load %arg5[%c0_185, %c0_186] : memref<4x64xf32, #tpu.memory_space<vmem>>, vector<4x64xf32>
    %cst_187 = arith.constant dense<0.000000e+00> : vector<1x64xf32>
    %389 = tpu.matmul %387, %388, %cst_187 {dimension_numbers = #tpu.dot_dimension_numbers<[1], [0], [0], [1], [0, 0, 1, 1], [], []>} : vector<1x4xf32>, vector<4x64xf32>, vector<1x64xf32> -> vector<1x64xf32>
    %c1_188 = arith.constant 1 : index
    %c0_189 = arith.constant 0 : index
    %c0_190 = arith.constant 0 : index
    %390 = vector.load %arg8[%c1_188, %c0_189, %c0_190] : memref<3x2x4xf32, #tpu.memory_space<vmem>>, vector<1x2x4xf32>
    %391 = vector.shape_cast %390 : vector<1x2x4xf32> to vector<2x4xf32>
    %cst_191 = arith.constant dense<0.000000e+00> : vector<1x4xf32>
    %392 = tpu.matmul %375, %391, %cst_191 {dimension_numbers = #tpu.dot_dimension_numbers<[1], [0], [0], [1], [0, 0, 1, 1], [], []>} : vector<1x2xf32>, vector<2x4xf32>, vector<1x4xf32> -> vector<1x4xf32>
    %c1_192 = arith.constant 1 : index
    %c0_193 = arith.constant 0 : index
    %c0_194 = arith.constant 0 : index
    %393 = vector.load %arg9[%c1_192, %c0_193, %c0_194] : memref<3x1x4xf32, #tpu.memory_space<vmem>>, vector<1x1x4xf32>
    %394 = vector.shape_cast %393 : vector<1x1x4xf32> to vector<1x4xf32>
    %395 = arith.addf %392, %394 : vector<1x4xf32>
    %396 = arith.negf %395 : vector<1x4xf32>
    %397 = math.exp %396 : vector<1x4xf32>
    %cst_195 = arith.constant 1.000000e+00 : f32
    %398 = vector.broadcast %cst_195 : f32 to vector<1x4xf32>
    %399 = arith.addf %398, %397 : vector<1x4xf32>
    %400 = arith.divf %398, %399 : vector<1x4xf32>
    %401 = arith.mulf %395, %400 : vector<1x4xf32>
    %c0_196 = arith.constant 0 : index
    %c0_197 = arith.constant 0 : index
    %402 = vector.load %arg5[%c0_196, %c0_197] : memref<4x64xf32, #tpu.memory_space<vmem>>, vector<4x64xf32>
    %cst_198 = arith.constant dense<0.000000e+00> : vector<1x64xf32>
    %403 = tpu.matmul %401, %402, %cst_198 {dimension_numbers = #tpu.dot_dimension_numbers<[1], [0], [0], [1], [0, 0, 1, 1], [], []>} : vector<1x4xf32>, vector<4x64xf32>, vector<1x64xf32> -> vector<1x64xf32>
    %c2_199 = arith.constant 2 : index
    %c0_200 = arith.constant 0 : index
    %c0_201 = arith.constant 0 : index
    %404 = vector.load %arg8[%c2_199, %c0_200, %c0_201] : memref<3x2x4xf32, #tpu.memory_space<vmem>>, vector<1x2x4xf32>
    %405 = vector.shape_cast %404 : vector<1x2x4xf32> to vector<2x4xf32>
    %cst_202 = arith.constant dense<0.000000e+00> : vector<1x4xf32>
    %406 = tpu.matmul %375, %405, %cst_202 {dimension_numbers = #tpu.dot_dimension_numbers<[1], [0], [0], [1], [0, 0, 1, 1], [], []>} : vector<1x2xf32>, vector<2x4xf32>, vector<1x4xf32> -> vector<1x4xf32>
    %c2_203 = arith.constant 2 : index
    %c0_204 = arith.constant 0 : index
    %c0_205 = arith.constant 0 : index
    %407 = vector.load %arg9[%c2_203, %c0_204, %c0_205] : memref<3x1x4xf32, #tpu.memory_space<vmem>>, vector<1x1x4xf32>
    %408 = vector.shape_cast %407 : vector<1x1x4xf32> to vector<1x4xf32>
    %409 = arith.addf %406, %408 : vector<1x4xf32>
    %410 = arith.negf %409 : vector<1x4xf32>
    %411 = math.exp %410 : vector<1x4xf32>
    %cst_206 = arith.constant 1.000000e+00 : f32
    %412 = vector.broadcast %cst_206 : f32 to vector<1x4xf32>
    %413 = arith.addf %412, %411 : vector<1x4xf32>
    %414 = arith.divf %412, %413 : vector<1x4xf32>
    %415 = arith.mulf %409, %414 : vector<1x4xf32>
    %c0_207 = arith.constant 0 : index
    %c0_208 = arith.constant 0 : index
    %416 = vector.load %arg5[%c0_207, %c0_208] : memref<4x64xf32, #tpu.memory_space<vmem>>, vector<4x64xf32>
    %cst_209 = arith.constant dense<0.000000e+00> : vector<1x64xf32>
    %417 = tpu.matmul %415, %416, %cst_209 {dimension_numbers = #tpu.dot_dimension_numbers<[1], [0], [0], [1], [0, 0, 1, 1], [], []>} : vector<1x4xf32>, vector<4x64xf32>, vector<1x64xf32> -> vector<1x64xf32>
    %418 = vector.broadcast %389 : vector<1x64xf32> to vector<16x64xf32>
    %419 = arith.mulf %315, %418 : vector<16x64xf32>
    %420 = vector.broadcast %403 : vector<1x64xf32> to vector<16x64xf32>
    %421 = arith.mulf %317, %420 : vector<16x64xf32>
    %422 = arith.addf %419, %421 : vector<16x64xf32>
    %423 = vector.broadcast %417 : vector<1x64xf32> to vector<16x64xf32>
    %424 = arith.mulf %319, %423 : vector<16x64xf32>
    %425 = arith.addf %422, %424 : vector<16x64xf32>
    %c0_210 = arith.constant 0 : index
    %c0_211 = arith.constant 0 : index
    %c0_212 = arith.constant 0 : index
    %426 = vector.load %arg10[%c0_210, %c0_211, %c0_212] : memref<2x16x64xf32, #tpu.memory_space<vmem>>, vector<1x16x64xf32>
    %427 = vector.shape_cast %426 : vector<1x16x64xf32> to vector<16x64xf32>
    %428 = vector.shape_cast %425 : vector<16x64xf32> to vector<1x16x64xf32>
    tpu.vector_store %arg10[%c0_210, %c0_211, %c0_212], %428 {strides = array<i32>} : memref<2x16x64xf32, #tpu.memory_space<vmem>>, vector<1x16x64xf32>,
    %429 = vector.extract_strided_slice %268 {offsets = [1, 0, 0], sizes = [1, 16, 64], strides = [1, 1, 1]} : vector<2x16x64xf32> to vector<1x16x64xf32>
    %430 = vector.shape_cast %429 : vector<1x16x64xf32> to vector<16x64xf32>
    %431 = vector.extract_strided_slice %312 {offsets = [1, 0, 0], sizes = [1, 16, 64], strides = [1, 1, 1]} : vector<2x16x64xf32> to vector<1x16x64xf32>
    %432 = vector.shape_cast %431 : vector<1x16x64xf32> to vector<16x64xf32>
    %433 = vector.extract_strided_slice %313 {offsets = [1, 0, 0], sizes = [1, 16, 64], strides = [1, 1, 1]} : vector<2x16x64xf32> to vector<1x16x64xf32>
    %434 = vector.shape_cast %433 : vector<1x16x64xf32> to vector<16x64xf32>
    %cst_213 = arith.constant dense<0.000000e+00> : vector<64xf32>
    %435 = vector.multi_reduction <add>, %430, %cst_213 [0] : vector<16x64xf32> to vector<64xf32>
    %436 = vector.shape_cast %435 : vector<64xf32> to vector<1x64xf32>
    %cst_214 = arith.constant dense<0.000000e+00> : vector<64xf32>
    %437 = vector.multi_reduction <add>, %432, %cst_214 [0] : vector<16x64xf32> to vector<64xf32>
    %438 = vector.shape_cast %437 : vector<64xf32> to vector<1x64xf32>
    %439 = arith.addf %436, %438 : vector<1x64xf32>
    %cst_215 = arith.constant dense<0.000000e+00> : vector<64xf32>
    %440 = vector.multi_reduction <add>, %434, %cst_215 [0] : vector<16x64xf32> to vector<64xf32>
    %441 = vector.shape_cast %440 : vector<64xf32> to vector<1x64xf32>
    %442 = arith.addf %439, %441 : vector<1x64xf32>
    %c0_216 = arith.constant 0 : index
    %c0_217 = arith.constant 0 : index
    %443 = vector.load %arg4[%c0_216, %c0_217] : memref<64x4xf32, #tpu.memory_space<vmem>>, vector<64x4xf32>
    %cst_218 = arith.constant dense<0.000000e+00> : vector<1x4xf32>
    %444 = tpu.matmul %442, %443, %cst_218 {dimension_numbers = #tpu.dot_dimension_numbers<[1], [0], [0], [1], [0, 0, 1, 1], [], []>} : vector<1x64xf32>, vector<64x4xf32>, vector<1x4xf32> -> vector<1x4xf32>
    %cst_219 = arith.constant 3.906250e-03 : f32
    %445 = vector.broadcast %cst_219 : f32 to vector<1x4xf32>
    %446 = arith.mulf %444, %445 : vector<1x4xf32>
    %c0_220 = arith.constant 0 : index
    %c0_221 = arith.constant 0 : index
    %447 = vector.load %arg6[%c0_220, %c0_221] : memref<4x2xf32, #tpu.memory_space<vmem>>, vector<4x2xf32>
    %cst_222 = arith.constant dense<0.000000e+00> : vector<1x2xf32>
    %448 = tpu.matmul %446, %447, %cst_222 {dimension_numbers = #tpu.dot_dimension_numbers<[1], [0], [0], [1], [0, 0, 1, 1], [], []>} : vector<1x4xf32>, vector<4x2xf32>, vector<1x2xf32> -> vector<1x2xf32>
    %c0_223 = arith.constant 0 : index
    %c0_224 = arith.constant 0 : index
    %449 = vector.load %arg7[%c0_223, %c0_224] : memref<1x2xf32, #tpu.memory_space<vmem>>, vector<1x2xf32>
    %450 = arith.addf %448, %449 : vector<1x2xf32>
    %cst_225 = arith.constant 5.000000e-01 : f32
    %451 = vector.broadcast %cst_225 : f32 to vector<1x2xf32>
    %452 = arith.mulf %451, %450 : vector<1x2xf32>
    %cst_226 = arith.constant 0.707106769 : f32
    %453 = vector.broadcast %cst_226 : f32 to vector<1x2xf32>
    %454 = arith.mulf %450, %453 : vector<1x2xf32>
    %455 = math.absf %454 : vector<1x2xf32>
    %cst_227 = arith.constant 0.327591091 : f32
    %456 = vector.broadcast %cst_227 : f32 to vector<1x2xf32>
    %457 = arith.mulf %456, %455 : vector<1x2xf32>
    %cst_228 = arith.constant 1.000000e+00 : f32
    %458 = vector.broadcast %cst_228 : f32 to vector<1x2xf32>
    %459 = arith.addf %458, %457 : vector<1x2xf32>
    %cst_229 = arith.constant 1.000000e+00 : f32
    %460 = vector.broadcast %cst_229 : f32 to vector<1x2xf32>
    %461 = arith.divf %460, %459 : vector<1x2xf32>
    %cst_230 = arith.constant 1.06140542 : f32
    %462 = vector.broadcast %cst_230 : f32 to vector<1x2xf32>
    %463 = arith.mulf %462, %461 : vector<1x2xf32>
    %cst_231 = arith.constant -1.45315206 : f32
    %464 = vector.broadcast %cst_231 : f32 to vector<1x2xf32>
    %465 = arith.addf %463, %464 : vector<1x2xf32>
    %466 = arith.mulf %465, %461 : vector<1x2xf32>
    %cst_232 = arith.constant 1.42141378 : f32
    %467 = vector.broadcast %cst_232 : f32 to vector<1x2xf32>
    %468 = arith.addf %466, %467 : vector<1x2xf32>
    %469 = arith.mulf %468, %461 : vector<1x2xf32>
    %cst_233 = arith.constant -0.284496725 : f32
    %470 = vector.broadcast %cst_233 : f32 to vector<1x2xf32>
    %471 = arith.addf %469, %470 : vector<1x2xf32>
    %472 = arith.mulf %471, %461 : vector<1x2xf32>
    %cst_234 = arith.constant 0.254829586 : f32
    %473 = vector.broadcast %cst_234 : f32 to vector<1x2xf32>
    %474 = arith.addf %472, %473 : vector<1x2xf32>
    %475 = arith.mulf %474, %461 : vector<1x2xf32>
    %cst_235 = arith.constant 0.000000e+00 : f32
    %476 = vector.broadcast %cst_235 : f32 to vector<1x2xf32>
    %477 = arith.subf %476, %455 : vector<1x2xf32>
    %478 = arith.mulf %477, %455 : vector<1x2xf32>
    %479 = math.exp %478 : vector<1x2xf32>
    %480 = arith.mulf %475, %479 : vector<1x2xf32>
    %cst_236 = arith.constant 1.000000e+00 : f32
    %481 = vector.broadcast %cst_236 : f32 to vector<1x2xf32>
    %482 = arith.subf %481, %480 : vector<1x2xf32>
    %cst_237 = arith.constant 0.000000e+00 : f32
    %483 = vector.broadcast %cst_237 : f32 to vector<1x2xf32>
    %484 = arith.cmpf olt, %454, %483 : vector<1x2xf32>
    %cst_238 = arith.constant 0.000000e+00 : f32
    %485 = vector.broadcast %cst_238 : f32 to vector<1x2xf32>
    %486 = arith.subf %485, %482 : vector<1x2xf32>
    %487 = arith.select %484, %486, %482 : vector<1x2xi1>, vector<1x2xf32>
    %cst_239 = arith.constant 1.000000e+00 : f32
    %488 = vector.broadcast %cst_239 : f32 to vector<1x2xf32>
    %489 = arith.addf %488, %487 : vector<1x2xf32>
    %490 = arith.mulf %452, %489 : vector<1x2xf32>
    %c0_240 = arith.constant 0 : index
    %c0_241 = arith.constant 0 : index
    %c0_242 = arith.constant 0 : index
    %491 = vector.load %arg8[%c0_240, %c0_241, %c0_242] : memref<3x2x4xf32, #tpu.memory_space<vmem>>, vector<1x2x4xf32>
    %492 = vector.shape_cast %491 : vector<1x2x4xf32> to vector<2x4xf32>
    %cst_243 = arith.constant dense<0.000000e+00> : vector<1x4xf32>
    %493 = tpu.matmul %490, %492, %cst_243 {dimension_numbers = #tpu.dot_dimension_numbers<[1], [0], [0], [1], [0, 0, 1, 1], [], []>} : vector<1x2xf32>, vector<2x4xf32>, vector<1x4xf32> -> vector<1x4xf32>
    %c0_244 = arith.constant 0 : index
    %c0_245 = arith.constant 0 : index
    %c0_246 = arith.constant 0 : index
    %494 = vector.load %arg9[%c0_244, %c0_245, %c0_246] : memref<3x1x4xf32, #tpu.memory_space<vmem>>, vector<1x1x4xf32>
    %495 = vector.shape_cast %494 : vector<1x1x4xf32> to vector<1x4xf32>
    %496 = arith.addf %493, %495 : vector<1x4xf32>
    %497 = arith.negf %496 : vector<1x4xf32>
    %498 = math.exp %497 : vector<1x4xf32>
    %cst_247 = arith.constant 1.000000e+00 : f32
    %499 = vector.broadcast %cst_247 : f32 to vector<1x4xf32>
    %500 = arith.addf %499, %498 : vector<1x4xf32>
    %501 = arith.divf %499, %500 : vector<1x4xf32>
    %502 = arith.mulf %496, %501 : vector<1x4xf32>
    %c0_248 = arith.constant 0 : index
    %c0_249 = arith.constant 0 : index
    %503 = vector.load %arg5[%c0_248, %c0_249] : memref<4x64xf32, #tpu.memory_space<vmem>>, vector<4x64xf32>
    %cst_250 = arith.constant dense<0.000000e+00> : vector<1x64xf32>
    %504 = tpu.matmul %502, %503, %cst_250 {dimension_numbers = #tpu.dot_dimension_numbers<[1], [0], [0], [1], [0, 0, 1, 1], [], []>} : vector<1x4xf32>, vector<4x64xf32>, vector<1x64xf32> -> vector<1x64xf32>
    %c1_251 = arith.constant 1 : index
    %c0_252 = arith.constant 0 : index
    %c0_253 = arith.constant 0 : index
    %505 = vector.load %arg8[%c1_251, %c0_252, %c0_253] : memref<3x2x4xf32, #tpu.memory_space<vmem>>, vector<1x2x4xf32>
    %506 = vector.shape_cast %505 : vector<1x2x4xf32> to vector<2x4xf32>
    %cst_254 = arith.constant dense<0.000000e+00> : vector<1x4xf32>
    %507 = tpu.matmul %490, %506, %cst_254 {dimension_numbers = #tpu.dot_dimension_numbers<[1], [0], [0], [1], [0, 0, 1, 1], [], []>} : vector<1x2xf32>, vector<2x4xf32>, vector<1x4xf32> -> vector<1x4xf32>
    %c1_255 = arith.constant 1 : index
    %c0_256 = arith.constant 0 : index
    %c0_257 = arith.constant 0 : index
    %508 = vector.load %arg9[%c1_255, %c0_256, %c0_257] : memref<3x1x4xf32, #tpu.memory_space<vmem>>, vector<1x1x4xf32>
    %509 = vector.shape_cast %508 : vector<1x1x4xf32> to vector<1x4xf32>
    %510 = arith.addf %507, %509 : vector<1x4xf32>
    %511 = arith.negf %510 : vector<1x4xf32>
    %512 = math.exp %511 : vector<1x4xf32>
    %cst_258 = arith.constant 1.000000e+00 : f32
    %513 = vector.broadcast %cst_258 : f32 to vector<1x4xf32>
    %514 = arith.addf %513, %512 : vector<1x4xf32>
    %515 = arith.divf %513, %514 : vector<1x4xf32>
    %516 = arith.mulf %510, %515 : vector<1x4xf32>
    %c0_259 = arith.constant 0 : index
    %c0_260 = arith.constant 0 : index
    %517 = vector.load %arg5[%c0_259, %c0_260] : memref<4x64xf32, #tpu.memory_space<vmem>>, vector<4x64xf32>
    %cst_261 = arith.constant dense<0.000000e+00> : vector<1x64xf32>
    %518 = tpu.matmul %516, %517, %cst_261 {dimension_numbers = #tpu.dot_dimension_numbers<[1], [0], [0], [1], [0, 0, 1, 1], [], []>} : vector<1x4xf32>, vector<4x64xf32>, vector<1x64xf32> -> vector<1x64xf32>
    %c2_262 = arith.constant 2 : index
    %c0_263 = arith.constant 0 : index
    %c0_264 = arith.constant 0 : index
    %519 = vector.load %arg8[%c2_262, %c0_263, %c0_264] : memref<3x2x4xf32, #tpu.memory_space<vmem>>, vector<1x2x4xf32>
    %520 = vector.shape_cast %519 : vector<1x2x4xf32> to vector<2x4xf32>
    %cst_265 = arith.constant dense<0.000000e+00> : vector<1x4xf32>
    %521 = tpu.matmul %490, %520, %cst_265 {dimension_numbers = #tpu.dot_dimension_numbers<[1], [0], [0], [1], [0, 0, 1, 1], [], []>} : vector<1x2xf32>, vector<2x4xf32>, vector<1x4xf32> -> vector<1x4xf32>
    %c2_266 = arith.constant 2 : index
    %c0_267 = arith.constant 0 : index
    %c0_268 = arith.constant 0 : index
    %522 = vector.load %arg9[%c2_266, %c0_267, %c0_268] : memref<3x1x4xf32, #tpu.memory_space<vmem>>, vector<1x1x4xf32>
    %523 = vector.shape_cast %522 : vector<1x1x4xf32> to vector<1x4xf32>
    %524 = arith.addf %521, %523 : vector<1x4xf32>
    %525 = arith.negf %524 : vector<1x4xf32>
    %526 = math.exp %525 : vector<1x4xf32>
    %cst_269 = arith.constant 1.000000e+00 : f32
    %527 = vector.broadcast %cst_269 : f32 to vector<1x4xf32>
    %528 = arith.addf %527, %526 : vector<1x4xf32>
    %529 = arith.divf %527, %528 : vector<1x4xf32>
    %530 = arith.mulf %524, %529 : vector<1x4xf32>
    %c0_270 = arith.constant 0 : index
    %c0_271 = arith.constant 0 : index
    %531 = vector.load %arg5[%c0_270, %c0_271] : memref<4x64xf32, #tpu.memory_space<vmem>>, vector<4x64xf32>
    %cst_272 = arith.constant dense<0.000000e+00> : vector<1x64xf32>
    %532 = tpu.matmul %530, %531, %cst_272 {dimension_numbers = #tpu.dot_dimension_numbers<[1], [0], [0], [1], [0, 0, 1, 1], [], []>} : vector<1x4xf32>, vector<4x64xf32>, vector<1x64xf32> -> vector<1x64xf32>
    %533 = vector.broadcast %504 : vector<1x64xf32> to vector<16x64xf32>
    %534 = arith.mulf %430, %533 : vector<16x64xf32>
    %535 = vector.broadcast %518 : vector<1x64xf32> to vector<16x64xf32>
    %536 = arith.mulf %432, %535 : vector<16x64xf32>
    %537 = arith.addf %534, %536 : vector<16x64xf32>
    %538 = vector.broadcast %532 : vector<1x64xf32> to vector<16x64xf32>
    %539 = arith.mulf %434, %538 : vector<16x64xf32>
    %540 = arith.addf %537, %539 : vector<16x64xf32>
    %c1_273 = arith.constant 1 : index
    %c0_274 = arith.constant 0 : index
    %c0_275 = arith.constant 0 : index
    %541 = vector.load %arg10[%c1_273, %c0_274, %c0_275] : memref<2x16x64xf32, #tpu.memory_space<vmem>>, vector<1x16x64xf32>
    %542 = vector.shape_cast %541 : vector<1x16x64xf32> to vector<16x64xf32>
    %543 = vector.shape_cast %540 : vector<16x64xf32> to vector<1x16x64xf32>
    tpu.vector_store %arg10[%c1_273, %c0_274, %c0_275], %543 {strides = array<i32>} : memref<2x16x64xf32, #tpu.memory_space<vmem>>, vector<1x16x64xf32>,
    return
  }
  func.func @transform_0(%arg0: i32) -> (i32, i32, i32) {
    %c0_i32 = arith.constant 0 : i32
    %c0_i32_0 = arith.constant 0 : i32
    %c0_i32_1 = arith.constant 0 : i32
    return %arg0, %c0_i32, %c0_i32_0 : i32, i32, i32
  }
  func.func @transform_1(%arg0: i32) -> (i32, i32, i32) {
    %c0_i32 = arith.constant 0 : i32
    %c0_i32_0 = arith.constant 0 : i32
    %c0_i32_1 = arith.constant 0 : i32
    %c0_i32_2 = arith.constant 0 : i32
    return %c0_i32, %c0_i32_0, %c0_i32_1 : i32, i32, i32
  }
  func.func @transform_2(%arg0: i32) -> (i32, i32, i32) {
    %c0_i32 = arith.constant 0 : i32
    %c0_i32_0 = arith.constant 0 : i32
    %c0_i32_1 = arith.constant 0 : i32
    %c0_i32_2 = arith.constant 0 : i32
    return %c0_i32, %c0_i32_0, %c0_i32_1 : i32, i32, i32
  }
  func.func @transform_3(%arg0: i32) -> (i32, i32) {
    %c0_i32 = arith.constant 0 : i32
    %c0_i32_0 = arith.constant 0 : i32
    %c0_i32_1 = arith.constant 0 : i32
    return %c0_i32, %c0_i32_0 : i32, i32
  }
  func.func @transform_4(%arg0: i32) -> (i32, i32) {
    %c0_i32 = arith.constant 0 : i32
    %c0_i32_0 = arith.constant 0 : i32
    %c0_i32_1 = arith.constant 0 : i32
    return %c0_i32, %c0_i32_0 : i32, i32
  }
  func.func @transform_5(%arg0: i32) -> (i32, i32) {
    %c0_i32 = arith.constant 0 : i32
    %c0_i32_0 = arith.constant 0 : i32
    %c0_i32_1 = arith.constant 0 : i32
    return %c0_i32, %c0_i32_0 : i32, i32
  }
  func.func @transform_6(%arg0: i32) -> (i32, i32) {
    %c0_i32 = arith.constant 0 : i32
    %c0_i32_0 = arith.constant 0 : i32
    %c0_i32_1 = arith.constant 0 : i32
    return %c0_i32, %c0_i32_0 : i32, i32
  }
  func.func @transform_7(%arg0: i32) -> (i32, i32, i32) {
    %c0_i32 = arith.constant 0 : i32
    %c0_i32_0 = arith.constant 0 : i32
    %c0_i32_1 = arith.constant 0 : i32
    %c0_i32_2 = arith.constant 0 : i32
    return %c0_i32, %c0_i32_0, %c0_i32_1 : i32, i32, i32
  }
  func.func @transform_8(%arg0: i32) -> (i32, i32, i32) {
    %c0_i32 = arith.constant 0 : i32
    %c0_i32_0 = arith.constant 0 : i32
    %c0_i32_1 = arith.constant 0 : i32
    %c0_i32_2 = arith.constant 0 : i32
    return %c0_i32, %c0_i32_0, %c0_i32_1 : i32, i32, i32
  }
  func.func @transform_9(%arg0: i32) -> (i32, i32, i32) {
    %c0_i32 = arith.constant 0 : i32
    %c0_i32_0 = arith.constant 0 : i32
    %c0_i32_1 = arith.constant 0 : i32
    return %arg0, %c0_i32, %c0_i32_0 : i32, i32, i32
  }
}

</mosaic_0001>

<bundles_post_ra>
// kernel: tpu_custom_call.1
= control target key start
LH: loop header
LB: loop body
LE: loop exit
PB: predicated region body
PF: predicated region fallthrough
CT: control target
= control target key end

     0   :  { %14 = vsyncpa [#allocation4], 0  ;;  %s5985_s0 = inlined_call_operand.vmem [shape: f32[2,16,64], index: 0, kind: input, shape index: {}]   ;;  %s5986_s1 = inlined_call_operand.vmem [shape: f32[21,1,64], index: 1, kind: input, shape index: {}]   ;;  %s5987_s2 = inlined_call_operand.vmem [shape: f32[21,1,64], index: 2, kind: input, shape index: {}]   ;;  %s5988_s3 = inlined_call_operand.vmem [shape: f32[64,4], index: 3, kind: input, shape index: {}]   ;;  %s5989_s4 = inlined_call_operand.hbm [shape: f32[4,64], index: 4, kind: input, shape index: {}]   ;;  %s5990_s5 = inlined_call_operand.vmem [shape: f32[4,2], index: 5, kind: input, shape index: {}]   ;;  %s5991_s6 = inlined_call_operand.vmem [shape: f32[1,2], index: 6, kind: input, shape index: {}]   ;;  %s5992_s7 = inlined_call_operand.vmem [shape: f32[3,2,4], index: 7, kind: input, shape index: {}]   ;;  %s5993_s8 = inlined_call_operand.vmem [shape: f32[3,1,4], index: 8, kind: input, shape index: {}]   ;;  %s5994_s9 = inlined_call_operand.hbm [shape: f32[2,16,64], index: 9, kind: output, shape index: {}]  }
   0x1   :  { %15 = vsyncpa [#allocation5], 0  ;;  %s4000_s30 = smov [#allocation3]  }
   0x2   :  { %s30_s10 = sshll.u32 %s4000_s30, 4  ;;  %s31_s10 = int_to_ptr.vmem [resolvable:$true] %s30_s10 }
   0x3   :  { %s3964_s11 = scalar_lea.vmem %s31_s10, 64  ;;  %p3969_p1 = scmp.lt.s32.totalorder %s31_s10, %s31_s10 }
   0x4   :  { %p3965_p0 = scmp.ne.s32.totalorder %s31_s10, %s3964_s11  ;;  %p3970_p2 = scmp.lt.s32.totalorder %s3964_s11, %s3964_s11 }
   0x6   :  { %p3971_p3 = por %p3970_p2, %p3969_p1 }
   0x8   :  { %p3972_p4 = pnand %p3971_p3, %p3965_p0 }
   0xa   :  { %3975 = shalt.err (!%p3972_p4)
}
   0xb   :  { %33 = dma.hbm_to_vmem [thread:$0]  %s5989_s4, 64, %s31_s10, [#allocation4]  }
   0xc   :  { %3996 = dma.done.wait [#allocation4], 64  }
   0xd   :  { %3997 = vsyncadd [#allocation4], 4294967232  ;;  %vm45_vm0 = vcmask 714752   ;;  %vm50_vm1 = vcmask 97280   ;;  %vm58_vm2 = vcmask 720480   ;;  %v5995_v0 = vmov 0.0  }
   0xe   :  { %46 = vst.msk [vmem:[#allocation2] sm:$0x7] %vm45_vm0, %v5995_v0  ;;  %47 = vst.msk [vmem:[#allocation2 + $0x18] sm:$0x7] %vm45_vm0, %v5995_v0  ;;  %vm53_vm3 = vcmask 95232   ;;  %3791 = vmatprep.subr.mxu0 %v5995_v0  ;;  %3810 = vmatprep.subr.mxu1 %v5995_v0  ;;  %vm61_vm4 = vcmask 718432  }
   0xf   :  { %48 = vst.msk [vmem:[#allocation2 + $0x13] sm:$0x7] %vm45_vm0, %v5995_v0  ;;  %49 = vst.msk [vmem:[#allocation2 + $0x2b] sm:$0x7] %vm45_vm0, %v5995_v0  ;;  %v3627_v1 = vld [vmem:[%s5986_s1 + $0x8] ss:$0 sm:$0xff] }
  0x10   :  { %51 = vst.msk [vmem:[#allocation2] sm:$0xff] %vm50_vm1, %v5995_v0  ;;  %52 = vst.msk [vmem:[#allocation2 + $0x8] sm:$0xff] %vm50_vm1, %v5995_v0  ;;  %v66_v2 = vld [vmem:[%s5985_s0] sm:$0xff]  ;;  %s4002_s17 = smov 4   ;;  %s4003_s18 = smov 12   ;;  %v67_v4 = vld [vmem:[%s5985_s0 + $0x8] sm:$0xff] }
  0x11   :  { %56 = vst.msk [vmem:[#allocation2 + $0x20] sm:$0xff] %vm50_vm1, %v5995_v0  ;;  %55 = vst.msk [vmem:[#allocation2 + $0x18] sm:$0xff] %vm50_vm1, %v5995_v0  ;;  %255 = vrot.lane.b32.xlu1 %v3627_v1, %s4002_s17  ;;  %74 = vrot.lane.b32.xlu0 %v66_v2, %s4003_s18  ;;  %v3625_v3 = vld [vmem:[%s5986_s1 + $0x1] ss:$0 sm:$0xff]  ;;  %v3633_v5 = vld [vmem:[%s5986_s1 + $0x9] ss:$0 sm:$0xff] }
  0x12   :  { %54 = vst.msk [vmem:[#allocation2 + $0x10] sm:$0x3f] %vm53_vm3, %v5995_v0  ;;  %57 = vst.msk [vmem:[#allocation2 + $0x28] sm:$0x3f] %vm53_vm3, %v5995_v0  ;;  %v3629_v6 = vld [vmem:[%s5986_s1 + $0xf] ss:$0 sm:$0xff] }
  0x13   :  { %59 = vst.msk [vmem:[#allocation2] sm:$0xff] %vm58_vm2, %v5995_v0  ;;  %60 = vst.msk [vmem:[#allocation2 + $0x8] sm:$0xff] %vm58_vm2, %v5995_v0  ;;  %s4004_s27 = smov 8   ;;  %v3635_v7 = vld [vmem:[%s5986_s1 + $0x10] ss:$0 sm:$0xff]  ;;  %s4005_s19 = smov 16  }
  0x14   :  { %64 = vst.msk [vmem:[#allocation2 + $0x20] sm:$0xff] %vm58_vm2, %v5995_v0  ;;  %63 = vst.msk [vmem:[#allocation2 + $0x18] sm:$0xff] %vm58_vm2, %v5995_v0  ;;  %v3631_v8 = vld [vmem:[%s5986_s1 + $0x2] ss:$0 sm:$0xff]  ;;  %v3650_v9 = vld [vmem:[%s5986_s1 + $0x3] ss:$0 sm:$0xff] }
  0x15   :  { %62 = vst.msk [vmem:[#allocation2 + $0x10] sm:$0x3f] %vm61_vm4, %v5995_v0  ;;  %65 = vst.msk [vmem:[#allocation2 + $0x28] sm:$0x3f] %vm61_vm4, %v5995_v0  ;;  %209 = vrot.lane.b32.xlu1 %v3625_v3, %s4002_s17  ;;  %76 = vrot.lane.b32.xlu0 %v67_v4, %s4003_s18  ;;  %v3652_v10 = vld [vmem:[%s5986_s1 + $0xa] ss:$0 sm:$0xff] }
  0x16   :  { %v3672_v11 = vld [vmem:[%s5986_s1 + $0xb] ss:$0 sm:$0xff]  ;;  %v3654_v12 = vld [vmem:[%s5986_s1 + $0x11] ss:$0 sm:$0xff]  ;;  %v3674_v13 = vld [vmem:[%s5986_s1 + $0x12] ss:$0 sm:$0xff] }
  0x17   :  { %v3670_v14 = vld [vmem:[%s5986_s1 + $0x4] ss:$0 sm:$0xff]  ;;  %v3690_v15 = vld [vmem:[%s5986_s1 + $0x5] ss:$0 sm:$0xff]  ;;  %v3692_v16 = vld [vmem:[%s5986_s1 + $0xc] ss:$0 sm:$0xff] }
  0x18   :  { %s4006_s29 = smov 20   ;;  %v3698_v17 = vld [vmem:[%s5986_s1 + $0xd] ss:$0 sm:$0xff]  ;;  %v3694_v18 = vld [vmem:[%s5986_s1 + $0x13] ss:$0 sm:$0xff]  ;;  %s4007_s13 = smov 24  }
  0x19   :  { %413 = vrot.lane.b32.xlu1 %v3633_v5, %s4004_s27  ;;  %311 = vrot.lane.b32.xlu0 %v3629_v6, %s4002_s17  ;;  %v3700_v19 = vld [vmem:[%s5986_s1 + $0x14] ss:$0 sm:$0xff]  ;;  %v3696_v20 = vld [vmem:[%s5986_s1 + $0x6] ss:$0 sm:$0xff]  ;;  %vm86_vm5 = vcmask 621664   ;;  %s4008_s22 = smov 124  }
  0x1a   :  { %v3658_v21 = vld [vmem:[%s5987_s2 + $0x4] ss:$0 sm:$0xff]  ;;  %v3656_v22 = vld [vmem:[%s5987_s2 + $0x1] ss:$0 sm:$0xff]  ;;  %v3668_v23 = vld [vmem:[%s5987_s2 + $0x13] ss:$0 sm:$0xff] }
  0x1b   :  { %v3660_v24 = vld [vmem:[%s5987_s2 + $0x7] ss:$0 sm:$0xff]  ;;  %v3678_v25 = vld [vmem:[%s5987_s2 + $0x5] ss:$0 sm:$0xff]  ;;  %v3662_v26 = vld [vmem:[%s5987_s2 + $0xa] ss:$0 sm:$0xff] }
  0x1c   :  { %v3680_v27 = vld [vmem:[%s5987_s2 + $0x8] ss:$0 sm:$0xff]  ;;  %v3664_v28 = vld [vmem:[%s5987_s2 + $0xd] ss:$0 sm:$0xff]  ;;  %v3682_v29 = vld [vmem:[%s5987_s2 + $0xb] ss:$0 sm:$0xff] }
  0x1d   :  { %469 = vrot.lane.b32.xlu1 %v3635_v7, %s4004_s27  ;;  %367 = vrot.lane.b32.xlu0 %v3631_v8, %s4004_s27  ;;  %v3666_v30 = vld [vmem:[%s5987_s2 + $0x10] ss:$0 sm:$0xff]  ;;  %v3676_v31 = vld [vmem:[%s5987_s2 + $0x2] ss:$0 sm:$0xff]  ;;  %s4009_s23 = smov 120   ;;  %s4010_s24 = smov 116  }
  0x1e   :  { %s4011_s25 = smov 112   ;;  %s4012_s26 = smov 108   ;;  %vm136_vm6 = vcmask 1046528   ;;  %vm179_vm7 = vcmask 1045504   ;;  %vm637_vm8 = vcmask 1044480   ;;  %vm678_vm9 = vcmask 1043456  }
  0x1f   :  { %s4013_s30 = smov 104   ;;  %vm719_vm10 = vcmask 1042432   ;;  %vm760_vm11 = vcmask 1041408   ;;  %vm2079_vm12 = vcmask 523264   ;;  %vm2059_vm13 = vcmask 588864  }
  0x20   :  { %vm4014_vm14 = vmmov 0   ;;  %vm2194_vm15 = vcmask 31744   ;;  %vm2300_vm1 = vcmask 15360  }
  0x21   :  { %786 = vrot.lane.b32.xlu1 %v3650_v9, %s4003_s18  ;;  %832 = vrot.lane.b32.xlu0 %v3652_v10, %s4003_s18 }
  0x25   :  { %1312 = vrot.lane.b32.xlu1 %v3672_v11, %s4005_s19  ;;  %888 = vrot.lane.b32.xlu0 %v3654_v12, %s4003_s18 }
  0x29   :  { %1368 = vrot.lane.b32.xlu1 %v3674_v13, %s4005_s19  ;;  %1266 = vrot.lane.b32.xlu0 %v3670_v14, %s4005_s19 }
  0x2d   :  { %1746 = vrot.lane.b32.xlu1 %v3690_v15, %s4006_s29  ;;  %1792 = vrot.lane.b32.xlu0 %v3692_v16, %s4006_s29 }
  0x31   :  { %1950 = vrot.lane.b32.xlu1 %v3698_v17, %s4007_s13  ;;  %1848 = vrot.lane.b32.xlu0 %v3694_v18, %s4006_s29 }
  0x35   :  { %2006 = vrot.lane.b32.xlu1 %v3700_v19, %s4007_s13  ;;  %1904 = vrot.lane.b32.xlu0 %v3696_v20, %s4007_s13 }
  0x39   :  { %978 = vrot.lane.b32.xlu1 %v3658_v21, %s4003_s18  ;;  %944 = vrot.lane.b32.xlu0 %v3656_v22, %s4003_s18 }
  0x3d   :  { %1218 = vrot.lane.b32.xlu1 %v3668_v23, %s4003_s18  ;;  %1026 = vrot.lane.b32.xlu0 %v3660_v24, %s4003_s18 }
  0x41   :  { %1458 = vrot.lane.b32.xlu1 %v3678_v25, %s4005_s19  ;;  %1074 = vrot.lane.b32.xlu0 %v3662_v26, %s4003_s18 }
  0x45   :  { %1506 = vrot.lane.b32.xlu1 %v3680_v27, %s4005_s19  ;;  %1122 = vrot.lane.b32.xlu0 %v3664_v28, %s4003_s18 }
  0x49   :  { %1554 = vrot.lane.b32.xlu1 %v3682_v29, %s4005_s19  ;;  %1170 = vrot.lane.b32.xlu0 %v3666_v30, %s4003_s18 }
  0x4d   :  { %1424 = vrot.lane.b32.xlu0 %v3676_v31, %s4005_s19 }
  0x83   :  { %v4207_v32 = vpop.permute.xlu1 %255  ;;  %v75_v33 = vpop.permute.xlu0 %74 }
  0x84   :  { %87 = vst.msk [vmem:[#allocation2 + $0x3] sm:$0xff] %vm86_vm5, %v75_v33 }
  0x87   :  { %v4210_v34 = vpop.permute.xlu1 %209  ;;  %v77_v35 = vpop.permute.xlu0 %76 }
  0x88   :  { %88 = vst.msk [vmem:[#allocation2 + $0xb] sm:$0xff] %vm86_vm5, %v77_v35 }
  0x8b   :  { %v4213_v36 = vld [vmem:[#allocation2] sm:$0xff]  ;;  %v4215_v37 = vpop.permute.xlu1 %413  ;;  %v4217_v38 = vpop.permute.xlu0 %311 }
  0x8c   :  { %v212_v39 = vmul.f32 %v4210_v34, %v4213_v36  ;;  %v314_v18 = vmul.f32 %v4217_v38, %v4213_v36  ;;  %v258_v25 = vmul.f32 %v4207_v32, %v4213_v36  ;;  %v416_v26 = vmul.f32 %v4215_v37, %v4213_v36 }
  0x8e   :  { %224 = vrot.lane.b32.xlu0 %v212_v39, %s4008_s22  ;;  %v326_v24 = vrot.slane %v314_v18, 2  ;;  %v270_v31 = vrot.slane %v258_v25, 1  ;;  %v428_v33 = vrot.slane %v416_v26, 1 }
  0x8f   :  { %v4222_v40 = vld [vmem:[#allocation2 + $0x8] sm:$0xff]  ;;  %v4224_v41 = vld [vmem:[#allocation2 + $0x10] sm:$0x3f]  ;;  %v4226_v42 = vpop.permute.xlu1 %469  ;;  %v4228_v43 = vpop.permute.xlu0 %367 }
  0x90   :  { %v213_v44 = vmul.f32 %v4210_v34, %v4222_v40  ;;  %v214_v45 = vmul.f32 %v4210_v34, %v4224_v41  ;;  %v370_v48 = vmul.f32 %v4228_v43, %v4213_v36  ;;  %v371_v49 = vmul.f32 %v4228_v43, %v4222_v40 }
  0x91   :  { %v372_v52 = vmul.f32 %v4228_v43, %v4224_v41  ;;  %v260_v2 = vmul.f32 %v4207_v32, %v4224_v41  ;;  %v316_v3 = vmul.f32 %v4217_v38, %v4224_v41  ;;  %v474_v6 = vmul.f32 %v4226_v42, %v4224_v41 }
  0x92   :  { %226 = vrot.lane.b32.xlu1 %v213_v44, %s4008_s22  ;;  %228 = vrot.lane.b32.xlu0 %v214_v45, %s4008_s22  ;;  %v418_v7 = vmul.f32 %v4215_v37, %v4224_v41  ;;  %v259_v12 = vmul.f32 %v4207_v32, %v4222_v40  ;;  %v315_v17 = vmul.f32 %v4217_v38, %v4222_v40 }
  0x93   :  { %v4236_v46 = vpop.permute.xlu1 %786  ;;  %v4238_v47 = vpop.permute.xlu0 %832  ;;  %v273_v4 = vrot.slane %v260_v2, 1  ;;  %v329_v5 = vrot.slane %v316_v3, 2  ;;  %v487_v8 = vrot.slane %v474_v6, 2  ;;  %v417_v23 = vmul.f32 %v4215_v37, %v4222_v40 }
  0x94   :  { %6074 = vst [vmem:[#allocation9_spill] sm:$0xff] %v4236_v46  ;;  %6075 = vst [vmem:[#allocation10_spill] sm:$0xff] %v4238_v47  ;;  %v790_v53 = vmul.f32 %v4236_v46, %v4222_v40  ;;  %v789_v56 = vmul.f32 %v4236_v46, %v4213_v36  ;;  %v791_v58 = vmul.f32 %v4236_v46, %v4224_v41  ;;  %v431_v9 = vrot.slane %v418_v7, 1 }
  0x95   :  { %v837_v10 = vmul.f32 %v4238_v47, %v4224_v41  ;;  %v271_v16 = vrot.slane %v259_v12, 1  ;;  %v327_v22 = vrot.slane %v315_v17, 2  ;;  %v429_v29 = vrot.slane %v417_v23, 1 }
  0x96   :  { %382 = vrot.lane.b32.xlu1 %v370_v48, %s4009_s23  ;;  %384 = vrot.lane.b32.xlu0 %v371_v49, %s4009_s23  ;;  %v473_v30 = vmul.f32 %v4226_v42, %v4222_v40  ;;  %v836_v45 = vmul.f32 %v4238_v47, %v4222_v40  ;;  %v472_v48 = vmul.f32 %v4226_v42, %v4213_v36 }
  0x97   :  { %v4246_v50 = vpop.permute.xlu1 %1312  ;;  %v4248_v51 = vpop.permute.xlu0 %888  ;;  %v850_v13 = vrot.slane %v837_v10, 1  ;;  %v274_v21 = vsel %vm136_vm6, %v271_v16, %v273_v4  ;;  %v328_v28 = vsel %vm179_vm7, %v326_v24, %v327_v22  ;;  %v272_v35 = vsel %vm136_vm6, %v270_v31, %v271_v16 }
  0x98   :  { %6076 = vst [vmem:[#allocation11_spill] sm:$0xff] %v4246_v50  ;;  %6077 = vst [vmem:[#allocation12_spill] sm:$0xff] %v4248_v51  ;;  %v893_v15 = vmul.f32 %v4248_v51, %v4224_v41  ;;  %v1317_v20 = vmul.f32 %v4246_v50, %v4224_v41  ;;  %v430_v39 = vsel %vm136_vm6, %v428_v33, %v429_v29  ;;  %v485_v44 = vrot.slane %v473_v30, 2 }
  0x99   :  { %v330_v49 = vsel %vm179_vm7, %v327_v22, %v329_v5 }
  0x9a   :  { %386 = vrot.lane.b32.xlu1 %v372_v52, %s4009_s23  ;;  %803 = vrot.lane.b32.xlu0 %v790_v53, %s4010_s24  ;;  %v906_v19 = vrot.slane %v893_v15, 2  ;;  %v1330_v27 = vrot.slane %v1317_v20, 1  ;;  %v488_v52 = vsel %vm179_vm7, %v485_v44, %v487_v8  ;;  %v848_v53 = vrot.slane %v836_v45, 1 }
  0x9b   :  { %v4256_v54 = vpop.permute.xlu1 %1368  ;;  %v4258_v55 = vpop.permute.xlu0 %1266 }
  0x9c   :  { %6078 = vst [vmem:[#allocation13_spill] sm:$0xff] %v4256_v54  ;;  %6079 = vst [vmem:[#allocation14_spill] sm:$0xff] %v4258_v55  ;;  %v1269_v57 = vmul.f32 %v4258_v55, %v4213_v36  ;;  %v1271_v59 = vmul.f32 %v4258_v55, %v4224_v41  ;;  %v1270_v61 = vmul.f32 %v4258_v55, %v4222_v40 }
  0x9d   :  { %v4300_v11 = vmul.f32 %v4256_v54, %v4224_v41  ;;  %v1371_v7 = vmul.f32 %v4256_v54, %v4213_v36 }
  0x9e   :  { %801 = vrot.lane.b32.xlu1 %v789_v56, %s4010_s24  ;;  %1281 = vrot.lane.b32.xlu0 %v1269_v57, %s4011_s25  ;;  %v892_v56 = vmul.f32 %v4248_v51, %v4222_v40  ;;  %v835_v57 = vmul.f32 %v4238_v47, %v4213_v36 }
  0x9f   :  { %v4270_v60 = vpop.permute.xlu1 %1746  ;;  %v1386_v14 = vrot.slane %v4300_v11, 2  ;;  %v1383_v15 = vrot.slane %v1371_v7, 2  ;;  %v3684_v11 = vld [vmem:[%s5987_s2 + $0xe] ss:$0 sm:$0xff] }
  0xa0   :  { %6080 = vst [vmem:[#allocation15_spill] sm:$0xff] %v4270_v60  ;;  %v1749_v62 = vmul.f32 %v4270_v60, %v4213_v36  ;;  %v1750_v63 = vmul.f32 %v4270_v60, %v4222_v40  ;;  %v1751_v1 = vmul.f32 %v4270_v60, %v4224_v41  ;;  %v847_v2 = vrot.slane %v835_v57, 1 }
  0xa2   :  { %805 = vrot.lane.b32.xlu1 %v791_v58, %s4010_s24  ;;  %1285 = vrot.lane.b32.xlu0 %v1271_v59, %s4011_s25  ;;  %v1316_v58 = vmul.f32 %v4246_v50, %v4222_v40  ;;  %v432_v59 = vsel %vm136_vm6, %v429_v29, %v431_v9 }
  0xa3   :  { %v4395_v31 = vpop.permute.xlu1 %1950 }
  0xa4   :  { %v1328_v3 = vrot.slane %v1316_v58, 1  ;;  %6084 = vst [vmem:[#allocation19_spill] sm:$0xff] %v4395_v31 }
  0xa6   :  { %1283 = vrot.lane.b32.xlu1 %v1270_v61, %s4011_s25  ;;  %1761 = vrot.lane.b32.xlu0 %v1749_v62, %s4012_s26  ;;  %v851_v61 = vsel %vm136_vm6, %v848_v53, %v850_v13  ;;  %v484_v62 = vrot.slane %v472_v48, 2  ;;  %v1331_v10 = vsel %vm136_vm6, %v1328_v3, %v1330_v27 }
  0xaa   :  { %1763 = vrot.lane.b32.xlu1 %v1750_v63, %s4012_s26  ;;  %1765 = vrot.lane.b32.xlu0 %v1751_v1, %s4012_s26  ;;  %v904_v63 = vrot.slane %v892_v56, 2  ;;  %v4355_v1 = vpop.permute.xlu0 %1792 }
  0xab   :  { %6081 = vst [vmem:[#allocation16_spill] sm:$0xff] %v4355_v1  ;;  %v1795_v17 = vmul.f32 %v4355_v1, %v4213_v36  ;;  %v1796_v18 = vmul.f32 %v4355_v1, %v4222_v40  ;;  %v1797_v26 = vmul.f32 %v4355_v1, %v4224_v41 }
  0xac   :  { %v907_v6 = vsel %vm179_vm7, %v904_v63, %v906_v19 }
  0xad   :  { %v1807_v23 = vrot.slane %v1795_v17, 1  ;;  %v1808_v24 = vrot.slane %v1796_v18, 1  ;;  %v1810_v33 = vrot.slane %v1797_v26, 1 }
  0xae   :  { %284 = vrot.lane.b32.xlu1 %v273_v4, %s4008_s22  ;;  %340 = vrot.lane.b32.xlu0 %v329_v5, %s4008_s22  ;;  %v891_v4 = vmul.f32 %v4248_v51, %v4213_v36  ;;  %v486_v5 = vsel %vm179_vm7, %v484_v62, %v485_v44  ;;  %v1954_v62 = vmul.f32 %v4395_v31, %v4222_v40 }
  0xb0   :  { %v903_v12 = vrot.slane %v891_v4, 2 }
  0xb2   :  { %498 = vrot.lane.b32.xlu1 %v487_v8, %s4009_s23  ;;  %442 = vrot.lane.b32.xlu0 %v431_v9, %s4009_s23  ;;  %v1372_v8 = vmul.f32 %v4256_v54, %v4222_v40  ;;  %v849_v9 = vsel %vm136_vm6, %v847_v2, %v848_v53  ;;  %v905_v20 = vsel %vm179_vm7, %v903_v12, %v904_v63  ;;  %v4408_v53 = vpop.permute.xlu1 %2006  ;;  %v3686_v2 = vld [vmem:[%s5987_s2 + $0x11] ss:$0 sm:$0xff] }
  0xb3   :  { %6086 = vst [vmem:[#allocation21_spill] sm:$0xff] %v4408_v53  ;;  %v2010_v12 = vmul.f32 %v4408_v53, %v4222_v40 }
  0xb4   :  { %v1384_v16 = vrot.slane %v1372_v8, 2 }
  0xb5   :  { %v2022_v18 = vrot.slane %v2010_v12, 2 }
  0xb6   :  { %861 = vrot.lane.b32.xlu1 %v850_v13, %s4010_s24  ;;  %1397 = vrot.lane.b32.xlu0 %v1386_v14, %s4011_s25  ;;  %v1315_v13 = vmul.f32 %v4246_v50, %v4213_v36  ;;  %v4419_v57 = vpop.permute.xlu1 %978 }
  0xb7   :  { %6088 = vst [vmem:[#allocation23_spill] sm:$0xff] %v4419_v57 }
  0xb8   :  { %v1327_v22 = vrot.slane %v1315_v13, 1  ;;  %v2011_v13 = vmul.f32 %v4408_v53, %v4224_v41 }
  0xba   :  { %917 = vrot.lane.b32.xlu1 %v906_v19, %s4010_s24  ;;  %282 = vrot.lane.b32.xlu0 %v274_v21, %s4008_s22  ;;  %v4375_v19 = vpop.permute.xlu0 %1848  ;;  %v1385_v21 = vsel %vm179_vm7, %v1383_v15, %v1384_v16  ;;  %v3688_v15 = vld [vmem:[%s5987_s2 + $0x14] ss:$0 sm:$0xff] }
  0xbb   :  { %6082 = vst [vmem:[#allocation17_spill] sm:$0xff] %v4375_v19  ;;  %v1851_v29 = vmul.f32 %v4375_v19, %v4213_v36  ;;  %v1852_v30 = vmul.f32 %v4375_v19, %v4222_v40  ;;  %v1853_v48 = vmul.f32 %v4375_v19, %v4224_v41 }
  0xbd   :  { %v1864_v44 = vrot.slane %v1852_v30, 2  ;;  %v1866_v56 = vrot.slane %v1853_v48, 2  ;;  %v3644_v48 = vld [vmem:[%s5987_s2 + $0xc] ss:$0 sm:$0xff] }
  0xbe   :  { %1341 = vrot.lane.b32.xlu1 %v1330_v27, %s4011_s25  ;;  %336 = vrot.lane.b32.xlu0 %v328_v28, %s4008_s22  ;;  %v4383_v25 = vpop.permute.xlu0 %1904  ;;  %v1329_v27 = vsel %vm136_vm6, %v1327_v22, %v1328_v3  ;;  %v1809_v28 = vsel %vm136_vm6, %v1807_v23, %v1808_v24 }
  0xbf   :  { %6083 = vst [vmem:[#allocation18_spill] sm:$0xff] %v4383_v25  ;;  %v1907_v58 = vmul.f32 %v4383_v25, %v4213_v36  ;;  %v1909_v3 = vmul.f32 %v4383_v25, %v4224_v41  ;;  %v1908_v8 = vmul.f32 %v4383_v25, %v4222_v40 }
  0xc2   :  { %280 = vrot.lane.b32.xlu1 %v272_v35, %s4008_s22  ;;  %438 = vrot.lane.b32.xlu0 %v430_v39, %s4009_s23  ;;  %v1387_v35 = vsel %vm179_vm7, %v1384_v16, %v1386_v14  ;;  %v1863_v39 = vrot.slane %v1851_v29, 2  ;;  %v4400_v45 = vpop.permute.xlu0 %944 }
  0xc3   :  { %6085 = vst [vmem:[#allocation20_spill] sm:$0xff] %v4400_v45 }
  0xc6   :  { %338 = vrot.lane.b32.xlu1 %v330_v49, %s4008_s22  ;;  %496 = vrot.lane.b32.xlu0 %v488_v52, %s4009_s23  ;;  %v1811_v49 = vsel %vm136_vm6, %v1808_v24, %v1810_v33  ;;  %v1865_v52 = vsel %vm179_vm7, %v1863_v39, %v1864_v44  ;;  %v4415_v14 = vpop.permute.xlu0 %1026 }
  0xc7   :  { %6087 = vst [vmem:[#allocation22_spill] sm:$0xff] %v4415_v14  ;;  %v1030_v12 = vmul.f32 %v4415_v14, %v4222_v40 }
  0xca   :  { %440 = vrot.lane.b32.xlu1 %v432_v59, %s4009_s23  ;;  %859 = vrot.lane.b32.xlu0 %v851_v61, %s4010_s24  ;;  %v1867_v59 = vsel %vm179_vm7, %v1864_v44, %v1866_v56  ;;  %v1953_v61 = vmul.f32 %v4395_v31, %v4213_v36  ;;  %v4428_v63 = vpop.permute.xlu0 %1074  ;;  %v3640_v44 = vld [vmem:[%s5987_s2 + $0x6] ss:$0 sm:$0xff] }
  0xcb   :  { %6089 = vst [vmem:[#allocation24_spill] sm:$0xff] %v4428_v63 }
  0xcc   :  { %v1965_v4 = vrot.slane %v1953_v61, 1  ;;  %v982_v61 = vmul.f32 %v4419_v57, %v4222_v40 }
  0xce   :  { %494 = vrot.lane.b32.xlu1 %v486_v5, %s4009_s23  ;;  %915 = vrot.lane.b32.xlu0 %v907_v6, %s4010_s24  ;;  %v1966_v5 = vrot.slane %v1954_v62, 1  ;;  %v4437_v6 = vpop.permute.xlu1 %1218  ;;  %v4441_v7 = vpop.permute.xlu0 %1122  ;;  %v983_v62 = vmul.f32 %v4419_v57, %v4224_v41 }
  0xcf   :  { %6090 = vst [vmem:[#allocation25_spill] sm:$0xff] %v4437_v6  ;;  %6091 = vst [vmem:[#allocation26_spill] sm:$0xff] %v4441_v7 }
  0xd2   :  { %857 = vrot.lane.b32.xlu1 %v849_v9, %s4010_s24  ;;  %1339 = vrot.lane.b32.xlu0 %v1331_v10, %s4011_s25  ;;  %v1955_v9 = vmul.f32 %v4395_v31, %v4224_v41  ;;  %v1967_v10 = vsel %vm136_vm6, %v1965_v4, %v1966_v5  ;;  %v4457_v16 = vpop.permute.xlu1 %1458  ;;  %v4461_v22 = vpop.permute.xlu0 %1170 }
  0xd3   :  { %6092 = vst [vmem:[#allocation27_spill] sm:$0xff] %v4457_v16  ;;  %6093 = vst [vmem:[#allocation28_spill] sm:$0xff] %v4461_v22 }
  0xd4   :  { %v1968_v17 = vrot.slane %v1955_v9, 1  ;;  %v994_v9 = vrot.slane %v982_v61, 1  ;;  %v1077_v61 = vmul.f32 %v4428_v63, %v4213_v36 }
  0xd6   :  { %913 = vrot.lane.b32.xlu1 %v905_v20, %s4010_s24  ;;  %1393 = vrot.lane.b32.xlu0 %v1385_v21, %s4011_s25  ;;  %v2024_v20 = vrot.slane %v2011_v13, 2  ;;  %v2009_v21 = vmul.f32 %v4408_v53, %v4213_v36  ;;  %v1969_v23 = vsel %vm136_vm6, %v1966_v5, %v1968_v17  ;;  %v4474_v29 = vpop.permute.xlu0 %1424  ;;  %v948_v5 = vmul.f32 %v4400_v45, %v4222_v40 }
  0xd7   :  { %6095 = vst [vmem:[#allocation30_spill] sm:$0xff] %v4474_v29  ;;  %v1031_v13 = vmul.f32 %v4415_v14, %v4224_v41 }
  0xd8   :  { %v2025_v24 = vsel %vm179_vm7, %v2022_v18, %v2024_v20  ;;  %v2021_v26 = vrot.slane %v2009_v21, 2  ;;  %v1078_v21 = vmul.f32 %v4428_v63, %v4222_v40 }
  0xda   :  { %1337 = vrot.lane.b32.xlu1 %v1329_v27, %s4011_s25  ;;  %1817 = vrot.lane.b32.xlu0 %v1809_v28, %s4012_s26  ;;  %v4467_v27 = vpop.permute.xlu1 %1506  ;;  %v3638_v28 = vld [vmem:[%s5987_s2 + $0x3] ss:$0 sm:$0xff]  ;;  %v2023_v30 = vsel %vm179_vm7, %v2021_v26, %v2022_v18  ;;  %v947_v18 = vmul.f32 %v4400_v45, %v4213_v36 }
  0xdb   :  { %6094 = vst [vmem:[#allocation29_spill] sm:$0xff] %v4467_v27  ;;  %v1511_v60 = vmul.f32 %v4467_v27, %v4224_v41 }
  0xde   :  { %1395 = vrot.lane.b32.xlu1 %v1387_v35, %s4011_s25  ;;  %1821 = vrot.lane.b32.xlu0 %v1810_v33, %s4012_s26  ;;  %v3636_v33 = vld [vmem:[%s5987_s2] ss:$0 sm:$0xff]  ;;  %v4482_v35 = vpop.permute.xlu1 %1554 }
  0xdf   :  { %6096 = vst [vmem:[#allocation31_spill] sm:$0xff] %v4482_v35  ;;  %v1558_v55 = vmul.f32 %v4482_v35, %v4222_v40  ;;  %v1557_v31 = vmul.f32 %v4482_v35, %v4213_v36 }
  0xe2   :  { %1819 = vrot.lane.b32.xlu1 %v1811_v49, %s4012_s26  ;;  %1873 = vrot.lane.b32.xlu0 %v1865_v52, %s4012_s26 }
  0xe6   :  { %1602 = vrot.lane.b32.xlu1 %v3684_v11, %s4005_s19  ;;  %1877 = vrot.lane.b32.xlu0 %v1866_v56, %s4012_s26  ;;  %v3642_v11 = vld [vmem:[%s5987_s2 + $0x9] ss:$0 sm:$0xff]  ;;  %v3648_v56 = vld [vmem:[%s5987_s2 + $0x12] ss:$0 sm:$0xff] }
  0xea   :  { %1875 = vrot.lane.b32.xlu1 %v1867_v59, %s4012_s26  ;;  %1919 = vrot.lane.b32.xlu0 %v1907_v58, %s4013_s30 }
  0xee   :  { %1650 = vrot.lane.b32.xlu1 %v3686_v2, %s4005_s19  ;;  %1923 = vrot.lane.b32.xlu0 %v1909_v3, %s4013_s30  ;;  %v3646_v2 = vld [vmem:[%s5987_s2 + $0xf] ss:$0 sm:$0xff] }
  0xf2   :  { %1921 = vrot.lane.b32.xlu1 %v1908_v8, %s4013_s30  ;;  %1975 = vrot.lane.b32.xlu0 %v1967_v10, %s4013_s30  ;;  %v981_v8 = vmul.f32 %v4419_v57, %v4213_v36  ;;  %v996_v10 = vrot.slane %v983_v62, 1  ;;  %v1570_v57 = vrot.slane %v1558_v55, 3 }
  0xf4   :  { %v993_v26 = vrot.slane %v981_v8, 1  ;;  %v1127_v8 = vmul.f32 %v4441_v7, %v4224_v41 }
  0xf6   :  { %1698 = vrot.lane.b32.xlu1 %v3688_v15, %s4005_s19  ;;  %1979 = vrot.lane.b32.xlu0 %v1968_v17, %s4013_s30  ;;  %v995_v62 = vsel %vm136_vm6, %v993_v26, %v994_v9  ;;  %v1175_v26 = vmul.f32 %v4461_v22, %v4224_v41 }
  0xfa   :  { %1977 = vrot.lane.b32.xlu1 %v1969_v23, %s4013_s30  ;;  %2033 = vrot.lane.b32.xlu0 %v2025_v24, %s4013_s30  ;;  %v1079_v23 = vmul.f32 %v4428_v63, %v4224_v41  ;;  %v997_v24 = vsel %vm136_vm6, %v994_v9, %v996_v10 }
  0xfe   :  { %2031 = vrot.lane.b32.xlu1 %v2023_v30, %s4013_s30  ;;  %542 = vrot.lane.b32.xlu0 %v3638_v28, %s4004_s27  ;;  %v1042_v28 = vrot.slane %v1030_v12, 2  ;;  %v1044_v30 = vrot.slane %v1031_v13, 2 }
 0x100   :  { %v4484_v39 = vpop.permute.xlu0 %224 }
 0x102   :  { %2035 = vrot.lane.b32.xlu1 %v2024_v20, %s4013_s30  ;;  %524 = vrot.lane.b32.xlu0 %v3636_v33, %s4004_s27  ;;  %v1029_v20 = vmul.f32 %v4415_v14, %v4213_v36 }
 0x104   :  { %v4494_v49 = vpop.permute.xlu1 %226  ;;  %v4496_v52 = vpop.permute.xlu0 %228 }
 0x106   :  { %582 = vrot.lane.b32.xlu1 %v3640_v44, %s4004_s27  ;;  %663 = vrot.lane.b32.xlu0 %v3644_v48, %s4004_s27  ;;  %v1041_v48 = vrot.slane %v1029_v20, 2  ;;  %v1125_v20 = vmul.f32 %v4441_v7, %v4213_v36 }
 0x108   :  { %v4506_v58 = vpop.permute.xlu1 %382  ;;  %v4508_v59 = vpop.permute.xlu0 %384  ;;  %v1043_v13 = vsel %vm179_vm7, %v1041_v48, %v1042_v28 }
 0x10a   :  { %622 = vrot.lane.b32.xlu1 %v3642_v11, %s4004_s27  ;;  %745 = vrot.lane.b32.xlu0 %v3648_v56, %s4004_s27  ;;  %v1090_v11 = vrot.slane %v1078_v21, 3  ;;  %v1092_v56 = vrot.slane %v1079_v23, 3  ;;  %v1140_v23 = vrot.slane %v1127_v8, 4  ;;  %v1188_v8 = vrot.slane %v1175_v26, 5 }
 0x10b   :  { %v1221_v26 = vmul.f32 %v4437_v6, %v4213_v36 }
 0x10c   :  { %v4519_v3 = vpop.permute.xlu1 %386  ;;  %v4521_v4 = vpop.permute.xlu0 %803  ;;  %v1093_v9 = vsel %vm637_vm8, %v1090_v11, %v1092_v56  ;;  %v1137_v56 = vrot.slane %v1125_v20, 4 }
 0x10e   :  { %704 = vrot.lane.b32.xlu1 %v3646_v2, %s4004_s27  ;;  %957 = vrot.lane.b32.xlu0 %v948_v5, %s4008_s22  ;;  %v1045_v2 = vsel %vm179_vm7, %v1042_v28, %v1044_v30  ;;  %v1126_v5 = vmul.f32 %v4441_v7, %v4222_v40  ;;  %v1559_v7 = vmul.f32 %v4482_v35, %v4224_v41 }
 0x110   :  { %v4533_v15 = vpop.permute.xlu1 %801  ;;  %v4535_v17 = vpop.permute.xlu0 %1281  ;;  %v1138_v21 = vrot.slane %v1126_v5, 4  ;;  %v1572_v53 = vrot.slane %v1559_v7, 3 }
 0x112   :  { %955 = vrot.lane.b32.xlu1 %v947_v18, %s4008_s22  ;;  %1005 = vrot.lane.b32.xlu0 %v997_v24, %s4008_s22  ;;  %v1089_v18 = vrot.slane %v1077_v61, 3  ;;  %v1174_v24 = vmul.f32 %v4461_v22, %v4222_v40  ;;  %v1222_v61 = vmul.f32 %v4437_v6, %v4222_v40  ;;  %v1139_v0 = vsel %vm678_vm9, %v1137_v56, %v1138_v21 }
 0x113   :  { %v1463_v56 = vmul.f32 %v4457_v16, %v4224_v41 }
 0x114   :  { %v4548_v33 = vpop.permute.xlu1 %805  ;;  %v4550_v44 = vpop.permute.xlu0 %1285  ;;  %v1091_v48 = vsel %vm637_vm8, %v1089_v18, %v1090_v11  ;;  %v1186_v5 = vrot.slane %v1174_v24, 5  ;;  %v1234_v18 = vrot.slane %v1222_v61, 6 }
 0x115   :  { %v1476_v25 = vrot.slane %v1463_v56, 1  ;;  %v1427_v56 = vmul.f32 %v4474_v29, %v4213_v36 }
 0x116   :  { %1003 = vrot.lane.b32.xlu1 %v995_v62, %s4008_s22  ;;  %1053 = vrot.lane.b32.xlu0 %v1045_v2, %s4008_s22  ;;  %v1223_v62 = vmul.f32 %v4437_v6, %v4224_v41  ;;  %v1141_v2 = vsel %vm678_vm9, %v1138_v21, %v1140_v23  ;;  %v1189_v23 = vsel %vm719_vm10, %v1186_v5, %v1188_v8 }
 0x117   :  { %v1462_v21 = vmul.f32 %v4457_v16, %v4222_v40 }
 0x118   :  { %v4562_v10 = vpop.permute.xlu1 %1283  ;;  %v4564_v12 = vpop.permute.xlu0 %1761  ;;  %v1236_v20 = vrot.slane %v1223_v62, 6  ;;  %v1233_v62 = vrot.slane %v1221_v26, 6  ;;  %v1510_v26 = vmul.f32 %v4467_v27, %v4222_v40 }
 0x11a   :  { %1051 = vrot.lane.b32.xlu1 %v1043_v13, %s4008_s22  ;;  %1101 = vrot.lane.b32.xlu0 %v1093_v9, %s4008_s22  ;;  %v1173_v13 = vmul.f32 %v4461_v22, %v4213_v36  ;;  %v1237_v45 = vsel %vm760_vm11, %v1234_v18, %v1236_v20  ;;  %v1524_v22 = vrot.slane %v1511_v60, 2 }
 0x11c   :  { %v4576_v28 = vpop.permute.xlu1 %1763  ;;  %v4578_v30 = vpop.permute.xlu0 %1765  ;;  %v1185_v24 = vrot.slane %v1173_v13, 5 }
 0x11e   :  { %1099 = vrot.lane.b32.xlu1 %v1091_v48, %s4008_s22  ;;  %1149 = vrot.lane.b32.xlu0 %v1141_v2, %s4008_s22  ;;  %v1187_v61 = vsel %vm719_vm10, %v1185_v24, %v1186_v5  ;;  %v1461_v24 = vmul.f32 %v4457_v16, %v4213_v36  ;;  %v4641_v16 = vld [vmem:[%s5986_s1] ss:$0 sm:$0xff] }
 0x11f   :  { %v105_v1 = vmul.f32 %v4641_v16, %v4222_v40 }
 0x120   :  { %v4590_v11 = vpop.permute.xlu1 %284  ;;  %v4592_v9 = vpop.permute.xlu0 %340 }
 0x122   :  { %1147 = vrot.lane.b32.xlu1 %v1139_v0, %s4008_s22  ;;  %1197 = vrot.lane.b32.xlu0 %v1189_v23, %s4008_s22  ;;  %v4613_v0 = vld [vmem:[%s5986_s1 + $0x7] ss:$0 sm:$0xff]  ;;  %v1428_v23 = vmul.f32 %v4474_v29, %v4222_v40 }
 0x123   :  { %v125_v8 = vmul.f32 %v4613_v0, %v4222_v40  ;;  %v126_v5 = vmul.f32 %v4613_v0, %v4224_v41  ;;  %v124_v54 = vmul.f32 %v4613_v0, %v4213_v36 }
 0x124   :  { %v4600_v48 = vpop.permute.xlu1 %498  ;;  %v4602_v2 = vpop.permute.xlu0 %442 }
 0x125   :  { %v138_v50 = vrot.slane %v125_v8, 1  ;;  %v140_v6 = vrot.slane %v126_v5, 1  ;;  %v1509_v8 = vmul.f32 %v4467_v27, %v4213_v36  ;;  %v137_v14 = vrot.slane %v124_v54, 1 }
 0x126   :  { %1195 = vrot.lane.b32.xlu1 %v1187_v61, %s4008_s22  ;;  %1245 = vrot.lane.b32.xlu0 %v1237_v45, %s4008_s22  ;;  %v1235_v45 = vsel %vm760_vm11, %v1233_v62, %v1234_v18  ;;  %v1474_v61 = vrot.slane %v1462_v21, 1  ;;  %v4646_v18 = vld [vmem:[%s5986_s1 + $0xe] ss:$0 sm:$0xff] }
 0x127   :  { %v168_v63 = vmul.f32 %v4646_v18, %v4222_v40  ;;  %v167_v60 = vmul.f32 %v4646_v18, %v4213_v36  ;;  %v141_v29 = vsel %vm136_vm6, %v138_v50, %v140_v6  ;;  %v1521_v46 = vrot.slane %v1509_v8, 2 }
 0x128   :  { %v4621_v13 = vpop.permute.xlu1 %861  ;;  %v4623_v20 = vpop.permute.xlu0 %1397  ;;  %v1477_v5 = vsel %vm136_vm6, %v1474_v61, %v1476_v25  ;;  %v169_v25 = vmul.f32 %v4646_v18, %v4224_v41  ;;  %v1569_v8 = vrot.slane %v1557_v31, 3 }
 0x129   :  { %v181_v19 = vrot.slane %v168_v63, 2  ;;  %v180_v51 = vrot.slane %v167_v60, 2  ;;  %v1573_v63 = vsel %vm637_vm8, %v1570_v57, %v1572_v53 }
 0x12a   :  { %1243 = vrot.lane.b32.xlu1 %v1235_v45, %s4008_s22  ;;  %1437 = vrot.lane.b32.xlu0 %v1428_v23, %s4009_s23  ;;  %v1473_v45 = vrot.slane %v1461_v24, 1  ;;  %v1522_v23 = vrot.slane %v1510_v26, 2  ;;  %v104_v24 = vmul.f32 %v4641_v16, %v4213_v36  ;;  %v139_v26 = vsel %vm136_vm6, %v137_v14, %v138_v50 }
 0x12b   :  { %v183_v14 = vrot.slane %v169_v25, 2  ;;  %v182_v35 = vsel %vm179_vm7, %v180_v51, %v181_v19 }
 0x12c   :  { %v4648_v62 = vpop.permute.xlu1 %917  ;;  %v283_v21 = vpop.permute.xlu0 %282  ;;  %v153_v50 = vadd.f32 %v139_v26, %v104_v24 }
 0x12e   :  { %1435 = vrot.lane.b32.xlu1 %v1427_v56, %s4009_s23  ;;  %1485 = vrot.lane.b32.xlu0 %v1477_v5, %s4009_s23  ;;  %v1475_v56 = vsel %vm136_vm6, %v1473_v45, %v1474_v61  ;;  %v1525_v5 = vsel %vm179_vm7, %v1522_v23, %v1524_v22  ;;  %v154_v61 = vadd.f32 %v141_v29, %v105_v1 }
 0x12f   :  { %v106_v22 = vmul.f32 %v4641_v16, %v4224_v41  ;;  %v1523_v45 = vsel %vm179_vm7, %v1521_v46, %v1522_v23  ;;  %v196_v24 = vadd.f32 %v182_v35, %v153_v50  ;;  %v184_v1 = vsel %vm179_vm7, %v181_v19, %v183_v14 }
 0x130   :  { %v4671_v27 = vpop.permute.xlu1 %1341  ;;  %v337_v54 = vpop.permute.xlu0 %336  ;;  %v197_v29 = vadd.f32 %v184_v1, %v154_v61  ;;  %v1571_v46 = vsel %vm637_vm8, %v1569_v8, %v1570_v57 }
 0x131   :  { %v155_v47 = vadd.f32 %v140_v6, %v106_v22  ;;  %v242_v26 = vadd.f32 %v4484_v39, %v196_v24 }
 0x132   :  { %1483 = vrot.lane.b32.xlu1 %v1475_v56, %s4009_s23  ;;  %1533 = vrot.lane.b32.xlu0 %v1525_v5, %s4009_s23  ;;  %v243_v53 = vadd.f32 %v4494_v49, %v197_v29 }
 0x133   :  { %v198_v31 = vadd.f32 %v183_v14, %v155_v47 }
 0x134   :  { %v281_v55 = vpop.permute.xlu1 %280  ;;  %v439_v7 = vpop.permute.xlu0 %438  ;;  %v299_v23 = vadd.f32 %v283_v21, %v243_v53 }
 0x135   :  { %v298_v51 = vadd.f32 %v281_v55, %v242_v26  ;;  %v244_v6 = vadd.f32 %v4496_v52, %v198_v31 }
 0x136   :  { %1531 = vrot.lane.b32.xlu1 %v1523_v45, %s4009_s23  ;;  %1581 = vrot.lane.b32.xlu0 %v1573_v63, %s4009_s23 }
 0x137   :  { %v300_v19 = vadd.f32 %v4590_v11, %v244_v6  ;;  %v354_v50 = vadd.f32 %v337_v54, %v298_v51 }
 0x138   :  { %v339_v60 = vpop.permute.xlu1 %338  ;;  %v497_v25 = vpop.permute.xlu0 %496 }
 0x139   :  { %v355_v5 = vadd.f32 %v339_v60, %v299_v23  ;;  %v356_v39 = vadd.f32 %v4592_v9, %v300_v19  ;;  %v400_v47 = vadd.f32 %v4506_v58, %v354_v50 }
 0x13a   :  { %1579 = vrot.lane.b32.xlu1 %v1571_v46, %s4009_s23 }
 0x13b   :  { %v401_v57 = vadd.f32 %v4508_v59, %v355_v5  ;;  %v402_v55 = vadd.f32 %v4519_v3, %v356_v39  ;;  %v456_v21 = vadd.f32 %v439_v7, %v400_v47  ;;  %v2055_v3 = vld [vmem:[%s5985_s0] sm:$0xff] }
 0x13c   :  { %v441_v56 = vpop.permute.xlu1 %440  ;;  %v860_v35 = vpop.permute.xlu0 %859 }
 0x13d   :  { %v457_v52 = vadd.f32 %v441_v56, %v401_v57  ;;  %v458_v11 = vadd.f32 %v4602_v2, %v402_v55  ;;  %v2056_v2 = vld [vmem:[%s5985_s0 + $0x8] sm:$0xff] }
 0x13f   :  { %v513_v54 = vadd.f32 %v497_v25, %v457_v52  ;;  %v514_v59 = vadd.f32 %v4600_v48, %v458_v11  ;;  %v2094_v48 = vsel %vm2079_vm12, %v2055_v3, 0.0 }
 0x140   :  { %v495_v61 = vpop.permute.xlu1 %494  ;;  %v916_v22 = vpop.permute.xlu0 %915 }
 0x141   :  { %v512_v8 = vadd.f32 %v495_v61, %v456_v21  ;;  %v820_v58 = vadd.f32 %v4521_v4, %v513_v54  ;;  %v821_v25 = vadd.f32 %v4548_v33, %v514_v59  ;;  %v2095_v4 = vsel %vm2079_vm12, %v2056_v2, 0.0 }
 0x142   :  { %v2096_v6 = vadd.f32 %v2095_v4, %v2094_v48 }
 0x143   :  { %v819_v9 = vadd.f32 %v4533_v15, %v512_v8  ;;  %v876_v15 = vadd.f32 %v860_v35, %v820_v58  ;;  %v877_v31 = vadd.f32 %v4621_v13, %v821_v25 }
 0x144   :  { %v858_v49 = vpop.permute.xlu1 %857  ;;  %v1340_v14 = vpop.permute.xlu0 %1339  ;;  %v2097_v61 = vrot.slane %v2096_v6, 4 }
 0x145   :  { %v875_v7 = vadd.f32 %v858_v49, %v819_v9  ;;  %v932_v51 = vadd.f32 %v916_v22, %v876_v15  ;;  %v933_v50 = vadd.f32 %v4648_v62, %v877_v31 }
 0x146   :  { %v2098_v62 = vadd.f32 %v2097_v61, %v2096_v6 }
 0x147   :  { %v1300_v13 = vadd.f32 %v4562_v10, %v932_v51  ;;  %v1301_v21 = vadd.f32 %v4550_v44, %v933_v50 }
 0x148   :  { %v914_v45 = vpop.permute.xlu1 %913  ;;  %v1394_v63 = vpop.permute.xlu0 %1393  ;;  %v2099_v59 = vrot.slane %v2098_v62, 2 }
 0x149   :  { %v931_v26 = vadd.f32 %v914_v45, %v875_v7  ;;  %v1356_v45 = vadd.f32 %v1340_v14, %v1300_v13  ;;  %v1357_v14 = vadd.f32 %v4671_v27, %v1301_v21  ;;  %v68_v21 = vld [vmem:[%s5985_s0 + $0x10] sm:$0xff] }
 0x14a   :  { %v2100_v27 = vadd.f32 %v2099_v59, %v2098_v62 }
 0x14b   :  { %v1299_v23 = vadd.f32 %v4535_v17, %v931_v26  ;;  %v1413_v48 = vadd.f32 %v4623_v20, %v1357_v14 }
 0x14c   :  { %v1338_v24 = vpop.permute.xlu1 %1337  ;;  %v4700_v1 = vpop.permute.xlu0 %1817 }
 0x14d   :  { %v1355_v22 = vadd.f32 %v1338_v24, %v1299_v23  ;;  %v1781_v20 = vadd.f32 %v4578_v30, %v1413_v48 }
 0x14f   :  { %v1411_v10 = vadd.f32 %v1394_v63, %v1355_v22 }
 0x150   :  { %v1396_v29 = vpop.permute.xlu1 %1395  ;;  %v4705_v60 = vpop.permute.xlu0 %1821 }
 0x151   :  { %v1412_v8 = vadd.f32 %v1396_v29, %v1356_v45  ;;  %v1779_v58 = vadd.f32 %v4564_v12, %v1411_v10  ;;  %v1837_v22 = vadd.f32 %v4705_v60, %v1781_v20  ;;  %v3948_v20 = vld [vmem:[#allocation2 + $0x8] sm:$0xff] }
 0x153   :  { %v1780_v2 = vadd.f32 %v4576_v28, %v1412_v8  ;;  %v1835_v12 = vadd.f32 %v4700_v1, %v1779_v58 }
 0x154   :  { %v1820_v46 = vpop.permute.xlu1 %1819  ;;  %v1874_v53 = vpop.permute.xlu0 %1873 }
 0x155   :  { %v1836_v4 = vadd.f32 %v1820_v46, %v1780_v2 }
 0x158   :  { %v4718_v56 = vpop.permute.xlu1 %1602  ;;  %v4720_v19 = vpop.permute.xlu0 %1877 }
 0x159   :  { %6097 = vst [vmem:[#allocation32_spill] sm:$0xff] %v4718_v56  ;;  %v1605_v33 = vmul.f32 %v4718_v56, %v4213_v36  ;;  %v1606_v35 = vmul.f32 %v4718_v56, %v4222_v40  ;;  %v1607_v5 = vmul.f32 %v4718_v56, %v4224_v41  ;;  %v1893_v30 = vadd.f32 %v4720_v19, %v1837_v22 }
 0x15b   :  { %v1617_v17 = vrot.slane %v1605_v33, 4  ;;  %v1618_v39 = vrot.slane %v1606_v35, 4  ;;  %v1620_v57 = vrot.slane %v1607_v5, 4  ;;  %v2101_v33 = vrot.slane %v2100_v27, 1 }
 0x15c   :  { %v1876_v47 = vpop.permute.xlu1 %1875  ;;  %v1920_v49 = vpop.permute.xlu0 %1919  ;;  %v1891_v35 = vadd.f32 %v1874_v53, %v1835_v12 }
 0x15d   :  { %v1619_v55 = vsel %vm678_vm9, %v1617_v17, %v1618_v39  ;;  %v1621_v52 = vsel %vm678_vm9, %v1618_v39, %v1620_v57  ;;  %v1892_v23 = vadd.f32 %v1876_v47, %v1836_v4 }
 0x15e   :  { %1627 = vrot.lane.b32.xlu1 %v1619_v55, %s4009_s23  ;;  %1629 = vrot.lane.b32.xlu0 %v1621_v52, %s4009_s23 }
 0x160   :  { %v4735_v11 = vpop.permute.xlu1 %1650  ;;  %v1924_v54 = vpop.permute.xlu0 %1923 }
 0x161   :  { %v1653_v24 = vmul.f32 %v4735_v11, %v4213_v36  ;;  %v1654_v9 = vmul.f32 %v4735_v11, %v4222_v40  ;;  %v1655_v44 = vmul.f32 %v4735_v11, %v4224_v41  ;;  %v1939_v47 = vadd.f32 %v1924_v54, %v1893_v30 }
 0x163   :  { %v1665_v3 = vrot.slane %v1653_v24, 5  ;;  %v1666_v63 = vrot.slane %v1654_v9, 5  ;;  %v1668_v29 = vrot.slane %v1655_v44, 5 }
 0x164   :  { %v1922_v7 = vpop.permute.xlu1 %1921  ;;  %v1976_v25 = vpop.permute.xlu0 %1975 }
 0x165   :  { %v1667_v15 = vsel %vm719_vm10, %v1665_v3, %v1666_v63  ;;  %v1669_v26 = vsel %vm719_vm10, %v1666_v63, %v1668_v29  ;;  %v1938_v13 = vadd.f32 %v1922_v7, %v1892_v23 }
 0x166   :  { %1675 = vrot.lane.b32.xlu1 %v1667_v15, %s4009_s23  ;;  %1677 = vrot.lane.b32.xlu0 %v1669_v26, %s4009_s23  ;;  %v6101_v26 = vmov 0.0  }
 0x167   :  { %3807 = vmatprep.mubr.msk.f32.mxu0 %vm4014_vm14, %v6101_v26  ;;  %3812 = vmatprep.mubr.msk.f32.mxu1 %vm4014_vm14, %v6101_v26 }
 0x168   :  { %v4752_v31 = vpop.permute.xlu1 %1698  ;;  %v1980_v5 = vpop.permute.xlu0 %1979 }
 0x169   :  { %v1701_v28 = vmul.f32 %v4752_v31, %v4213_v36  ;;  %v1702_v51 = vmul.f32 %v4752_v31, %v4222_v40  ;;  %v1703_v6 = vmul.f32 %v4752_v31, %v4224_v41  ;;  %v1937_v36 = vadd.f32 %v1920_v49, %v1891_v35 }
 0x16a   :  { %v2102_v41 = vadd.f32 %v2101_v33, %v2100_v27  ;;  %v1995_v49 = vadd.f32 %v1980_v5, %v1939_v47  ;;  %v3949_v33 = vld [vmem:[#allocation2 + $0x10] sm:$0x3f] }
 0x16b   :  { %v1713_v50 = vrot.slane %v1701_v28, 6  ;;  %v1714_v1 = vrot.slane %v1702_v51, 6  ;;  %v1716_v46 = vrot.slane %v1703_v6, 6  ;;  %v1993_v53 = vadd.f32 %v1976_v25, %v1937_v36  ;;  %v2115_v25 = vld [vmem:[%s5988_s3 + $0x38] sm:$0xff] }
 0x16c   :  { %v1978_v61 = vpop.permute.xlu1 %1977  ;;  %v2034_v55 = vpop.permute.xlu0 %2033  ;;  %3792 = vmatpush3.msra.mxu0 %v2115_v25 }
 0x16d   :  { %v1715_v17 = vsel %vm760_vm11, %v1713_v50, %v1714_v1  ;;  %v1717_v40 = vsel %vm760_vm11, %v1714_v1, %v1716_v46  ;;  %v1994_v39 = vadd.f32 %v1978_v61, %v1938_v13  ;;  %3793 = vmatprep.subr.mxu0 %v6101_v26  ;;  %v3950_v13 = vld [vmem:[#allocation2] sm:$0xff] }
 0x16e   :  { %1723 = vrot.lane.b32.xlu1 %v1715_v17, %s4009_s23  ;;  %1725 = vrot.lane.b32.xlu0 %v1717_v40, %s4009_s23 }
 0x16f   :  { %v4769_v60 = vadd.f32 %v2034_v55, %v1994_v39 }
 0x170   :  { %v2032_v57 = vpop.permute.xlu1 %2031  ;;  %v4785_v59 = vpop.permute.xlu0 %542 }
 0x171   :  { %v4767_v52 = vadd.f32 %v2032_v57, %v1993_v53  ;;  %6099 = vst [vmem:[#allocation34_spill] sm:$0xff] %v4769_v60  ;;  %v2073_v19 = vrot.slane %v4769_v60, 2  ;;  %v546_v23 = vmul.f32 %v3948_v20, %v4785_v59  ;;  %v547_v35 = vmul.f32 %v3949_v33, %v4785_v59  ;;  %v6133_v60 = vld [vmem:[#allocation31_spill] sm:$0xff] }
 0x172   :  { %2104 = vrot.lane.b32.xlu0 %v2102_v41, %s4004_s27  ;;  %v545_v61 = vmul.f32 %v3950_v13, %v4785_v59 }
 0x173   :  { %6098 = vst [vmem:[#allocation33_spill] sm:$0xff] %v4767_v52  ;;  %v2072_v45 = vrot.slane %v4767_v52, 2  ;;  %v558_v22 = vrot.slane %v546_v23, 1  ;;  %v560_v36 = vrot.slane %v547_v35, 1 }
 0x174   :  { %v2036_v62 = vpop.permute.xlu1 %2035  ;;  %v4787_v63 = vpop.permute.xlu0 %524  ;;  %v557_v47 = vrot.slane %v545_v61, 1 }
 0x175   :  { %v4776_v10 = vadd.f32 %v2036_v62, %v1995_v49  ;;  %v2074_v54 = vsel %vm179_vm7, %v2072_v45, %v2073_v19  ;;  %v528_v55 = vmul.f32 %v3948_v20, %v4787_v63  ;;  %v561_v49 = vsel %vm136_vm6, %v558_v22, %v560_v36 }
 0x176   :  { %78 = vrot.lane.b32.xlu0 %v68_v21, %s4003_s18  ;;  %v2080_v44 = vsel %vm2079_vm12, %v2074_v54, 0.0 }
 0x177   :  { %6100 = vst [vmem:[#allocation35_spill] sm:$0xff] %v4776_v10  ;;  %v2075_v8 = vrot.slane %v4776_v10, 2 }
 0x178   :  { %v4789_v29 = vpop.permute.xlu1 %582  ;;  %v4795_v48 = vpop.permute.xlu0 %663 }
 0x179   :  { %v2076_v24 = vsel %vm179_vm7, %v2073_v19, %v2075_v8  ;;  %6102 = vst [vmem:[#allocation36_spill] sm:$0xff] %v4795_v48  ;;  %v586_v1 = vmul.f32 %v3948_v20, %v4789_v29  ;;  %v587_v46 = vmul.f32 %v3949_v33, %v4789_v29  ;;  %v585_v39 = vmul.f32 %v3950_v13, %v4789_v29 }
 0x17a   :  { %v2081_v9 = vsel %vm2079_vm12, %v2076_v24, 0.0  ;;  %v667_v54 = vmul.f32 %v3948_v20, %v4795_v48  ;;  %v668_v24 = vmul.f32 %v3949_v33, %v4795_v48 }
 0x17b   :  { %v2082_v14 = vadd.f32 %v2081_v9, %v2080_v44  ;;  %v598_v41 = vrot.slane %v586_v1, 2  ;;  %v600_v30 = vrot.slane %v587_v46, 2  ;;  %v597_v19 = vrot.slane %v585_v39, 2 }
 0x17c   :  { %v4797_v27 = vpop.permute.xlu1 %622  ;;  %v4800_v4 = vpop.permute.xlu0 %745  ;;  %v559_v9 = vsel %vm136_vm6, %v557_v47, %v558_v22  ;;  %v527_v44 = vmul.f32 %v3950_v13, %v4787_v63  ;;  %v680_v23 = vrot.slane %v667_v54, 4  ;;  %v682_v35 = vrot.slane %v668_v24, 4 }
 0x17d   :  { %v2083_v58 = vrot.slane %v2082_v14, 4  ;;  %6103 = vst [vmem:[#allocation37_spill] sm:$0xff] %v4800_v4  ;;  %v626_v17 = vmul.f32 %v3948_v20, %v4797_v27  ;;  %v627_v40 = vmul.f32 %v3949_v33, %v4797_v27  ;;  %v625_v21 = vmul.f32 %v3950_v13, %v4797_v27 }
 0x17e   :  { %v601_v8 = vsel %vm179_vm7, %v598_v41, %v600_v30  ;;  %v599_v1 = vsel %vm179_vm7, %v597_v19, %v598_v41  ;;  %v666_v46 = vmul.f32 %v3950_v13, %v4795_v48  ;;  %v571_v61 = vadd.f32 %v559_v9, %v527_v44 }
 0x17f   :  { %v2084_v3 = vadd.f32 %v2083_v58, %v2082_v14  ;;  %v639_v45 = vrot.slane %v626_v17, 3  ;;  %v641_v62 = vrot.slane %v627_v40, 3  ;;  %v572_v14 = vadd.f32 %v561_v49, %v528_v55 }
 0x180   :  { %v4802_v28 = vpop.permute.xlu1 %704  ;;  %v4804_v51 = vpop.permute.xlu0 %957  ;;  %v611_v30 = vadd.f32 %v599_v1, %v571_v61  ;;  %v683_v47 = vsel %vm678_vm9, %v680_v23, %v682_v35  ;;  %v749_v55 = vmul.f32 %v3948_v20, %v4800_v4  ;;  %v750_v49 = vmul.f32 %v3949_v33, %v4800_v4 }
 0x181   :  { %v2085_v2 = vrot.slane %v2084_v3, 2  ;;  %6104 = vst [vmem:[#allocation38_spill] sm:$0xff] %v4802_v28  ;;  %v642_v58 = vsel %vm637_vm8, %v639_v45, %v641_v62  ;;  %v707_v39 = vmul.f32 %v3950_v13, %v4802_v28 }
 0x182   :  { %v762_v9 = vrot.slane %v749_v55, 6  ;;  %v764_v44 = vrot.slane %v750_v49, 6 }
 0x183   :  { %v2086_v7 = vadd.f32 %v2085_v2, %v2084_v3  ;;  %v708_v3 = vmul.f32 %v3948_v20, %v4802_v28  ;;  %v709_v2 = vmul.f32 %v3949_v33, %v4802_v28  ;;  %v720_v24 = vrot.slane %v707_v39, 5 }
 0x184   :  { %v4806_v6 = vpop.permute.xlu1 %955  ;;  %v4810_v5 = vpop.permute.xlu0 %1005 }
 0x185   :  { %v2087_v15 = vrot.slane %v2086_v7, 1  ;;  %v721_v36 = vrot.slane %v708_v3, 5  ;;  %v723_v17 = vrot.slane %v709_v2, 5 }
 0x187   :  { %v2088_v12 = vadd.f32 %v2087_v15, %v2086_v7  ;;  %v638_v7 = vrot.slane %v625_v21, 3  ;;  %v679_v21 = vrot.slane %v666_v46, 4  ;;  %v724_v54 = vsel %vm719_vm10, %v721_v36, %v723_v17 }
 0x188   :  { %v4812_v50 = vpop.permute.xlu1 %1003  ;;  %v4820_v53 = vpop.permute.xlu0 %1053  ;;  %v722_v20 = vsel %vm719_vm10, %v720_v24, %v721_v36 }
 0x189   :  { %2090 = vrot.lane.b32.xlu1 %v2088_v12, %s4004_s27  ;;  %v612_v12 = vadd.f32 %v601_v8, %v572_v14  ;;  %v640_v40 = vsel %vm637_vm8, %v638_v7, %v639_v45  ;;  %v681_v45 = vsel %vm678_vm9, %v679_v21, %v680_v23  ;;  %v748_v14 = vmul.f32 %v3950_v13, %v4800_v4 }
 0x18a   :  { %v652_v8 = vadd.f32 %v640_v40, %v611_v30  ;;  %v765_v7 = vsel %vm760_vm11, %v762_v9, %v764_v44 }
 0x18b   :  { %v653_v22 = vadd.f32 %v642_v58, %v612_v12  ;;  %v761_v12 = vrot.slane %v748_v14, 6 }
 0x18c   :  { %v4822_v57 = vpop.permute.xlu1 %1051  ;;  %v1102_v25 = vpop.permute.xlu0 %1101  ;;  %v693_v3 = vadd.f32 %v681_v45, %v652_v8 }
 0x18d   :  { %v694_v19 = vadd.f32 %v683_v47, %v653_v22  ;;  %v763_v46 = vsel %vm760_vm11, %v761_v12, %v762_v9 }
 0x18e   :  { %v734_v1 = vadd.f32 %v722_v20, %v693_v3 }
 0x18f   :  { %v735_v58 = vadd.f32 %v724_v54, %v694_v19 }
 0x190   :  { %v1100_v15 = vpop.permute.xlu1 %1099  ;;  %v1150_v62 = vpop.permute.xlu0 %1149  ;;  %v775_v23 = vadd.f32 %v763_v46, %v734_v1 }
 0x191   :  { %v776_v35 = vadd.f32 %v765_v7, %v735_v58 }
 0x192   :  { %v967_v13 = vadd.f32 %v4806_v6, %v775_v23 }
 0x193   :  { %v968_v17 = vadd.f32 %v4804_v51, %v776_v35 }
 0x194   :  { %v1148_v41 = vpop.permute.xlu1 %1147  ;;  %v1198_v2 = vpop.permute.xlu0 %1197  ;;  %v1015_v30 = vadd.f32 %v4812_v50, %v967_v13 }
 0x195   :  { %v1016_v40 = vadd.f32 %v4810_v5, %v968_v17 }
 0x196   :  { %v1063_v21 = vadd.f32 %v4822_v57, %v1015_v30  ;;  %v2113_v30 = vld [vmem:[%s5988_s3 + $0x28] sm:$0xff] }
 0x197   :  { %v1064_v47 = vadd.f32 %v4820_v53, %v1016_v40 }
 0x198   :  { %v1196_v33 = vpop.permute.xlu1 %1195  ;;  %v1246_v61 = vpop.permute.xlu0 %1245  ;;  %v1111_v8 = vadd.f32 %v1100_v15, %v1063_v21  ;;  %v2111_v21 = vld [vmem:[%s5988_s3 + $0x18] sm:$0xff] }
 0x199   :  { %v1112_v19 = vadd.f32 %v1102_v25, %v1064_v47 }
 0x19a   :  { %v1159_v9 = vadd.f32 %v1148_v41, %v1111_v8  ;;  %v2110_v8 = vld [vmem:[%s5988_s3 + $0x10] sm:$0xff] }
 0x19b   :  { %v1160_v54 = vadd.f32 %v1150_v62, %v1112_v19 }
 0x19c   :  { %v1244_v22 = vpop.permute.xlu1 %1243  ;;  %v1438_v39 = vpop.permute.xlu0 %1437  ;;  %v1207_v6 = vadd.f32 %v1196_v33, %v1159_v9 }
 0x19d   :  { %v1208_v44 = vadd.f32 %v1198_v2, %v1160_v54  ;;  %v2109_v54 = vld [vmem:[%s5988_s3 + $0x8] sm:$0xff] }
 0x19e   :  { %v1255_v5 = vadd.f32 %v1244_v22, %v1207_v6 }
 0x19f   :  { %v1256_v45 = vadd.f32 %v1246_v61, %v1208_v44 }
 0x1a0   :  { %v1436_v36 = vpop.permute.xlu1 %1435  ;;  %v1486_v55 = vpop.permute.xlu0 %1485 }
 0x1a1   :  { %v1448_v3 = vadd.f32 %v1438_v39, %v1256_v45  ;;  %v1447_v50 = vadd.f32 %v1436_v36, %v1255_v5  ;;  %v2114_v36 = vld [vmem:[%s5988_s3 + $0x30] sm:$0xff] }
 0x1a2   :  { %3794 = vmatpush3.msra.mxu0 %v2114_v36  ;;  %v6111_v36 = vld [vmem:[#allocation12_spill] sm:$0xff] }
 0x1a3   :  { %v1496_v20 = vadd.f32 %v1486_v55, %v1448_v3  ;;  %3795 = vmatprep.subr.mxu0 %v6101_v26  ;;  %v2112_v55 = vld [vmem:[%s5988_s3 + $0x20] sm:$0xff] }
 0x1a4   :  { %v1484_v49 = vpop.permute.xlu1 %1483  ;;  %v1534_v24 = vpop.permute.xlu0 %1533  ;;  %3796 = vmatpush3.msra.mxu0 %v2113_v30 }
 0x1a5   :  { %v1495_v53 = vadd.f32 %v1484_v49, %v1447_v50  ;;  %v1544_v35 = vadd.f32 %v1534_v24, %v1496_v20  ;;  %3797 = vmatprep.subr.mxu0 %v6101_v26  ;;  %v69_v20 = vld [vmem:[%s5985_s0 + $0x18] sm:$0xff] }
 0x1a6   :  { %3798 = vmatpush3.msra.mxu0 %v2112_v55 }
 0x1a7   :  { %3799 = vmatprep.subr.mxu0 %v6101_v26 }
 0x1a8   :  { %v1532_v51 = vpop.permute.xlu1 %1531  ;;  %v1582_v14 = vpop.permute.xlu0 %1581  ;;  %3800 = vmatpush3.msra.mxu0 %v2111_v21 }
 0x1a9   :  { %v1543_v57 = vadd.f32 %v1532_v51, %v1495_v53  ;;  %v1592_v25 = vadd.f32 %v1582_v14, %v1544_v35  ;;  %3801 = vmatprep.subr.mxu0 %v6101_v26  ;;  %v2108_v51 = vld [vmem:[%s5988_s3] sm:$0xff] }
 0x1aa   :  { %3802 = vmatpush3.msra.mxu0 %v2110_v8 }
 0x1ab   :  { %3803 = vmatprep.subr.mxu0 %v6101_v26 }
 0x1ac   :  { %v1580_v58 = vpop.permute.xlu1 %1579  ;;  %3804 = vmatpush3.msra.mxu0 %v2109_v54  ;;  %v6115_v54 = vld [vmem:[#allocation21_spill] sm:$0xff] }
 0x1ad   :  { %v1591_v15 = vadd.f32 %v1580_v58, %v1543_v57  ;;  %3805 = vmatprep.subr.mxu0 %v6101_v26 }
 0x1ae   :  { %3806 = vmatpush3.msra.mxu0 %v2108_v51  ;;  %v6116_v51 = vld [vmem:[#allocation23_spill] sm:$0xff] }
 0x1af   :  { %3835 = vmatprep.subr.mxu0 %v6101_v26 }
 0x1d0   :  { %v1628_v7 = vpop.permute.xlu1 %1627  ;;  %v1630_v12 = vpop.permute.xlu0 %1629 }
 0x1d1   :  { %v1639_v46 = vadd.f32 %v1628_v7, %v1591_v15  ;;  %v1640_v41 = vadd.f32 %v1630_v12, %v1592_v25 }
 0x1d8   :  { %v1676_v62 = vpop.permute.xlu1 %1675  ;;  %v1678_v1 = vpop.permute.xlu0 %1677 }
 0x1d9   :  { %v1687_v2 = vadd.f32 %v1676_v62, %v1639_v46  ;;  %v1688_v33 = vadd.f32 %v1678_v1, %v1640_v41  ;;  %v6127_v46 = vld [vmem:[#allocation25_spill] sm:$0xff] }
 0x1e0   :  { %v1724_v61 = vpop.permute.xlu1 %1723  ;;  %v1726_v22 = vpop.permute.xlu0 %1725 }
 0x1e1   :  { %v4854_v17 = vadd.f32 %v1724_v61, %v1687_v2  ;;  %v4856_v23 = vadd.f32 %v1726_v22, %v1688_v33 }
 0x1e3   :  { %6105 = vst [vmem:[#allocation39_spill] sm:$0xff] %v4854_v17  ;;  %6106 = vst [vmem:[#allocation40_spill] sm:$0xff] %v4856_v23  ;;  %v2060_v13 = vsel %vm2059_vm13, %v4854_v17, 0.0  ;;  %v2061_v40 = vsel %vm2059_vm13, %v4856_v23, 0.0  ;;  %v6130_v23 = vld [vmem:[#allocation11_spill] sm:$0xff]  ;;  %v6132_v17 = vld [vmem:[#allocation29_spill] sm:$0xff] }
 0x1e4   :  { %v2105_v39 = vpop.permute.xlu0 %2104  ;;  %v2062_v47 = vadd.f32 %v2061_v40, %v2060_v13  ;;  %v6110_v40 = vld [vmem:[#allocation10_spill] sm:$0xff] }
 0x1e6   :  { %v2063_v19 = vrot.slane %v2062_v47, 4 }
 0x1e8   :  { %v79_v49 = vpop.permute.xlu0 %78  ;;  %v2064_v24 = vadd.f32 %v2063_v19, %v2062_v47  ;;  %v6112_v47 = vld [vmem:[#allocation16_spill] sm:$0xff]  ;;  %v6114_v19 = vld [vmem:[#allocation19_spill] sm:$0xff] }
 0x1e9   :  { %89 = vst.msk [vmem:[#allocation2 + $0x1b] sm:$0xff] %vm86_vm5, %v79_v49  ;;  %v6113_v49 = vld [vmem:[#allocation17_spill] sm:$0xff] }
 0x1ea   :  { %v2065_v6 = vrot.slane %v2064_v24, 2 }
 0x1ec   :  { %v2066_v45 = vadd.f32 %v2065_v6, %v2064_v24  ;;  %v6117_v6 = vld [vmem:[#allocation9_spill] sm:$0xff] }
 0x1ee   :  { %v2067_v5 = vrot.slane %v2066_v45, 1 }
 0x1f0   :  { %v4893_v9 = vld [vmem:[#allocation2 + $0x18] sm:$0xff]  ;;  %v2068_v14 = vadd.f32 %v2067_v5, %v2066_v45 }
 0x1f1   :  { %6107 = vst [vmem:[#allocation41_spill] sm:$0xff] %v4893_v9  ;;  %v215_v44 = vmul.f32 %v4210_v34, %v4893_v9  ;;  %v4907_v53 = vmul.f32 %v4785_v59, %v4893_v9  ;;  %v4911_v7 = vmul.f32 %v4613_v0, %v4893_v9  ;;  %v4915_v35 = vmul.f32 %v4646_v18, %v4893_v9  ;;  %v6119_v5 = vld [vmem:[#allocation22_spill] sm:$0xff] }
 0x1f2   :  { %v4920_v57 = vmul.f32 %v4207_v32, %v4893_v9  ;;  %v4924_v25 = vmul.f32 %v4217_v38, %v4893_v9  ;;  %v4928_v15 = vmul.f32 %v4215_v37, %v4893_v9  ;;  %v4934_v0 = vmul.f32 %v4787_v63, %v4893_v9 }
 0x1f3   :  { %230 = vrot.lane.b32.xlu0 %v215_v44, %s4008_s22  ;;  %6108 = vst [vmem:[#allocation42_spill] sm:$0xff] %v4915_v35  ;;  %v4938_v18 = vmul.f32 %v4789_v29, %v4893_v9  ;;  %v562_v62 = vrot.slane %v4907_v53, 1  ;;  %v4943_v1 = vmul.f32 %v4641_v16, %v4893_v9  ;;  %v4948_v2 = vmul.f32 %v4228_v43, %v4893_v9  ;;  %v6128_v53 = vld [vmem:[#allocation27_spill] sm:$0xff] }
 0x1f4   :  { %v275_v61 = vrot.slane %v4920_v57, 1  ;;  %v4956_v13 = vmul.f32 %v4226_v42, %v4893_v9  ;;  %v4965_v30 = vmul.f32 %v6111_v36, %v4893_v9  ;;  %v4969_v55 = vmul.f32 %v6112_v47, %v4893_v9 }
 0x1f5   :  { %6109 = vst [vmem:[#allocation43_spill] sm:$0xff] %v4943_v1  ;;  %v4973_v21 = vmul.f32 %v6113_v49, %v4893_v9  ;;  %v4977_v8 = vmul.f32 %v6114_v19, %v4893_v9  ;;  %v4981_v24 = vmul.f32 %v6115_v54, %v4893_v9  ;;  %v4985_v44 = vmul.f32 %v6116_v51, %v4893_v9 }
 0x1f6   :  { %v4989_v45 = vmul.f32 %v6117_v6, %v4893_v9  ;;  %v5014_v16 = vmul.f32 %v6127_v46, %v4893_v9  ;;  %v5021_v10 = vmul.f32 %v6128_v53, %v4893_v9  ;;  %v5033_v22 = vmul.f32 %v6130_v23, %v4893_v9 }
 0x1f7   :  { %v5049_v53 = vmul.f32 %v6132_v17, %v4893_v9 }
 0x1f8   :  { %6118 = vst [vmem:[#allocation10_spill] sm:$0xff] %v4989_v45  ;;  %6129 = vst [vmem:[#allocation19_spill] sm:$0xff] %v5021_v10 }
 0x1f9   :  { %6131 = vst [vmem:[#allocation21_spill] sm:$0xff] %v5033_v22 }
 0x1fb   :  { %v2091_v58 = vpop.permute.xlu1 %2090 }
 0x1fc   :  { %v2093_v3 = vadd.f32 %v2091_v58, %v2068_v14  ;;  %v4993_v14 = vmul.f32 %v6119_v5, %v4893_v9  ;;  %v6120_v58 = vld [vmem:[#allocation24_spill] sm:$0xff] }
 0x1fe   :  { %v2107_v50 = vadd.f32 %v2105_v39, %v2093_v3  ;;  %v4961_v39 = vmul.f32 %v6110_v40, %v4893_v9  ;;  %v4997_v3 = vmul.f32 %v6120_v58, %v4893_v9 }
 0x200   :  { %2117 = vrot.lane.b32.xlu1 %v2107_v50, %s4009_s23  ;;  %6121 = vst [vmem:[#allocation12_spill] sm:$0xff] %v4997_v3  ;;  %v6122_v50 = vld [vmem:[#allocation26_spill] sm:$0xff] }
 0x204   :  { %80 = vrot.lane.b32.xlu1 %v69_v20, %s4003_s18  ;;  %v5001_v20 = vmul.f32 %v6122_v50, %v4893_v9 }
 0x206   :  { %6123 = vst [vmem:[#allocation16_spill] sm:$0xff] %v5001_v20  ;;  %v5053_v20 = vmul.f32 %v6133_v60, %v4893_v9 }
 0x272   :  { %v2118_v12 = vpop.permute.xlu1 %2117 }
 0x273   :  { %3808 = vmatmul.mubr.msk.f32.vlgmr.msra.gmra.mxu0 %vm2079_vm12, %v2118_v12  ;;  %v6124_v12 = vld [vmem:[#allocation14_spill] sm:$0xff] }
 0x274   :  { %3837 = vmatprep.mubr.msk.f32.mxu0 %vm4014_vm14, %v6101_v26  ;;  %v5006_v57 = vmul.f32 %v6124_v12, %v4893_v9 }
 0x276   :  { %v81_v41 = vpop.permute.xlu1 %80  ;;  %6125 = vst [vmem:[#allocation17_spill] sm:$0xff] %v5006_v57 }
 0x277   :  { %90 = vst.msk [vmem:[#allocation2 + $0x23] sm:$0xff] %vm86_vm5, %v81_v41  ;;  %v6126_v41 = vld [vmem:[#allocation28_spill] sm:$0xff] }
 0x278   :  { %v5010_v33 = vmul.f32 %v6126_v41, %v4893_v9 }
 0x27e   :  { %v5027_v45 = vld [vmem:[#allocation2 + $0x20] sm:$0xff]  ;;  %v5029_v46 = vld [vmem:[#allocation2 + $0x28] sm:$0x3f] }
 0x27f   :  { %v549_v52 = vmul.f32 %v4785_v59, %v5027_v45  ;;  %v550_v57 = vmul.f32 %v4785_v59, %v5029_v46  ;;  %v217_v1 = vmul.f32 %v4210_v34, %v5029_v46  ;;  %v216_v59 = vmul.f32 %v4210_v34, %v5027_v45 }
 0x280   :  { %v262_v41 = vmul.f32 %v4207_v32, %v5027_v45  ;;  %v530_v26 = vmul.f32 %v4787_v63, %v5027_v45  ;;  %v263_v22 = vmul.f32 %v4207_v32, %v5029_v46  ;;  %v318_v10 = vmul.f32 %v4217_v38, %v5027_v45 }
 0x281   :  { %v563_v3 = vrot.slane %v549_v52, 1  ;;  %v565_v35 = vrot.slane %v550_v57, 1  ;;  %234 = vrot.lane.b32.xlu0 %v217_v1, %s4008_s22  ;;  %v5068_v52 = vmul.f32 %v4718_v56, %v4893_v9  ;;  %232 = vrot.lane.b32.xlu1 %v216_v59, %s4008_s22  ;;  %v5075_v63 = vmul.f32 %v4735_v11, %v4893_v9 }
 0x282   :  { %v276_v60 = vrot.slane %v262_v41, 1  ;;  %v278_v1 = vrot.slane %v263_v22, 1  ;;  %v5084_v56 = vmul.f32 %v4752_v31, %v4893_v9  ;;  %v5093_v22 = vmul.f32 %v4797_v27, %v4893_v9 }
 0x283   :  { %v564_v34 = vsel %vm136_vm6, %v562_v62, %v563_v3  ;;  %v566_v57 = vsel %vm136_vm6, %v563_v3, %v565_v35  ;;  %v319_v35 = vmul.f32 %v4217_v38, %v5029_v46  ;;  %v420_v62 = vmul.f32 %v4215_v37, %v5027_v45 }
 0x284   :  { %v5078_v32 = vadd.f32 %v564_v34, %v4934_v0  ;;  %v5080_v17 = vadd.f32 %v566_v57, %v530_v26  ;;  %v277_v59 = vsel %vm136_vm6, %v275_v61, %v276_v60  ;;  %v279_v0 = vsel %vm136_vm6, %v276_v60, %v278_v1 }
 0x285   :  { %v332_v26 = vrot.slane %v318_v10, 2  ;;  %v5098_v3 = vmul.f32 %v4795_v48, %v4893_v9  ;;  %v5102_v61 = vmul.f32 %v4802_v28, %v4893_v9  ;;  %288 = vrot.lane.b32.xlu0 %v279_v0, %s4008_s22  ;;  %286 = vrot.lane.b32.xlu1 %v277_v59, %s4008_s22  ;;  %v5108_v38 = vmul.f32 %v4215_v37, %v5029_v46 }
 0x286   :  { %6134 = vst [vmem:[#allocation23_spill] sm:$0xff] %v5080_v17  ;;  %v5114_v10 = vmul.f32 %v4800_v4, %v4893_v9  ;;  %v476_v34 = vmul.f32 %v4226_v42, %v5027_v45  ;;  %v334_v17 = vrot.slane %v319_v35, 2  ;;  %v434_v37 = vrot.slane %v420_v62, 1 }
 0x287   :  { %6135 = vst [vmem:[#allocation9_spill] sm:$0xff] %v5102_v61  ;;  %v5123_v41 = vmul.f32 %v4226_v42, %v5029_v46  ;;  %v6137_v9 = vrot.slane %v4924_v25, 2  ;;  %v5134_v35 = vmul.f32 %v4789_v29, %v5027_v45  ;;  %v5138_v42 = vmul.f32 %v4789_v29, %v5029_v46 }
 0x288   :  { %6136 = vst [vmem:[#allocation22_spill] sm:$0xff] %v5114_v10  ;;  %v5146_v62 = vmul.f32 %v4797_v27, %v5027_v45  ;;  %v5150_v0 = vmul.f32 %v4795_v48, %v5027_v45  ;;  %v374_v29 = vmul.f32 %v4228_v43, %v5027_v45  ;;  %v490_v60 = vrot.slane %v476_v34, 2 }
 0x289   :  { %v333_v4 = vsel %vm179_vm7, %v6137_v9, %v332_v26  ;;  %290 = vrot.lane.b32.xlu1 %v278_v1, %s4008_s22  ;;  %v6138_v1 = vrot.slane %v4928_v15, 1  ;;  %v375_v25 = vmul.f32 %v4228_v43, %v5029_v46  ;;  %v5163_v59 = vmul.f32 %v6117_v6, %v5029_v46 }
 0x28a   :  { %342 = vrot.lane.b32.xlu0 %v333_v4, %s4008_s22  ;;  %v335_v4 = vsel %vm179_vm7, %v332_v26, %v334_v17  ;;  %v5167_v9 = vmul.f32 %v6117_v6, %v5027_v45  ;;  %v5171_v26 = vmul.f32 %v6110_v40, %v5027_v45  ;;  %v5175_v15 = vmul.f32 %v6110_v40, %v5029_v46 }
 0x28b   :  { %v435_v57 = vsel %vm136_vm6, %v6138_v1, %v434_v37  ;;  %v6139_v43 = vrot.slane %v5108_v38, 1  ;;  %v5184_v6 = vmul.f32 %v6111_v36, %v5027_v45  ;;  %v1799_v1 = vmul.f32 %v6112_v47, %v5027_v45 }
 0x28c   :  { %v6140_v40 = vrot.slane %v4956_v13, 2  ;;  %v1957_v61 = vmul.f32 %v6114_v19, %v5027_v45 }
 0x28d   :  { %344 = vrot.lane.b32.xlu1 %v335_v4, %s4008_s22  ;;  %v437_v34 = vsel %vm136_vm6, %v434_v37, %v6139_v43  ;;  %v5200_v37 = vmul.f32 %v6124_v12, %v5027_v45  ;;  %v5204_v4 = vmul.f32 %v6112_v47, %v5029_v46  ;;  %v6142_v43 = vrot.slane %v5123_v41, 2 }
 0x28e   :  { %346 = vrot.lane.b32.xlu0 %v334_v17, %s4008_s22  ;;  %v5192_v10 = vsel %vm179_vm7, %v6140_v40, %v490_v60  ;;  %v5196_v17 = vmul.f32 %v6111_v36, %v5029_v46  ;;  %v1813_v13 = vrot.slane %v1799_v1, 1  ;;  %v1855_v40 = vmul.f32 %v6113_v49, %v5027_v45 }
 0x28f   :  { %6141 = vst [vmem:[#allocation24_spill] sm:$0xff] %v5200_v37  ;;  %v5209_v28 = vsel %vm179_vm7, %v490_v60, %v6142_v43  ;;  %v5215_v36 = vmul.f32 %v6113_v49, %v5029_v46  ;;  %v853_v12 = vrot.slane %v5171_v26, 1  ;;  %v6065_v47 = vrot.slane %v5204_v4, 1 }
 0x290   :  { %v6143_v1 = vrot.slane %v4969_v55, 1  ;;  %v1869_v26 = vrot.slane %v1855_v40, 2  ;;  %v1971_v48 = vrot.slane %v1957_v61, 1  ;;  %v6145_v55 = vrot.slane %v4973_v21, 2 }
 0x291   :  { %388 = vrot.lane.b32.xlu1 %v4948_v2, %s4009_s23  ;;  %v6066_v43 = vrot.slane %v5215_v36, 2  ;;  %v5235_v37 = vsel %vm136_vm6, %v1813_v13, %v6065_v47  ;;  %v2013_v2 = vmul.f32 %v6115_v54, %v5027_v45  ;;  %v5255_v61 = vmul.f32 %v6115_v54, %v5029_v46 }
 0x292   :  { %390 = vrot.lane.b32.xlu0 %v374_v29, %s4009_s23  ;;  %v5229_v49 = vsel %vm136_vm6, %v6143_v1, %v1813_v13  ;;  %v5239_v29 = vmul.f32 %v6114_v19, %v5029_v46  ;;  %v5246_v1 = vsel %vm179_vm7, %v6145_v55, %v1869_v26  ;;  %v985_v19 = vmul.f32 %v6116_v51, %v5027_v45 }
 0x293   :  { %v5251_v40 = vsel %vm179_vm7, %v1869_v26, %v6066_v43  ;;  %6147 = vst [vmem:[#allocation44_spill] sm:$0xff] %v5255_v61  ;;  %v5261_v13 = vmul.f32 %v6130_v23, %v5027_v45  ;;  %v6148_v21 = vrot.slane %v4977_v8, 1  ;;  %v2027_v26 = vrot.slane %v2013_v2, 2 }
 0x294   :  { %6144 = vst [vmem:[#allocation26_spill] sm:$0xff] %v5239_v29  ;;  %6146 = vst [vmem:[#allocation11_spill] sm:$0xff] %v5251_v40  ;;  %v6067_v47 = vrot.slane %v5239_v29, 1  ;;  %v6069_v54 = vrot.slane %v5255_v61, 2  ;;  %v999_v43 = vrot.slane %v985_v19, 1  ;;  %v1033_v60 = vmul.f32 %v6119_v5, %v5027_v45 }
 0x295   :  { %v5266_v55 = vsel %vm136_vm6, %v6148_v21, %v1971_v48  ;;  %392 = vrot.lane.b32.xlu1 %v375_v25, %s4009_s23  ;;  %v986_v40 = vmul.f32 %v6116_v51, %v5029_v46  ;;  %v6149_v8 = vrot.slane %v5175_v15, 1  ;;  %v6151_v25 = vrot.slane %v4981_v24, 2  ;;  %v3951_v19 = vld [vmem:[%s5986_s1 + $0x7] ss:$0 sm:$0xff] }
 0x296   :  { %444 = vrot.lane.b32.xlu0 %v435_v57, %s4009_s23  ;;  %v5284_v57 = vsel %vm136_vm6, %v1971_v48, %v6067_v47  ;;  %v5295_v51 = vmul.f32 %v3951_v19, %v5029_v46  ;;  %v6154_v48 = vrot.slane %v4985_v44, 1  ;;  %v1047_v24 = vrot.slane %v1033_v60, 2 }
 0x297   :  { %v5279_v21 = vsel %vm136_vm6, %v853_v12, %v6149_v8  ;;  %6150 = vst [vmem:[#allocation45_spill] sm:$0xff] %v5284_v57  ;;  %v5289_v2 = vsel %vm179_vm7, %v6151_v25, %v2027_v26  ;;  %v5300_v8 = vsel %vm179_vm7, %v2027_v26, %v6069_v54  ;;  %v1001_v25 = vrot.slane %v986_v40, 1  ;;  %v3952_v57 = vld [vmem:[%s5986_s1 + $0xe] ss:$0 sm:$0xff]  ;;  %v5317_v26 = vld [vmem:[%s5986_s1] ss:$0 sm:$0xff] }
 0x298   :  { %6152 = vst [vmem:[#allocation46_spill] sm:$0xff] %v5289_v2  ;;  %6153 = vst [vmem:[#allocation47_spill] sm:$0xff] %v5295_v51  ;;  %v5305_v47 = vsel %vm136_vm6, %v6154_v48, %v999_v43  ;;  %v5312_v29 = vmul.f32 %v3952_v57, %v5029_v46  ;;  %v108_v44 = vmul.f32 %v5317_v26, %v5027_v45  ;;  %v6157_v40 = vrot.slane %v5108_v38, 1 }
 0x299   :  { %6155 = vst [vmem:[#allocation48_spill] sm:$0xff] %v5305_v47  ;;  %6156 = vst [vmem:[#allocation49_spill] sm:$0xff] %v5317_v26  ;;  %v128_v60 = vmul.f32 %v3951_v19, %v5027_v45  ;;  %446 = vrot.lane.b32.xlu1 %v437_v34, %s4009_s23  ;;  %v6158_v54 = vrot.slane %v4993_v14, 2  ;;  %v5333_v47 = vsel %vm136_vm6, %v999_v43, %v1001_v25  ;;  %v6161_v19 = vrot.slane %v4961_v39, 1 }
 0x29a   :  { %448 = vrot.lane.b32.xlu0 %v6157_v40, %s4009_s23  ;;  %6160 = vst [vmem:[#allocation51_spill] sm:$0xff] %v5333_v47  ;;  %v171_v61 = vmul.f32 %v3952_v57, %v5027_v45  ;;  %v6073_v38 = vrot.slane %v5312_v29, 2  ;;  %v1081_v40 = vmul.f32 %v6120_v58, %v5027_v45  ;;  %v1129_v43 = vmul.f32 %v6122_v50, %v5027_v45 }
 0x29b   :  { %v5330_v2 = vsel %vm179_vm7, %v6158_v54, %v1047_v24  ;;  %v5339_v26 = vsel %vm136_vm6, %v6161_v19, %v853_v12  ;;  %v143_v34 = vrot.slane %v128_v60, 1  ;;  %v1034_v54 = vmul.f32 %v6119_v5, %v5029_v46 }
 0x29c   :  { %6159 = vst [vmem:[#allocation50_spill] sm:$0xff] %v5330_v2  ;;  %v186_v14 = vrot.slane %v171_v61, 2  ;;  %v1082_v57 = vmul.f32 %v6120_v58, %v5029_v46  ;;  %v6162_v39 = vrot.slane %v5184_v6, 2  ;;  %v6163_v12 = vrot.slane %v4965_v30, 2 }
 0x29d   :  { %v6164_v60 = vrot.slane %v5295_v51, 1  ;;  %v6165_v19 = vrot.slane %v4911_v7, 1  ;;  %v1095_v48 = vrot.slane %v1081_v40, 3  ;;  %500 = vrot.lane.b32.xlu1 %v5192_v10, %s4009_s23  ;;  %v1049_v47 = vrot.slane %v1034_v54, 2  ;;  %v6168_v7 = vld [vmem:[#allocation12_spill] sm:$0xff]  ;;  %v6170_v40 = vld [vmem:[#allocation43_spill] sm:$0xff] }
 0x29e   :  { %v5355_v25 = vsel %vm179_vm7, %v6163_v12, %v6162_v39  ;;  %502 = vrot.lane.b32.xlu0 %v5209_v28, %s4009_s23  ;;  %v189_v30 = vsel %vm179_vm7, %v186_v14, %v6073_v38  ;;  %v6166_v39 = vld [vmem:[#allocation42_spill] sm:$0xff]  ;;  %v6169_v2 = vrot.slane %v6168_v7, 3  ;;  %v1097_v51 = vrot.slane %v1082_v57, 3  ;;  %v6174_v57 = vld [vmem:[#allocation25_spill] sm:$0xff] }
 0x29f   :  { %v146_v61 = vsel %vm136_vm6, %v143_v34, %v6164_v60  ;;  %v144_v5 = vsel %vm136_vm6, %v6165_v19, %v143_v34  ;;  %v6167_v12 = vrot.slane %v6166_v39, 2  ;;  %v1143_v19 = vrot.slane %v1129_v43, 4 }
 0x2a0   :  { %v157_v58 = vadd.f32 %v146_v61, %v108_v44  ;;  %v5376_v34 = vsel %vm637_vm8, %v6169_v2, %v1095_v48  ;;  %v156_v28 = vadd.f32 %v144_v5, %v6170_v40  ;;  %v5382_v44 = vsel %vm179_vm7, %v1047_v24, %v1049_v47  ;;  %v6171_v61 = vld [vmem:[#allocation28_spill] sm:$0xff]  ;;  %v6175_v24 = vld [vmem:[#allocation10_spill] sm:$0xff] }
 0x2a1   :  { %v187_v60 = vsel %vm179_vm7, %v6167_v12, %v186_v14  ;;  %v1177_v39 = vmul.f32 %v6171_v61, %v5027_v45  ;;  %v1130_v14 = vmul.f32 %v6122_v50, %v5029_v46  ;;  %v6172_v12 = vld [vmem:[#allocation16_spill] sm:$0xff]  ;;  %v5396_v43 = vsel %vm637_vm8, %v1095_v48, %v1097_v51 }
 0x2a2   :  { %v5379_v10 = vadd.f32 %v189_v30, %v157_v58  ;;  %v5388_v54 = vadd.f32 %v187_v60, %v156_v28  ;;  %v6173_v2 = vrot.slane %v6172_v12, 4  ;;  %v1225_v47 = vmul.f32 %v6174_v57, %v5027_v45  ;;  %807 = vrot.lane.b32.xlu0 %v6175_v24, %s4010_s24  ;;  %v6179_v12 = vld [vmem:[#allocation27_spill] sm:$0xff] }
 0x2a3   :  { %v6176_v5 = vrot.slane %v5123_v41, 2  ;;  %v1191_v50 = vrot.slane %v1177_v39, 5  ;;  %v1145_v58 = vrot.slane %v1130_v14, 4  ;;  %v1178_v30 = vmul.f32 %v6171_v61, %v5029_v46 }
 0x2a4   :  { %v5393_v7 = vsel %vm678_vm9, %v6173_v2, %v1143_v19  ;;  %v1226_v60 = vmul.f32 %v6174_v57, %v5029_v46  ;;  %v6177_v51 = vrot.slane %v5196_v17, 2  ;;  %v6178_v48 = vrot.slane %v5184_v6, 2 }
 0x2a5   :  { %504 = vrot.lane.b32.xlu1 %v6176_v5, %s4009_s23  ;;  %v1239_v28 = vrot.slane %v1225_v47, 6  ;;  %v1465_v41 = vmul.f32 %v6179_v12, %v5027_v45  ;;  %v644_v39 = vrot.slane %v5146_v62, 3  ;;  %v6180_v14 = vrot.slane %v5010_v33, 5  ;;  %v6209_v62 = vld [vmem:[#allocation24_spill] sm:$0xff] }
 0x2a6   :  { %v5414_v40 = vsel %vm179_vm7, %v6178_v48, %v6177_v51  ;;  %v5425_v2 = vsel %vm678_vm9, %v1143_v19, %v1145_v58  ;;  %v1193_v57 = vrot.slane %v1178_v30, 5  ;;  %v1241_v24 = vrot.slane %v1226_v60, 6  ;;  %v6182_v51 = vld [vmem:[#allocation29_spill] sm:$0xff]  ;;  %811 = vrot.lane.b32.xlu0 %v5163_v59, %s4010_s24  ;;  %v6183_v58 = vld [vmem:[#allocation31_spill] sm:$0xff] }
 0x2a7   :  { %v5422_v61 = vsel %vm719_vm10, %v6180_v14, %v1191_v50  ;;  %v6181_v6 = vrot.slane %v5014_v16, 6  ;;  %v1479_v47 = vrot.slane %v1465_v41, 1  ;;  %v1513_v48 = vmul.f32 %v6182_v51, %v5027_v45  ;;  %v6184_v41 = vld [vmem:[#allocation19_spill] sm:$0xff] }
 0x2a8   :  { %v1466_v33 = vmul.f32 %v6179_v12, %v5029_v46  ;;  %v5441_v19 = vsel %vm719_vm10, %v1191_v50, %v1193_v57  ;;  %v5444_v16 = vsel %vm760_vm11, %v1239_v28, %v1241_v24  ;;  %v1561_v30 = vmul.f32 %v6183_v58, %v5027_v45  ;;  %v6186_v57 = vld [vmem:[#allocation32_spill] sm:$0xff] }
 0x2a9   :  { %v5430_v5 = vsel %vm760_vm11, %v6181_v6, %v1239_v28  ;;  %809 = vrot.lane.b32.xlu1 %v5167_v9, %s4010_s24  ;;  %v6185_v14 = vrot.slane %v6184_v41, 1  ;;  %v1527_v59 = vrot.slane %v1513_v48, 2  ;;  %v1514_v9 = vmul.f32 %v6182_v51, %v5029_v46 }
 0x2aa   :  { %v1481_v6 = vrot.slane %v1466_v33, 1  ;;  %v1575_v50 = vrot.slane %v1561_v30, 3  ;;  %v1609_v28 = vmul.f32 %v6186_v57, %v5027_v45  ;;  %v1562_v24 = vmul.f32 %v6183_v58, %v5029_v46  ;;  %865 = vrot.lane.b32.xlu0 %v5279_v21, %s4010_s24 }
 0x2ab   :  { %v5452_v12 = vsel %vm136_vm6, %v6185_v14, %v1479_v47  ;;  %v1657_v38 = vmul.f32 %v4735_v11, %v5027_v45  ;;  %v6187_v41 = vrot.slane %v5049_v53, 2  ;;  %v1529_v33 = vrot.slane %v1514_v9, 2 }
 0x2ac   :  { %v5468_v48 = vsel %vm136_vm6, %v1479_v47, %v1481_v6  ;;  %v1610_v51 = vmul.f32 %v6186_v57, %v5029_v46  ;;  %v6188_v58 = vrot.slane %v5053_v20, 3  ;;  %v1623_v30 = vrot.slane %v1609_v28, 4 }
 0x2ad   :  { %v5465_v14 = vsel %vm179_vm7, %v6187_v41, %v1527_v59  ;;  %863 = vrot.lane.b32.xlu1 %v5339_v26, %s4010_s24  ;;  %v1577_v41 = vrot.slane %v1562_v24, 3  ;;  %v1671_v60 = vrot.slane %v1657_v38, 5  ;;  %v5482_v47 = vsel %vm179_vm7, %v1527_v59, %v1529_v33 }
 0x2ae   :  { %v5479_v53 = vsel %vm637_vm8, %v6188_v58, %v1575_v50  ;;  %v1625_v6 = vrot.slane %v1610_v51, 4  ;;  %v1705_v9 = vmul.f32 %v4752_v31, %v5027_v45  ;;  %v1658_v21 = vmul.f32 %v4735_v11, %v5029_v46  ;;  %919 = vrot.lane.b32.xlu0 %v5355_v25, %s4010_s24 }
 0x2af   :  { %v6189_v26 = vrot.slane %v5068_v52, 4  ;;  %v5494_v57 = vsel %vm637_vm8, %v1575_v50, %v1577_v41  ;;  %v6190_v38 = vrot.slane %v5075_v63, 5  ;;  %v1706_v28 = vmul.f32 %v4752_v31, %v5029_v46 }
 0x2b0   :  { %v5504_v24 = vsel %vm678_vm9, %v1623_v30, %v1625_v6  ;;  %v1719_v11 = vrot.slane %v1705_v9, 6  ;;  %v1673_v33 = vrot.slane %v1658_v21, 5  ;;  %v6191_v52 = vrot.slane %v5134_v35, 2 }
 0x2b1   :  { %v5491_v20 = vsel %vm678_vm9, %v6189_v26, %v1623_v30  ;;  %v5499_v59 = vsel %vm719_vm10, %v6190_v38, %v1671_v60  ;;  %v6192_v51 = vrot.slane %v4938_v18, 2  ;;  %v6193_v63 = vrot.slane %v5175_v15, 1 }
 0x2b2   :  { %v1721_v58 = vrot.slane %v1706_v28, 6  ;;  %v6194_v30 = vrot.slane %v5093_v22, 3  ;;  %v6195_v18 = vrot.slane %v5150_v0, 4  ;;  %v6196_v6 = vrot.slane %v5098_v3, 4  ;;  %v6199_v22 = vld [vmem:[#allocation37_spill] sm:$0xff] }
 0x2b3   :  { %v604_v50 = vsel %vm179_vm7, %v6192_v51, %v6191_v52  ;;  %867 = vrot.lane.b32.xlu1 %v6193_v63, %s4010_s24  ;;  %v6197_v25 = vrot.slane %v5084_v56, 6  ;;  %v5533_v21 = vsel %vm719_vm10, %v1671_v60, %v1673_v33  ;;  %v752_v38 = vmul.f32 %v6199_v22, %v5027_v45  ;;  %v6200_v60 = vld [vmem:[#allocation36_spill] sm:$0xff] }
 0x2b4   :  { %v613_v31 = vadd.f32 %v604_v50, %v5078_v32  ;;  %v645_v41 = vsel %vm637_vm8, %v6194_v30, %v644_v39  ;;  %v686_v9 = vsel %vm678_vm9, %v6196_v6, %v6195_v18  ;;  %v6198_v32 = vld [vmem:[#allocation38_spill] sm:$0xff]  ;;  %v5540_v28 = vsel %vm760_vm11, %v1719_v11, %v1721_v58 }
 0x2b5   :  { %v5530_v15 = vsel %vm760_vm11, %v6197_v25, %v1719_v11  ;;  %v711_v26 = vmul.f32 %v6198_v32, %v5027_v45  ;;  %v605_v52 = vrot.slane %v5138_v42, 2  ;;  %v630_v56 = vmul.f32 %v4797_v27, %v5029_v46  ;;  %v6205_v25 = vld [vmem:[#allocation22_spill] sm:$0xff] }
 0x2b6   :  { %v654_v3 = vadd.f32 %v645_v41, %v613_v31  ;;  %v767_v50 = vrot.slane %v752_v38, 6  ;;  %v671_v33 = vmul.f32 %v6200_v60, %v5029_v46  ;;  %v712_v63 = vmul.f32 %v6198_v32, %v5029_v46  ;;  %v6203_v41 = vld [vmem:[#allocation9_spill] sm:$0xff]  ;;  %v2192_v60 = vld [vmem:[%s5990_s5] sm:$0xf] }
 0x2b7   :  { %v726_v51 = vrot.slane %v711_v26, 5  ;;  %v6201_v30 = vrot.slane %v5196_v17, 2  ;;  %921 = vrot.lane.b32.xlu1 %v5414_v40, %s4010_s24  ;;  %v6202_v42 = vrot.slane %v5134_v35, 2  ;;  %v646_v58 = vrot.slane %v630_v56, 3  ;;  %v6207_v26 = vld [vmem:[#allocation23_spill] sm:$0xff]  ;;  %3811 = vmatpush3.msk.msra.mxu1 %vm678_vm9, %v2192_v60 }
 0x2b8   :  { %v695_v11 = vadd.f32 %v686_v9, %v654_v3  ;;  %v753_v31 = vmul.f32 %v6199_v22, %v5029_v46  ;;  %v6204_v18 = vrot.slane %v6203_v41, 5  ;;  %v6206_v32 = vrot.slane %v6205_v25, 6  ;;  %v6213_v41 = vld [vmem:[#allocation13_spill] sm:$0xff]  ;;  %v6216_v60 = vld [vmem:[#allocation15_spill] sm:$0xff] }
 0x2b9   :  { %923 = vrot.lane.b32.xlu0 %v6201_v30, %s4010_s24  ;;  %v606_v27 = vsel %vm179_vm7, %v6202_v42, %v605_v52  ;;  %v687_v40 = vrot.slane %v671_v33, 4  ;;  %v647_v35 = vsel %vm637_vm8, %v644_v39, %v646_v58  ;;  %v728_v3 = vrot.slane %v712_v63, 5  ;;  %v6210_v39 = vld [vmem:[#allocation17_spill] sm:$0xff] }
 0x2ba   :  { %v727_v6 = vsel %vm719_vm10, %v6204_v18, %v726_v51  ;;  %v768_v17 = vsel %vm760_vm11, %v6206_v32, %v767_v50  ;;  %v614_v38 = vadd.f32 %v606_v27, %v6207_v26  ;;  %v769_v52 = vrot.slane %v753_v31, 6 }
 0x2bb   :  { %v736_v9 = vadd.f32 %v727_v6, %v695_v11  ;;  %v1333_v22 = vrot.slane %v5261_v13, 1  ;;  %v1320_v56 = vmul.f32 %v6130_v23, %v5029_v46  ;;  %v6208_v42 = vrot.slane %v5150_v0, 4  ;;  %1287 = vrot.lane.b32.xlu1 %v6210_v39, %s4011_s25  ;;  %v6211_v11 = vld [vmem:[#allocation21_spill] sm:$0xff]  ;;  %v6212_v0 = vld [vmem:[#allocation14_spill] sm:$0xff]  ;;  %v6219_v39 = vld [vmem:[#allocation11_spill] sm:$0xff] }
 0x2bc   :  { %v655_v30 = vadd.f32 %v647_v35, %v614_v38  ;;  %v729_v13 = vsel %vm719_vm10, %v726_v51, %v728_v3  ;;  %v770_v23 = vsel %vm760_vm11, %v767_v50, %v769_v52  ;;  %v1332_v27 = vrot.slane %v6211_v11, 1  ;;  %v6224_v11 = vld [vmem:[#allocation46_spill] sm:$0xff] }
 0x2bd   :  { %v688_v33 = vsel %vm678_vm9, %v6208_v42, %v687_v40  ;;  %1289 = vrot.lane.b32.xlu0 %v6209_v62, %s4011_s25  ;;  %v5582_v63 = vadd.f32 %v768_v17, %v736_v9  ;;  %v1274_v31 = vmul.f32 %v6212_v0, %v5029_v46  ;;  %v1375_v18 = vmul.f32 %v6213_v41, %v5027_v45  ;;  %v6215_v17 = vld [vmem:[#allocation41_spill] sm:$0xff] }
 0x2be   :  { %v696_v58 = vadd.f32 %v688_v33, %v655_v30  ;;  %v6214_v6 = vmov 0.0   ;;  %v1334_v25 = vsel %vm136_vm6, %v1332_v27, %v1333_v22  ;;  %v1335_v32 = vrot.slane %v1320_v56, 1  ;;  %v6225_v27 = vld [vmem:[#allocation20_spill] sm:$0xff] }
 0x2bf   :  { %3815 = vmatprep.subr.mxu1 %v6214_v6  ;;  %v1376_v51 = vmul.f32 %v6213_v41, %v5029_v46  ;;  %1291 = vrot.lane.b32.xlu1 %v1274_v31, %s4011_s25  ;;  %v1374_v26 = vmul.f32 %v6213_v41, %v6215_v17  ;;  %v1389_v9 = vrot.slane %v1375_v18, 2  ;;  %v1752_v30 = vmul.f32 %v6216_v60, %v6215_v17  ;;  %v6227_v31 = vld [vmem:[#allocation44_spill] sm:$0xff] }
 0x2c0   :  { %v737_v50 = vadd.f32 %v729_v13, %v696_v58  ;;  %v1336_v40 = vsel %vm136_vm6, %v1333_v22, %v1335_v32  ;;  %v1754_v22 = vmul.f32 %v6216_v60, %v5029_v46  ;;  %v1753_v42 = vmul.f32 %v6216_v60, %v5027_v45  ;;  %v6220_v13 = vld [vmem:[#allocation18_spill] sm:$0xff] }
 0x2c1   :  { %1343 = vrot.lane.b32.xlu0 %v1334_v25, %s4011_s25  ;;  %v1391_v35 = vrot.slane %v1376_v51, 2  ;;  %v1388_v3 = vrot.slane %v1374_v26, 2  ;;  %v6217_v33 = vrot.slane %v5204_v4, 1  ;;  %v6218_v62 = vrot.slane %v5215_v36, 2  ;;  %v6221_v36 = vld [vmem:[#allocation26_spill] sm:$0xff]  ;;  %v6229_v25 = vld [vmem:[#allocation47_spill] sm:$0xff] }
 0x2c2   :  { %v5600_v38 = vadd.f32 %v770_v23, %v737_v50  ;;  %v1912_v4 = vmul.f32 %v6220_v13, %v5029_v46  ;;  %v6223_v23 = vld [vmem:[#allocation45_spill] sm:$0xff]  ;;  %v949_v58 = vmul.f32 %v6225_v27, %v6215_v17  ;;  %v6228_v41 = vrot.slane %v6227_v31, 2  ;;  %v6231_v51 = vld [vmem:[#allocation48_spill] sm:$0xff]  ;;  %v231_v50 = vpop.permute.xlu0 %230 }
 0x2c3   :  { %1345 = vrot.lane.b32.xlu1 %v1336_v40, %s4011_s25  ;;  %v1392_v52 = vsel %vm179_vm7, %v1389_v9, %v1391_v35  ;;  %v1390_v56 = vsel %vm179_vm7, %v1388_v3, %v1389_v9  ;;  %v950_v18 = vmul.f32 %v6225_v27, %v5027_v45  ;;  %v6233_v40 = vld [vmem:[#allocation50_spill] sm:$0xff]  ;;  %v6234_v9 = vld [vmem:[#allocation51_spill] sm:$0xff] }
 0x2c5   :  { %1347 = vrot.lane.b32.xlu0 %v1335_v32, %s4011_s25 }
 0x2c7   :  { %1399 = vrot.lane.b32.xlu1 %v1390_v56, %s4011_s25 }
 0x2c9   :  { %1401 = vrot.lane.b32.xlu0 %v1392_v52, %s4011_s25 }
 0x2cb   :  { %1403 = vrot.lane.b32.xlu1 %v1391_v35, %s4011_s25 }
 0x2cd   :  { %1767 = vrot.lane.b32.xlu0 %v1752_v30, %s4012_s26 }
 0x2cf   :  { %1769 = vrot.lane.b32.xlu1 %v1753_v42, %s4012_s26 }
 0x2d1   :  { %1771 = vrot.lane.b32.xlu0 %v1754_v22, %s4012_s26 }
 0x2d3   :  { %1823 = vrot.lane.b32.xlu1 %v5229_v49, %s4012_s26  ;;  %v1910_v49 = vmul.f32 %v6220_v13, %v6215_v17 }
 0x2d5   :  { %1825 = vrot.lane.b32.xlu0 %v5235_v37, %s4012_s26  ;;  %v1911_v37 = vmul.f32 %v6220_v13, %v5027_v45 }
 0x2d7   :  { %1827 = vrot.lane.b32.xlu1 %v6217_v33, %s4012_s26 }
 0x2d9   :  { %1879 = vrot.lane.b32.xlu0 %v5246_v1, %s4012_s26  ;;  %v6222_v1 = vrot.slane %v6221_v36, 1 }
 0x2db   :  { %1881 = vrot.lane.b32.xlu1 %v6219_v39, %s4012_s26  ;;  %v5718_v39 = vld [vmem:[%s5985_s0 + $0x18] sm:$0xff] }
 0x2dd   :  { %1883 = vrot.lane.b32.xlu0 %v6218_v62, %s4012_s26  ;;  %v6235_v62 = vld [vmem:[#allocation30_spill] sm:$0xff] }
 0x2df   :  { %1925 = vrot.lane.b32.xlu1 %v1910_v49, %s4013_s30 }
 0x2e1   :  { %1927 = vrot.lane.b32.xlu0 %v1911_v37, %s4013_s30  ;;  %v1430_v37 = vmul.f32 %v6235_v62, %v5027_v45 }
 0x2e3   :  { %1929 = vrot.lane.b32.xlu1 %v1912_v4, %s4013_s30 }
 0x2e5   :  { %1981 = vrot.lane.b32.xlu0 %v5266_v55, %s4013_s30  ;;  %v6226_v55 = vld [vmem:[#allocation49_spill] sm:$0xff] }
 0x2e6   :  { %v109_v0 = vmul.f32 %v6226_v55, %v5029_v46  ;;  %v6232_v46 = vrot.slane %v5312_v29, 2  ;;  %v245_v29 = vadd.f32 %v231_v50, %v5388_v54 }
 0x2e7   :  { %1983 = vrot.lane.b32.xlu1 %v6223_v23, %s4013_s30 }
 0x2e9   :  { %1985 = vrot.lane.b32.xlu0 %v6222_v1, %s4013_s30 }
 0x2eb   :  { %2037 = vrot.lane.b32.xlu1 %v6224_v11, %s4013_s30 }
 0x2ed   :  { %2039 = vrot.lane.b32.xlu0 %v5300_v8, %s4013_s30  ;;  %v6230_v8 = vrot.slane %v6229_v25, 1 }
 0x2ef   :  { %2041 = vrot.lane.b32.xlu1 %v6228_v41, %s4013_s30  ;;  %v158_v32 = vadd.f32 %v6230_v8, %v109_v0 }
 0x2f1   :  { %959 = vrot.lane.b32.xlu0 %v949_v58, %s4008_s22  ;;  %v201_v26 = vadd.f32 %v6232_v46, %v158_v32 }
 0x2f3   :  { %961 = vrot.lane.b32.xlu1 %v950_v18, %s4008_s22  ;;  %v235_v35 = vpop.permute.xlu0 %234  ;;  %v233_v52 = vpop.permute.xlu1 %232 }
 0x2f4   :  { %v247_v3 = vadd.f32 %v235_v35, %v201_v26  ;;  %v246_v56 = vadd.f32 %v233_v52, %v5379_v10 }
 0x2f5   :  { %1007 = vrot.lane.b32.xlu0 %v6231_v51, %s4008_s22 }
 0x2f7   :  { %1009 = vrot.lane.b32.xlu1 %v6234_v9, %s4008_s22  ;;  %v289_v60 = vpop.permute.xlu0 %288  ;;  %v287_v30 = vpop.permute.xlu1 %286 }
 0x2f8   :  { %v5680_v22 = vadd.f32 %v289_v60, %v246_v56  ;;  %v5682_v42 = vadd.f32 %v287_v30, %v245_v29 }
 0x2f9   :  { %1055 = vrot.lane.b32.xlu0 %v6233_v40, %s4008_s22 }
 0x2fb   :  { %1057 = vrot.lane.b32.xlu1 %v5382_v44, %s4008_s22 }
 0x2fc   :  { %v5688_v10 = vpop.permute.xlu0 %342 }
 0x2fd   :  { %1103 = vrot.lane.b32.xlu0 %v5376_v34, %s4008_s22  ;;  %v291_v34 = vpop.permute.xlu1 %290  ;;  %v357_v40 = vadd.f32 %v5688_v10, %v5682_v42 }
 0x2fe   :  { %v5690_v33 = vadd.f32 %v291_v34, %v247_v3 }
 0x2ff   :  { %1105 = vrot.lane.b32.xlu1 %v5396_v43, %s4008_s22 }
 0x300   :  { %v5696_v44 = vpop.permute.xlu0 %346 }
 0x301   :  { %1151 = vrot.lane.b32.xlu0 %v5393_v7, %s4008_s22  ;;  %v5698_v54 = vpop.permute.xlu1 %344  ;;  %v359_v29 = vadd.f32 %v5696_v44, %v5690_v33 }
 0x302   :  { %v358_v9 = vadd.f32 %v5698_v54, %v5680_v22 }
 0x303   :  { %1153 = vrot.lane.b32.xlu1 %v5425_v2, %s4008_s22  ;;  %v5713_v2 = vld [vmem:[%s5985_s0 + $0x10] sm:$0xff] }
 0x304   :  { %v5704_v7 = vpop.permute.xlu0 %390 }
 0x305   :  { %1199 = vrot.lane.b32.xlu0 %v5422_v61, %s4008_s22  ;;  %v5706_v43 = vpop.permute.xlu1 %388  ;;  %v1429_v61 = vmul.f32 %v6235_v62, %v6215_v17  ;;  %v404_v52 = vadd.f32 %v5704_v7, %v358_v9 }
 0x306   :  { %v403_v56 = vadd.f32 %v5706_v43, %v357_v40 }
 0x307   :  { %1201 = vrot.lane.b32.xlu1 %v5441_v19, %s4008_s22  ;;  %v2868_v19 = vsel %vm2079_vm12, %v5718_v39, 0.0 }
 0x308   :  { %v445_v17 = vpop.permute.xlu0 %444 }
 0x309   :  { %1247 = vrot.lane.b32.xlu0 %v5430_v5, %s4008_s22  ;;  %v2867_v5 = vsel %vm2079_vm12, %v5713_v2, 0.0  ;;  %v5727_v13 = vpop.permute.xlu1 %392  ;;  %v459_v60 = vadd.f32 %v445_v17, %v403_v56 }
 0x30a   :  { %v2869_v49 = vadd.f32 %v2868_v19, %v2867_v5 }
 0x30b   :  { %1249 = vrot.lane.b32.xlu1 %v5444_v16, %s4008_s22 }
 0x30c   :  { %v449_v4 = vpop.permute.xlu0 %448  ;;  %v2870_v36 = vrot.slane %v2869_v49, 4 }
 0x30d   :  { %1439 = vrot.lane.b32.xlu0 %v1429_v61, %s4009_s23  ;;  %v447_v16 = vpop.permute.xlu1 %446  ;;  %v405_v61 = vadd.f32 %v5727_v13, %v359_v29 }
 0x30e   :  { %v2871_v45 = vadd.f32 %v2870_v36, %v2869_v49  ;;  %v460_v30 = vadd.f32 %v447_v16, %v404_v52 }
 0x30f   :  { %1441 = vrot.lane.b32.xlu1 %v1430_v37, %s4009_s23  ;;  %v461_v10 = vadd.f32 %v449_v4, %v405_v61 }
 0x310   :  { %v503_v1 = vpop.permute.xlu0 %502 }
 0x311   :  { %1487 = vrot.lane.b32.xlu0 %v5452_v12, %s4009_s23  ;;  %v501_v23 = vpop.permute.xlu1 %500  ;;  %v516_v5 = vadd.f32 %v503_v1, %v460_v30 }
 0x312   :  { %v515_v42 = vadd.f32 %v501_v23, %v459_v60 }
 0x313   :  { %1489 = vrot.lane.b32.xlu1 %v5468_v48, %s4009_s23 }
 0x314   :  { %v808_v12 = vpop.permute.xlu0 %807 }
 0x315   :  { %1535 = vrot.lane.b32.xlu0 %v5465_v14, %s4009_s23  ;;  %v2872_v14 = vrot.slane %v2871_v45, 2  ;;  %v822_v19 = vadd.f32 %v808_v12, %v515_v42 }
 0x317   :  { %1537 = vrot.lane.b32.xlu1 %v5482_v47, %s4009_s23  ;;  %v505_v11 = vpop.permute.xlu1 %504 }
 0x318   :  { %v812_v48 = vpop.permute.xlu0 %811  ;;  %v517_v49 = vadd.f32 %v505_v11, %v461_v10 }
 0x319   :  { %1583 = vrot.lane.b32.xlu0 %v5479_v53, %s4009_s23  ;;  %v2873_v53 = vadd.f32 %v2872_v14, %v2871_v45 }
 0x31a   :  { %v824_v43 = vadd.f32 %v812_v48, %v517_v49 }
 0x31b   :  { %1585 = vrot.lane.b32.xlu1 %v5494_v57, %s4009_s23  ;;  %v810_v27 = vpop.permute.xlu1 %809 }
 0x31c   :  { %v866_v47 = vpop.permute.xlu0 %865  ;;  %v823_v22 = vadd.f32 %v810_v27, %v516_v5 }
 0x31d   :  { %1631 = vrot.lane.b32.xlu0 %v5491_v20, %s4009_s23  ;;  %v2874_v20 = vrot.slane %v2873_v53, 1 }
 0x31e   :  { %v879_v7 = vadd.f32 %v866_v47, %v823_v22 }
 0x31f   :  { %1633 = vrot.lane.b32.xlu1 %v5504_v24, %s4009_s23  ;;  %v864_v58 = vpop.permute.xlu1 %863  ;;  %v2875_v0 = vadd.f32 %v2874_v20, %v2873_v53 }
 0x320   :  { %v920_v57 = vpop.permute.xlu0 %919  ;;  %v878_v36 = vadd.f32 %v864_v58, %v822_v19 }
 0x321   :  { %1679 = vrot.lane.b32.xlu0 %v5499_v59, %s4009_s23 }
 0x322   :  { %v934_v45 = vadd.f32 %v920_v57, %v878_v36 }
 0x323   :  { %1681 = vrot.lane.b32.xlu1 %v5533_v21, %s4009_s23 }
 0x325   :  { %1727 = vrot.lane.b32.xlu0 %v5530_v15, %s4009_s23  ;;  %v868_v55 = vpop.permute.xlu1 %867 }
 0x326   :  { %v880_v17 = vadd.f32 %v868_v55, %v824_v43 }
 0x327   :  { %1729 = vrot.lane.b32.xlu1 %v5540_v28, %s4009_s23 }
 0x329   :  { %v922_v31 = vpop.permute.xlu1 %921 }
 0x32a   :  { %v935_v14 = vadd.f32 %v922_v31, %v879_v7 }
 0x32b   :  { %v924_v59 = vpop.permute.xlu0 %923  ;;  %2877 = vrot.lane.b32.xlu1 %v2875_v0, %s4004_s27 }
 0x32c   :  { %v936_v20 = vadd.f32 %v924_v59, %v880_v17 }
 0x32d   :  { %v1288_v41 = vpop.permute.xlu1 %1287 }
 0x32e   :  { %v1302_v53 = vadd.f32 %v1288_v41, %v934_v45 }
 0x32f   :  { %v1290_v24 = vpop.permute.xlu0 %1289 }
 0x330   :  { %v1303_v16 = vadd.f32 %v1290_v24, %v935_v14 }
 0x331   :  { %v1292_v25 = vpop.permute.xlu1 %1291 }
 0x332   :  { %v1304_v12 = vadd.f32 %v1292_v25, %v936_v20 }
 0x333   :  { %v1344_v18 = vpop.permute.xlu0 %1343  ;;  %v2187_v32 = vpop.f32.mrf.mxu0 }
 0x334   :  { %v2191_v21 = vmul.f32 0.00390625, %v2187_v32  ;;  %v1358_v13 = vadd.f32 %v1344_v18, %v1302_v53 }
 0x335   :  { %v1346_v15 = vpop.permute.xlu1 %1345  ;;  %v3809_v46 = vpop.f32.mrf.mxu0 }
 0x336   :  { %3813 = vmatmul.mubr.msk.f32.vlgmr.msra.gmra.mxu1 %vm2194_vm15, %v2191_v21  ;;  %v1359_v1 = vadd.f32 %v1346_v15, %v1303_v16 }
 0x337   :  { %v1348_v8 = vpop.permute.xlu0 %1347  ;;  %3817 = vmatprep.mubr.msk.f32.mxu1 %vm4014_vm14, %v6214_v6 }
 0x338   :  { %v1360_v32 = vadd.f32 %v1348_v8, %v1304_v12 }
 0x339   :  { %v1400_v50 = vpop.permute.xlu1 %1399 }
 0x33a   :  { %v1414_v0 = vadd.f32 %v1400_v50, %v1358_v13 }
 0x33b   :  { %v1402_v51 = vpop.permute.xlu0 %1401 }
 0x33c   :  { %v1415_v27 = vadd.f32 %v1402_v51, %v1359_v1 }
 0x33d   :  { %v1404_v26 = vpop.permute.xlu1 %1403 }
 0x33e   :  { %v1416_v57 = vadd.f32 %v1404_v26, %v1360_v32 }
 0x33f   :  { %v1768_v28 = vpop.permute.xlu0 %1767 }
 0x340   :  { %v1782_v11 = vadd.f32 %v1768_v28, %v1414_v0 }
 0x341   :  { %v1770_v3 = vpop.permute.xlu1 %1769 }
 0x342   :  { %v1783_v47 = vadd.f32 %v1770_v3, %v1415_v27 }
 0x343   :  { %v1772_v35 = vpop.permute.xlu0 %1771 }
 0x344   :  { %v1784_v46 = vadd.f32 %v1772_v35, %v1416_v57 }
 0x345   :  { %v1824_v62 = vpop.permute.xlu1 %1823 }
 0x346   :  { %v1838_v21 = vadd.f32 %v1824_v62, %v1782_v11 }
 0x347   :  { %v1826_v34 = vpop.permute.xlu0 %1825 }
 0x348   :  { %v1839_v31 = vadd.f32 %v1826_v34, %v1783_v47  ;;  %v2298_v47 = vld [vmem:[%s5992_s7] sm:$0x3] }
 0x349   :  { %v1828_v37 = vpop.permute.xlu1 %1827  ;;  %3816 = vmatpush3.msk.msra.mxu1 %vm760_vm11, %v2298_v47 }
 0x34a   :  { %v1840_v18 = vadd.f32 %v1828_v37, %v1784_v46  ;;  %3820 = vmatprep.subr.mxu1 %v6214_v6 }
 0x34b   :  { %v1880_v54 = vpop.permute.xlu0 %1879 }
 0x34c   :  { %v1894_v55 = vadd.f32 %v1880_v54, %v1838_v21 }
 0x34d   :  { %v1882_v44 = vpop.permute.xlu1 %1881 }
 0x34e   :  { %v1895_v24 = vadd.f32 %v1882_v44, %v1839_v31 }
 0x34f   :  { %v1884_v33 = vpop.permute.xlu0 %1883 }
 0x350   :  { %v1896_v9 = vadd.f32 %v1884_v33, %v1840_v18 }
 0x351   :  { %v1926_v4 = vpop.permute.xlu1 %1925 }
 0x352   :  { %v1940_v40 = vadd.f32 %v1926_v4, %v1894_v55 }
 0x353   :  { %v1928_v23 = vpop.permute.xlu0 %1927 }
 0x354   :  { %v1941_v15 = vadd.f32 %v1928_v23, %v1895_v24 }
 0x355   :  { %v1930_v48 = vpop.permute.xlu1 %1929 }
 0x356   :  { %v1942_v28 = vadd.f32 %v1930_v48, %v1896_v9 }
 0x357   :  { %v1982_v58 = vpop.permute.xlu0 %1981 }
 0x358   :  { %v1996_v25 = vadd.f32 %v1982_v58, %v1940_v40  ;;  %v3716_v58 = vld [vmem:[%s5992_s7 + $0x4] sm:$0x3] }
 0x359   :  { %v1984_v59 = vpop.permute.xlu1 %1983  ;;  %3836 = vmatpush3.msk.msra.mxu0 %vm760_vm11, %v3716_v58 }
 0x35a   :  { %v1997_v51 = vadd.f32 %v1984_v59, %v1941_v15  ;;  %3845 = vmatprep.subr.mxu0 %v6214_v6 }
 0x35b   :  { %v1986_v41 = vpop.permute.xlu0 %1985 }
 0x35c   :  { %v1998_v26 = vadd.f32 %v1986_v41, %v1942_v28 }
 0x35d   :  { %v2038_v8 = vpop.permute.xlu1 %2037 }
 0x35e   :  { %v5771_v52 = vadd.f32 %v2038_v8, %v1996_v25 }
 0x35f   :  { %v2040_v50 = vpop.permute.xlu0 %2039 }
 0x360   :  { %v5769_v3 = vadd.f32 %v2040_v50, %v1997_v51  ;;  %v2846_v56 = vrot.slane %v5771_v52, 2 }
 0x361   :  { %v2042_v29 = vpop.permute.xlu1 %2041 }
 0x362   :  { %v2847_v35 = vrot.slane %v5769_v3, 2  ;;  %v5775_v60 = vadd.f32 %v2042_v29, %v1998_v26 }
 0x363   :  { %v960_v36 = vpop.permute.xlu0 %959 }
 0x364   :  { %v2848_v30 = vsel %vm179_vm7, %v2846_v56, %v2847_v35  ;;  %v2849_v34 = vrot.slane %v5775_v60, 2  ;;  %v969_v57 = vadd.f32 %v960_v36, %v5582_v63 }
 0x365   :  { %v2853_v61 = vsel %vm2079_vm12, %v2848_v30, 0.0  ;;  %v962_v7 = vpop.permute.xlu1 %961 }
 0x366   :  { %v2850_v62 = vsel %vm179_vm7, %v2847_v35, %v2849_v34  ;;  %v970_v11 = vadd.f32 %v962_v7, %v5600_v38 }
 0x367   :  { %v2854_v5 = vsel %vm2079_vm12, %v2850_v62, 0.0  ;;  %v1008_v45 = vpop.permute.xlu0 %1007 }
 0x368   :  { %v2855_v42 = vadd.f32 %v2854_v5, %v2853_v61  ;;  %v1017_v38 = vadd.f32 %v1008_v45, %v969_v57 }
 0x369   :  { %v1010_v43 = vpop.permute.xlu1 %1009 }
 0x36a   :  { %v2856_v10 = vrot.slane %v2855_v42, 4  ;;  %v1018_v31 = vadd.f32 %v1010_v43, %v970_v11 }
 0x36b   :  { %v1056_v33 = vpop.permute.xlu0 %1055 }
 0x36c   :  { %v2857_v19 = vadd.f32 %v2856_v10, %v2855_v42  ;;  %v1065_v55 = vadd.f32 %v1056_v33, %v1017_v38 }
 0x36d   :  { %v1058_v14 = vpop.permute.xlu1 %1057 }
 0x36e   :  { %v2858_v22 = vrot.slane %v2857_v19, 2  ;;  %v1066_v21 = vadd.f32 %v1058_v14, %v1018_v31 }
 0x36f   :  { %v1104_v17 = vpop.permute.xlu0 %1103 }
 0x370   :  { %v2859_v54 = vadd.f32 %v2858_v22, %v2857_v19  ;;  %v1113_v59 = vadd.f32 %v1104_v17, %v1065_v55 }
 0x371   :  { %v1106_v44 = vpop.permute.xlu1 %1105 }
 0x372   :  { %v2860_v37 = vrot.slane %v2859_v54, 1  ;;  %v1114_v24 = vadd.f32 %v1106_v44, %v1066_v21 }
 0x373   :  { %v1152_v53 = vpop.permute.xlu0 %1151 }
 0x374   :  { %v2861_v49 = vadd.f32 %v2860_v37, %v2859_v54  ;;  %v1161_v15 = vadd.f32 %v1152_v53, %v1113_v59 }
 0x375   :  { %v1154_v16 = vpop.permute.xlu1 %1153 }
 0x376   :  { %2863 = vrot.lane.b32.xlu0 %v2861_v49, %s4004_s27  ;;  %v1162_v18 = vadd.f32 %v1154_v16, %v1114_v24 }
 0x377   :  { %v1200_v13 = vpop.permute.xlu0 %1199 }
 0x378   :  { %v1209_v25 = vadd.f32 %v1200_v13, %v1161_v15 }
 0x379   :  { %v1202_v20 = vpop.permute.xlu1 %1201 }
 0x37a   :  { %v1210_v40 = vadd.f32 %v1202_v20, %v1162_v18 }
 0x37b   :  { %v1248_v23 = vpop.permute.xlu0 %1247 }
 0x37c   :  { %v1257_v63 = vadd.f32 %v1248_v23, %v1209_v25  ;;  %v2193_v23 = vld [vmem:[%s5991_s6] sm:$0x1] }
 0x37d   :  { %v1250_v1 = vpop.permute.xlu1 %1249 }
 0x37e   :  { %v1258_v51 = vadd.f32 %v1250_v1, %v1210_v40 }
 0x37f   :  { %v1440_v12 = vpop.permute.xlu0 %1439 }
 0x380   :  { %v1449_v28 = vadd.f32 %v1440_v12, %v1257_v63 }
 0x381   :  { %v1442_v4 = vpop.permute.xlu1 %1441 }
 0x382   :  { %v1450_v8 = vadd.f32 %v1442_v4, %v1258_v51 }
 0x383   :  { %v1488_v0 = vpop.permute.xlu0 %1487 }
 0x384   :  { %v1497_v56 = vadd.f32 %v1488_v0, %v1449_v28 }
 0x385   :  { %v1490_v27 = vpop.permute.xlu1 %1489 }
 0x386   :  { %v1498_v26 = vadd.f32 %v1490_v27, %v1450_v8 }
 0x387   :  { %v1536_v48 = vpop.permute.xlu0 %1535 }
 0x388   :  { %v1545_v34 = vadd.f32 %v1536_v48, %v1497_v56  ;;  %v2886_v56 = vld [vmem:[%s5988_s3 + $0x28] sm:$0xff] }
 0x389   :  { %v1538_v32 = vpop.permute.xlu1 %1537 }
 0x38a   :  { %v1546_v29 = vadd.f32 %v1538_v32, %v1498_v26  ;;  %v2888_v26 = vld [vmem:[%s5988_s3 + $0x38] sm:$0xff] }
 0x38b   :  { %v1584_v41 = vpop.permute.xlu0 %1583 }
 0x38c   :  { %v1593_v61 = vadd.f32 %v1584_v41, %v1545_v34  ;;  %v2883_v34 = vld [vmem:[%s5988_s3 + $0x10] sm:$0xff] }
 0x38d   :  { %v1586_v46 = vpop.permute.xlu1 %1585 }
 0x38e   :  { %v1594_v62 = vadd.f32 %v1586_v46, %v1546_v29  ;;  %v2885_v29 = vld [vmem:[%s5988_s3 + $0x20] sm:$0xff] }
 0x38f   :  { %v1632_v50 = vpop.permute.xlu0 %1631 }
 0x390   :  { %v1641_v10 = vadd.f32 %v1632_v50, %v1593_v61  ;;  %v2881_v61 = vld [vmem:[%s5988_s3] sm:$0xff] }
 0x391   :  { %v1634_v9 = vpop.permute.xlu1 %1633 }
 0x392   :  { %v1642_v5 = vadd.f32 %v1634_v9, %v1594_v62  ;;  %v2882_v62 = vld [vmem:[%s5988_s3 + $0x8] sm:$0xff] }
 0x393   :  { %v1680_v30 = vpop.permute.xlu0 %1679 }
 0x394   :  { %v1689_v54 = vadd.f32 %v1680_v30, %v1641_v10  ;;  %v2884_v30 = vld [vmem:[%s5988_s3 + $0x18] sm:$0xff]  ;;  %v2299_v10 = vld [vmem:[%s5993_s8] sm:$0x1] }
 0x395   :  { %v1682_v35 = vpop.permute.xlu1 %1681 }
 0x396   :  { %v1690_v19 = vadd.f32 %v1682_v35, %v1642_v5  ;;  %v2887_v35 = vld [vmem:[%s5988_s3 + $0x30] sm:$0xff] }
 0x397   :  { %v1728_v22 = vpop.permute.xlu0 %1727 }
 0x398   :  { %v5797_v49 = vadd.f32 %v1728_v22, %v1689_v54 }
 0x399   :  { %v1730_v42 = vpop.permute.xlu1 %1729 }
 0x39a   :  { %v5795_v37 = vadd.f32 %v1730_v42, %v1690_v19  ;;  %v2834_v36 = vsel %vm2059_vm13, %v5797_v49, 0.0  ;;  %v2384_v42 = vld [vmem:[#allocation3] sm:$0xf] }
 0x39c   :  { %v2835_v7 = vsel %vm2059_vm13, %v5795_v37, 0.0 }
 0x39d   :  { %v2836_v43 = vadd.f32 %v2835_v7, %v2834_v36  ;;  %v2878_v20 = vpop.permute.xlu1 %2877 }
 0x39f   :  { %v2837_v45 = vrot.slane %v2836_v43, 4 }
 0x3a1   :  { %v2838_v14 = vadd.f32 %v2837_v45, %v2836_v43 }
 0x3a3   :  { %v2839_v33 = vrot.slane %v2838_v14, 2 }
 0x3a5   :  { %v2840_v44 = vadd.f32 %v2839_v33, %v2838_v14 }
 0x3a7   :  { %v2841_v17 = vrot.slane %v2840_v44, 1 }
 0x3a9   :  { %v2842_v16 = vadd.f32 %v2841_v17, %v2840_v44  ;;  %v3709_v17 = vld [vmem:[%s5992_s7 + $0x2] sm:$0x3] }
 0x3e8   :  { %v2864_v53 = vpop.permute.xlu0 %2863 }
 0x3e9   :  { %v2866_v13 = vadd.f32 %v2864_v53, %v2842_v16 }
 0x3eb   :  { %v2880_v1 = vadd.f32 %v2878_v20, %v2866_v13  ;;  %v2775_v20 = vlaneseq }
 0x3ed   :  { %2890 = vrot.lane.b32.xlu0 %v2880_v1, %s4009_s23  ;;  %v2776_v13 = vshrl.u32 %v2775_v20, 7  ;;  %v3717_v1 = vld [vmem:[%s5993_s8 + $0x2] sm:$0x1] }
 0x3f6   :  { %v2267_v4 = vpop.f32.mrf.mxu1 }
 0x3f7   :  { %v2268_v12 = vadd.f32 %v2267_v4, %v2193_v23  ;;  %v5869_v23 = vsub.s32 0, %v2776_v13 }
 0x3f8   :  { %v3814_v27 = vpop.f32.mrf.mxu1 }
 0x3f9   :  { %v2272_v0 = vmul.f32 0.70710677, %v2268_v12  ;;  %v2271_v63 = vmul.f32 0.5, %v2268_v12 }
 0x3fb   :  { %v2273_v32 = vand.u32 2147483647, %v2272_v0  ;;  %vm2293_vm0 = vcmp.lt.f32.partialorder %v2272_v0, 0.0 }
 0x3fd   :  { %v2274_v11 = vmul.f32 0.3275911, %v2273_v32  ;;  %v2287_v58 = vsub.f32 0.0, %v2273_v32 }
 0x3ff   :  { %v2275_v47 = vadd.f32 1.0, %v2274_v11  ;;  %v2288_v48 = vmul.f32 %v2287_v58, %v2273_v32  ;;  %v3710_v32 = vld [vmem:[%s5993_s8 + $0x1] sm:$0x1] }
 0x401   :  { %3916 = vrcp.f32 %v2275_v47  ;;  %v2289_v38 = vmul.f32 1.442695, %v2288_v48 }
 0x403   :  { %3918 = vpow2.f32 %v2289_v38 }
 0x40e   :  { %v3917_v57 = vpop.eup %3916 }
 0x40f   :  { %v2278_v31 = vmul.f32 1.0614054, %v3917_v57 }
 0x410   :  { %v3919_v40 = vpop.eup %3918 }
 0x411   :  { %v2279_v21 = vadd.f32 -1.4531521, %v2278_v31 }
 0x413   :  { %v2280_v46 = vmul.f32 %v3917_v57, %v2279_v21 }
 0x415   :  { %v2281_v55 = vadd.f32 1.4214138, %v2280_v46 }
 0x417   :  { %v2282_v24 = vmul.f32 %v3917_v57, %v2281_v55 }
 0x419   :  { %v2283_v41 = vadd.f32 -0.28449672, %v2282_v24 }
 0x41b   :  { %v2284_v59 = vmul.f32 %v3917_v57, %v2283_v41 }
 0x41d   :  { %v2285_v18 = vadd.f32 0.2548296, %v2284_v59 }
 0x41f   :  { %v2286_v15 = vmul.f32 %v3917_v57, %v2285_v18  ;;  %v2965_v18 = vld [vmem:[%s5990_s5] sm:$0xf] }
 0x421   :  { %v2291_v9 = vmul.f32 %v3919_v40, %v2286_v15  ;;  %v3070_v40 = vld [vmem:[%s5992_s7] sm:$0x3] }
 0x423   :  { %v2292_v25 = vsub.f32 1.0, %v2291_v9 }
 0x425   :  { %v2294_v51 = vsub.f32 0.0, %v2292_v25 }
 0x427   :  { %v2295_v50 = vsel %vm2293_vm0, %v2294_v51, %v2292_v25 }
 0x428   :  { %v2296_v8 = vadd.f32 1.0, %v2295_v50  ;;  %v6236_v50 = vld [vmem:[#allocation33_spill] sm:$0xff] }
 0x42a   :  { %v2297_v28 = vmul.f32 %v2296_v8, %v2271_v63  ;;  %v6237_v8 = vld [vmem:[#allocation34_spill] sm:$0xff] }
 0x42c   :  { %3818 = vmatmul.mubr.msk.f32.vlgmr.msra.gmra.mxu1 %vm2300_vm1, %v2297_v28  ;;  %3838 = vmatmul.mubr.msk.f32.vlgmr.msra.gmra.mxu0 %vm2300_vm1, %v2297_v28 }
 0x42d   :  { %3846 = vmatpush3.msra.mxu0 %v2888_v26  ;;  %3861 = vmatprep.mubr.msk.f32.mxu0 %vm4014_vm14, %v6214_v6  ;;  %v6238_v26 = vld [vmem:[#allocation35_spill] sm:$0xff] }
 0x42e   :  { %3847 = vmatprep.subr.mxu0 %v6214_v6  ;;  %3822 = vmatprep.mubr.msk.f32.mxu1 %vm4014_vm14, %v6214_v6 }
 0x42f   :  { %3848 = vmatpush3.msra.mxu0 %v2887_v35  ;;  %3821 = vmatpush3.msk.msra.mxu1 %vm678_vm9, %v2384_v42 }
 0x430   :  { %3849 = vmatprep.subr.mxu0 %v6214_v6  ;;  %3825 = vmatprep.subr.mxu1 %v6214_v6 }
 0x431   :  { %3850 = vmatpush3.msra.mxu0 %v2886_v56 }
 0x432   :  { %3851 = vmatprep.subr.mxu0 %v6214_v6 }
 0x433   :  { %3852 = vmatpush3.msra.mxu0 %v2885_v29 }
 0x434   :  { %3853 = vmatprep.subr.mxu0 %v6214_v6 }
 0x435   :  { %3854 = vmatpush3.msra.mxu0 %v2884_v30 }
 0x436   :  { %3855 = vmatprep.subr.mxu0 %v6214_v6 }
 0x437   :  { %3856 = vmatpush3.msra.mxu0 %v2883_v34 }
 0x438   :  { %3857 = vmatprep.subr.mxu0 %v6214_v6 }
 0x439   :  { %3858 = vmatpush3.msra.mxu0 %v2882_v62 }
 0x43a   :  { %3859 = vmatprep.subr.mxu0 %v6214_v6 }
 0x43b   :  { %3860 = vmatpush3.msra.mxu0 %v2881_v61 }
 0x43c   :  { %3884 = vmatprep.subr.mxu0 %v6214_v6 }
 0x45f   :  { %v2891_v5 = vpop.permute.xlu0 %2890 }
 0x460   :  { %3862 = vmatmul.mubr.msk.f32.vlgmr.msra.gmra.mxu0 %vm2079_vm12, %v2891_v5  ;;  %v2966_v5 = vld [vmem:[%s5991_s6] sm:$0x1] }
 0x461   :  { %3886 = vmatprep.mubr.msk.f32.mxu0 %vm4014_vm14, %v6214_v6 }
 0x4ec   :  { %v2373_v19 = vpop.f32.mrf.mxu1  ;;  %v2691_v22 = vpop.f32.mrf.mxu0 }
 0x4ed   :  { %v2374_v54 = vadd.f32 %v2373_v19, %v2299_v10  ;;  %v2692_v4 = vadd.f32 %v3717_v1, %v2691_v22 }
 0x4ee   :  { %v3819_v7 = vpop.f32.mrf.mxu1  ;;  %v3839_v36 = vpop.f32.mrf.mxu0 }
 0x4ef   :  { %v3706_v43 = vmul.f32 -1.442695, %v2374_v54  ;;  %v3720_v11 = vmul.f32 -1.442695, %v2692_v4  ;;  %v3955_v36 = vld [vmem:[%s5985_s0 + $0x8] sm:$0xff] }
 0x4f1   :  { %3920 = vpow2.f32 %v3706_v43 }
 0x4fe   :  { %v3921_v45 = vpop.eup %3920 }
 0x4ff   :  { %v2380_v14 = vadd.f32 1.0, %v3921_v45 }
 0x501   :  { %3922 = vrcp.f32 %v2380_v14 }
 0x502   :  { %3924 = vpow2.f32 %v3720_v11 }
 0x50e   :  { %v3923_v33 = vpop.eup %3922 }
 0x50f   :  { %v2383_v44 = vmul.f32 %v3923_v33, %v2374_v54  ;;  %v3925_v31 = vpop.eup %3924  ;;  %v3954_v54 = vld [vmem:[%s5985_s0] sm:$0xff] }
 0x510   :  { %v2698_v21 = vadd.f32 1.0, %v3925_v31 }
 0x511   :  { %3823 = vmatmul.mubr.msk.f32.vlgmr.msra.gmra.mxu1 %vm2194_vm15, %v2383_v44 }
 0x512   :  { %3826 = vmatpush3.msk.msra.mxu1 %vm760_vm11, %v3709_v17  ;;  %3827 = vmatprep.mubr.msk.f32.mxu1 %vm4014_vm14, %v6214_v6 }
 0x513   :  { %3830 = vmatprep.subr.mxu1 %v6214_v6 }
 0x515   :  { %3828 = vmatmul.mubr.msk.f32.vlgmr.msra.gmra.mxu1 %vm2300_vm1, %v2297_v28 }
 0x516   :  { %3831 = vmatpush3.msk.msra.mxu1 %vm678_vm9, %v2384_v42  ;;  %3832 = vmatprep.mubr.msk.f32.mxu1 %vm4014_vm14, %v6214_v6 }
 0x517   :  { %3840 = vmatprep.subr.mxu1 %v6214_v6 }
 0x520   :  { %v2960_v16 = vpop.f32.mrf.mxu0 }
 0x521   :  { %v2964_v15 = vmul.f32 0.00390625, %v2960_v16 }
 0x522   :  { %v3863_v53 = vpop.f32.mrf.mxu0 }
 0x5d1   :  { %v2457_v12 = vpop.f32.mrf.mxu1 }
 0x5d2   :  { %v2778_v27 = vrot.slane %v2457_v12, %v5869_v23 }
 0x5d3   :  { %v3824_v0 = vpop.f32.mrf.mxu1 }
 0x5d4   :  { %2780 = vrot.lane.b32.xlu1 %v2778_v27, %s4004_s27 }
 0x5d5   :  { %v2534_v47 = vpop.f32.mrf.mxu1 }
 0x5d6   :  { %v2535_v58 = vadd.f32 %v3710_v32, %v2534_v47 }
 0x5d7   :  { %v3829_v48 = vpop.f32.mrf.mxu1 }
 0x5d8   :  { %v3713_v57 = vmul.f32 -1.442695, %v2535_v58 }
 0x5da   :  { %3926 = vpow2.f32 %v3713_v57 }
 0x5e7   :  { %v3927_v38 = vpop.eup %3926 }
 0x5e8   :  { %v2541_v46 = vadd.f32 1.0, %v3927_v38 }
 0x5ea   :  { %3928 = vrcp.f32 %v2541_v46 }
 0x5eb   :  { %3930 = vrcp.f32 %v2698_v21 }
 0x5f7   :  { %v3929_v55 = vpop.eup %3928 }
 0x5f8   :  { %v2544_v24 = vmul.f32 %v3929_v55, %v2535_v58  ;;  %v3931_v41 = vpop.eup %3930 }
 0x5f9   :  { %v2701_v59 = vmul.f32 %v3931_v41, %v2692_v4  ;;  %v3155_v41 = vld [vmem:[#allocation3] sm:$0xf] }
 0x5fa   :  { %3833 = vmatmul.mubr.msk.f32.vlgmr.msra.gmra.mxu1 %vm2194_vm15, %v2544_v24  ;;  %3885 = vmatpush3.msk.msra.mxu0 %vm678_vm9, %v3155_v41 }
 0x5fb   :  { %3841 = vmatpush3.msk.msra.mxu1 %vm678_vm9, %v2384_v42  ;;  %3842 = vmatprep.mubr.msk.f32.mxu1 %vm4014_vm14, %v6214_v6 }
 0x5fc   :  { %3864 = vmatprep.subr.mxu1 %v6214_v6  ;;  %3894 = vmatprep.subr.mxu0 %v6214_v6 }
 0x5fe   :  { %3843 = vmatmul.mubr.msk.f32.vlgmr.msra.gmra.mxu1 %vm2194_vm15, %v2701_v59  ;;  %v3071_v59 = vld [vmem:[%s5993_s8] sm:$0x1] }
 0x5ff   :  { %3865 = vmatpush3.msk.msra.mxu1 %vm678_vm9, %v2965_v18  ;;  %3866 = vmatprep.mubr.msk.f32.mxu1 %vm4014_vm14, %v6214_v6 }
 0x600   :  { %3869 = vmatprep.subr.mxu1 %v6214_v6 }
 0x602   :  { %3867 = vmatmul.mubr.msk.f32.vlgmr.msra.gmra.mxu1 %vm2194_vm15, %v2964_v15 }
 0x603   :  { %3871 = vmatprep.mubr.msk.f32.mxu1 %vm4014_vm14, %v6214_v6  ;;  %3870 = vmatpush3.msk.msra.mxu1 %vm760_vm11, %v3070_v40 }
 0x604   :  { %3874 = vmatprep.subr.mxu1 %v6214_v6 }
 0x6ba   :  { %v2614_v9 = vpop.f32.mrf.mxu1 }
 0x6bb   :  { %v2788_v25 = vrot.slane %v2614_v9, %v5869_v23 }
 0x6bc   :  { %v3834_v51 = vpop.f32.mrf.mxu1 }
 0x6bd   :  { %v2789_v63 = vmul.f32 %v2788_v25, %v6236_v50  ;;  %v2790_v28 = vmul.f32 %v2788_v25, %v6237_v8  ;;  %v2791_v35 = vmul.f32 %v2788_v25, %v6238_v26  ;;  %v3731_v8 = vld [vmem:[%s5992_s7 + $0x2] sm:$0x3] }
 0x6be   :  { %v2771_v56 = vpop.f32.mrf.mxu1 }
 0x6bf   :  { %v2795_v29 = vrot.slane %v2789_v63, 2  ;;  %v2796_v30 = vrot.slane %v2790_v28, 2  ;;  %v2798_v34 = vrot.slane %v2791_v35, 2  ;;  %v2811_v62 = vrot.slane %v2771_v56, %v5869_v23  ;;  %v3738_v28 = vld [vmem:[%s5992_s7 + $0x4] sm:$0x3] }
 0x6c0   :  { %v3844_v61 = vpop.f32.mrf.mxu1 }
 0x6c1   :  { %v2797_v42 = vsel %vm179_vm7, %v2795_v29, %v2796_v30  ;;  %v2799_v10 = vsel %vm179_vm7, %v2796_v30, %v2798_v34  ;;  %v2812_v7 = vmul.f32 %v3954_v54, %v2811_v62  ;;  %v2813_v43 = vmul.f32 %v3955_v36, %v2811_v62  ;;  %v3732_v29 = vld [vmem:[%s5993_s8 + $0x1] sm:$0x1]  ;;  %v3739_v61 = vld [vmem:[%s5993_s8 + $0x2] sm:$0x1]  ;;  %s4015_s8 = smov [#allocation6]  }
 0x6c2   :  { %2800 = vrot.lane.b32.xlu1 %v2797_v42, %s4004_s27  ;;  %2802 = vrot.lane.b32.xlu0 %v2799_v10, %s4004_s27  ;;  %v3039_v19 = vpop.f32.mrf.mxu1  ;;  %s3607_s17 = sshll.u32 %s4015_s8, 4  ;;  %s3608_s17 = int_to_ptr.vmem [resolvable:$true] %s3607_s17 }
 0x6c3   :  { %v3040_v22 = vadd.f32 %v3039_v19, %v2966_v5  ;;  %s3976_s3 = scalar_lea.vmem %s3608_s17, 512  ;;  %p3981_p6 = scmp.lt.s32.totalorder %s3608_s17, %s3608_s17 }
 0x6c4   :  { %v3868_v45 = vpop.f32.mrf.mxu1  ;;  %p3977_p5 = scmp.ne.s32.totalorder %s3608_s17, %s3976_s3  ;;  %p3982_p7 = scmp.lt.s32.totalorder %s3976_s3, %s3976_s3 }
 0x6c5   :  { %v3044_v14 = vmul.f32 0.70710677, %v3040_v22  ;;  %v3043_v46 = vmul.f32 0.5, %v3040_v22 }
 0x6c6   :  { %2816 = vrot.lane.b32.xlu1 %v2812_v7, %s4004_s27  ;;  %2818 = vrot.lane.b32.xlu0 %v2813_v43, %s4004_s27  ;;  %p3983_p8 = por %p3982_p7, %p3981_p6 }
 0x6c7   :  { %v3045_v33 = vand.u32 2147483647, %v3044_v14  ;;  %vm3065_vm2 = vcmp.lt.f32.partialorder %v3044_v14, 0.0 }
 0x6c8   :  { %p3984_p9 = pnand %p3983_p8, %p3977_p5 }
 0x6c9   :  { %v3046_v44 = vmul.f32 0.3275911, %v3045_v33  ;;  %v3059_v16 = vsub.f32 0.0, %v3045_v33 }
 0x6cb   :  { %v3047_v17 = vadd.f32 1.0, %v3046_v44  ;;  %v3060_v53 = vmul.f32 %v3059_v16, %v3045_v33  ;;  %v2781_v16 = vpop.permute.xlu1 %2780 }
 0x6cd   :  { %3932 = vrcp.f32 %v3047_v17  ;;  %v3061_v1 = vmul.f32 1.442695, %v3060_v53 }
 0x6cf   :  { %3934 = vpow2.f32 %v3061_v1 }
 0x6da   :  { %v3933_v20 = vpop.eup %3932 }
 0x6db   :  { %v3050_v13 = vmul.f32 1.0614054, %v3933_v20 }
 0x6dc   :  { %v3935_v48 = vpop.eup %3934 }
 0x6dd   :  { %v3051_v4 = vadd.f32 -1.4531521, %v3050_v13 }
 0x6df   :  { %v3052_v12 = vmul.f32 %v3933_v20, %v3051_v4 }
 0x6e1   :  { %v3053_v27 = vadd.f32 1.4214138, %v3052_v12 }
 0x6e3   :  { %v3054_v0 = vmul.f32 %v3933_v20, %v3053_v27 }
 0x6e5   :  { %v3055_v32 = vadd.f32 -0.28449672, %v3054_v0 }
 0x6e7   :  { %v3056_v11 = vmul.f32 %v3933_v20, %v3055_v32 }
 0x6e9   :  { %v3057_v47 = vadd.f32 0.2548296, %v3056_v11 }
 0x6eb   :  { %v3058_v58 = vmul.f32 %v3933_v20, %v3057_v47 }
 0x6ed   :  { %v3063_v57 = vmul.f32 %v3935_v48, %v3058_v58 }
 0x6ef   :  { %v3064_v31 = vsub.f32 1.0, %v3063_v57 }
 0x6f1   :  { %v3066_v38 = vsub.f32 0.0, %v3064_v31 }
 0x6f3   :  { %v3067_v21 = vsel %vm3065_vm2, %v3066_v38, %v3064_v31 }
 0x6f4   :  { %v3068_v55 = vadd.f32 1.0, %v3067_v21 }
 0x6f6   :  { %v3069_v24 = vmul.f32 %v3068_v55, %v3043_v46 }
 0x6f8   :  { %3872 = vmatmul.mubr.msk.f32.vlgmr.msra.gmra.mxu1 %vm2300_vm1, %v3069_v24 }
 0x6f9   :  { %3876 = vmatprep.mubr.msk.f32.mxu1 %vm4014_vm14, %v6214_v6  ;;  %3875 = vmatpush3.msk.msra.mxu1 %vm678_vm9, %v3155_v41 }
 0x6fa   :  { %3879 = vmatprep.subr.mxu1 %v6214_v6 }
 0x734   :  { %v2801_v27 = vpop.permute.xlu1 %2800  ;;  %v2803_v0 = vpop.permute.xlu0 %2802 }
 0x738   :  { %v2817_v46 = vpop.permute.xlu1 %2816  ;;  %v2819_v55 = vpop.permute.xlu0 %2818 }
 0x7b8   :  { %v3144_v18 = vpop.f32.mrf.mxu1 }
 0x7b9   :  { %v3145_v15 = vadd.f32 %v3144_v18, %v3071_v59 }
 0x7ba   :  { %v3873_v40 = vpop.f32.mrf.mxu1 }
 0x7bb   :  { %v3728_v9 = vmul.f32 -1.442695, %v3145_v15 }
 0x7bd   :  { %3936 = vpow2.f32 %v3728_v9 }
 0x7ca   :  { %v3937_v25 = vpop.eup %3936 }
 0x7cb   :  { %v3151_v51 = vadd.f32 1.0, %v3937_v25 }
 0x7cd   :  { %3938 = vrcp.f32 %v3151_v51 }
 0x7da   :  { %v3939_v50 = vpop.eup %3938 }
 0x7db   :  { %v3154_v63 = vmul.f32 %v3939_v50, %v3145_v15 }
 0x7dd   :  { %3877 = vmatmul.mubr.msk.f32.vlgmr.msra.gmra.mxu1 %vm2194_vm15, %v3154_v63 }
 0x7de   :  { %3880 = vmatpush3.msk.msra.mxu1 %vm760_vm11, %v3731_v8  ;;  %3881 = vmatprep.mubr.msk.f32.mxu1 %vm4014_vm14, %v6214_v6 }
 0x7df   :  { %3889 = vmatprep.subr.mxu1 %v6214_v6 }
 0x7e1   :  { %3882 = vmatmul.mubr.msk.f32.vlgmr.msra.gmra.mxu1 %vm2300_vm1, %v3069_v24 }
 0x7e2   :  { %3890 = vmatpush3.msk.msra.mxu1 %vm760_vm11, %v3738_v28  ;;  %3891 = vmatprep.mubr.msk.f32.mxu1 %vm4014_vm14, %v6214_v6 }
 0x7e5   :  { %3892 = vmatmul.mubr.msk.f32.vlgmr.msra.gmra.mxu1 %vm2300_vm1, %v3069_v24 }
 0x89d   :  { %v3228_v26 = vpop.f32.mrf.mxu1 }
 0x89e   :  { %v3545_v35 = vrot.slane %v3228_v26, %v5869_v23 }
 0x89f   :  { %v3878_v56 = vpop.f32.mrf.mxu1 }
 0x8a0   :  { %3547 = vrot.lane.b32.xlu0 %v3545_v35, %s4004_s27 }
 0x8a1   :  { %v3303_v30 = vpop.f32.mrf.mxu1 }
 0x8a2   :  { %v3304_v34 = vadd.f32 %v3732_v29, %v3303_v30 }
 0x8a3   :  { %v3883_v62 = vpop.f32.mrf.mxu1 }
 0x8a4   :  { %v3735_v5 = vmul.f32 -1.442695, %v3304_v34 }
 0x8a5   :  { %v3458_v42 = vpop.f32.mrf.mxu1 }
 0x8a6   :  { %3940 = vpow2.f32 %v3735_v5  ;;  %v3459_v10 = vadd.f32 %v3739_v61, %v3458_v42 }
 0x8a7   :  { %v3893_v19 = vpop.f32.mrf.mxu1 }
 0x8a8   :  { %v3742_v22 = vmul.f32 -1.442695, %v3459_v10 }
 0x8aa   :  { %3942 = vpow2.f32 %v3742_v22 }
 0x8b3   :  { %v3941_v54 = vpop.eup %3940 }
 0x8b4   :  { %v3310_v7 = vadd.f32 1.0, %v3941_v54 }
 0x8b6   :  { %3944 = vrcp.f32 %v3310_v7 }
 0x8b7   :  { %v3943_v36 = vpop.eup %3942 }
 0x8b8   :  { %v3465_v43 = vadd.f32 1.0, %v3943_v36 }
 0x8ba   :  { %3946 = vrcp.f32 %v3465_v43 }
 0x8c3   :  { %v3945_v45 = vpop.eup %3944 }
 0x8c4   :  { %v3313_v14 = vmul.f32 %v3945_v45, %v3304_v34 }
 0x8c6   :  { %3887 = vmatmul.mubr.msk.f32.vlgmr.msra.gmra.mxu0 %vm2194_vm15, %v3313_v14 }
 0x8c7   :  { %v3947_v33 = vpop.eup %3946  ;;  %3895 = vmatpush3.msk.msra.mxu0 %vm678_vm9, %v3155_v41  ;;  %3896 = vmatprep.mubr.msk.f32.mxu0 %vm4014_vm14, %v6214_v6 }
 0x8c8   :  { %v3468_v44 = vmul.f32 %v3947_v33, %v3459_v10 }
 0x8ca   :  { %3897 = vmatmul.mubr.msk.f32.vlgmr.msra.gmra.mxu0 %vm2194_vm15, %v3468_v44 }
 0x912   :  { %v3548_v18 = vpop.permute.xlu0 %3547 }
 0x986   :  { %v3383_v17 = vpop.f32.mrf.mxu0 }
 0x987   :  { %v3555_v53 = vrot.slane %v3383_v17, %v5869_v23 }
 0x988   :  { %v3888_v20 = vpop.f32.mrf.mxu0 }
 0x989   :  { %v3556_v13 = vmul.f32 %v3555_v53, %v5771_v52  ;;  %v3557_v1 = vmul.f32 %v3555_v53, %v5769_v3  ;;  %v3558_v4 = vmul.f32 %v3555_v53, %v5775_v60  ;;  %v6239_v3 = vld [vmem:[#allocation39_spill] sm:$0xff]  ;;  %v6240_v60 = vld [vmem:[#allocation40_spill] sm:$0xff] }
 0x98a   :  { %v3538_v12 = vpop.f32.mrf.mxu0  ;;  %v2783_v52 = vmul.f32 %v2781_v16, %v6239_v3  ;;  %v2784_v31 = vmul.f32 %v2781_v16, %v6240_v60 }
 0x98b   :  { %v3562_v32 = vrot.slane %v3556_v13, 2  ;;  %v3563_v11 = vrot.slane %v3557_v1, 2  ;;  %v3565_v6 = vrot.slane %v3558_v4, 2  ;;  %v3578_v47 = vrot.slane %v3538_v12, %v5869_v23 }
 0x98c   :  { %v3898_v58 = vpop.f32.mrf.mxu0  ;;  %v2806_v23 = vadd.f32 %v2801_v27, %v2783_v52  ;;  %v2807_v24 = vadd.f32 %v2803_v0, %v2784_v31 }
 0x98d   :  { %v3566_v48 = vsel %vm179_vm7, %v3563_v11, %v3565_v6  ;;  %v3564_v57 = vsel %vm179_vm7, %v3562_v32, %v3563_v11  ;;  %v3579_v38 = vmul.f32 %v3578_v47, %v5713_v2  ;;  %v3580_v21 = vmul.f32 %v3578_v47, %v5718_v39 }
 0x98e   :  { %3569 = vrot.lane.b32.xlu0 %v3566_v48, %s4004_s27  ;;  %3567 = vrot.lane.b32.xlu1 %v3564_v57, %s4004_s27  ;;  %v2822_v41 = vadd.f32 %v2817_v46, %v2806_v23  ;;  %v2823_v59 = vadd.f32 %v2819_v55, %v2807_v24  ;;  %v3550_v2 = vmul.f32 %v3548_v18, %v5797_v49 }
 0x98f   :  { %v3551_v39 = vmul.f32 %v3548_v18, %v5795_v37 }
 0x992   :  { %3585 = vrot.lane.b32.xlu0 %v3580_v21, %s4004_s27  ;;  %3583 = vrot.lane.b32.xlu1 %v3579_v38, %s4004_s27 }
 0x996   :  { %2826 = vrot.lane.b32.xlu1 %v2822_v41, %s4009_s23  ;;  %2828 = vrot.lane.b32.xlu0 %v2823_v59, %s4009_s23 }
 0xa00   :  { %v3568_v15 = vpop.permute.xlu1 %3567  ;;  %v3570_v40 = vpop.permute.xlu0 %3569 }
 0xa01   :  { %v3573_v9 = vadd.f32 %v3568_v15, %v3550_v2  ;;  %v3574_v25 = vadd.f32 %v3570_v40, %v3551_v39 }
 0xa04   :  { %v3584_v51 = vpop.permute.xlu1 %3583  ;;  %v3586_v50 = vpop.permute.xlu0 %3585 }
 0xa05   :  { %v3589_v63 = vadd.f32 %v3584_v51, %v3573_v9  ;;  %v3590_v8 = vadd.f32 %v3586_v50, %v3574_v25 }
 0xa07   :  { %3593 = vrot.lane.b32.xlu1 %v3589_v63, %s4009_s23  ;;  %3595 = vrot.lane.b32.xlu0 %v3590_v8, %s4009_s23 }
 0xa08   :  { %v2827_v28 = vpop.permute.xlu1 %2826  ;;  %v2829_v26 = vpop.permute.xlu0 %2828 }
 0xa09   :  { %2832 = vst.msk [vmem:[#allocation6] sm:$0xff] %vm2079_vm12, %v2827_v28  ;;  %2833 = vst.msk [vmem:[#allocation6 + $0x8] sm:$0xff] %vm2079_vm12, %v2829_v26 }
 0xa79   :  { %v3594_v37 = vpop.permute.xlu1 %3593  ;;  %v3596_v49 = vpop.permute.xlu0 %3595 }
 0xa7a   :  { %3600 = vst.msk [vmem:[#allocation6 + $0x10] sm:$0xff] %vm2079_vm12, %v3594_v37  ;;  %3601 = vst.msk [vmem:[#allocation6 + $0x18] sm:$0xff] %vm2079_vm12, %v3596_v49 }
 0xa7b   :  { %3987 = shalt.err (!%p3984_p9)
}
 0xa7c   :  { %s4016_s23 = smov 128  }
 0xa7d   :  { %3613 = dma.vmem_to_hbm [thread:$0]  %s3608_s17, 512, %s5994_s9, [#allocation5], %s4016_s23, %s4016_s23, %s4004_s27  }
 0xa7e   :  { %3998 = dma.done.wait [#allocation5], 512  }
 0xa7f   :  { %3999 = vsyncadd [#allocation5], 4294966784 }
 0xa80   :  { %3617 = vsyncpa [#allocation4], 1 }
 0xa81   :  { %3618 = vsyncpa [#allocation5], 1 }

</bundles_post_ra>
